<compile_context>
chip_gen: v5e
topology: v5e:2x2
jax: 0.10.0
libtpu: 0.0.40
codegen_flags: <defaults>
</compile_context>

<pallas_src>
import functools

import jax
import jax.numpy as jnp
from jax.experimental import pallas as pl
from jax.experimental.pallas import tpu as pltpu

DATA_DIM = 784          # 28 * 28
HIDDEN_DIM = 400
LANE = 128
DEC_PAD = pl.cdiv(DATA_DIM, LANE) * LANE      # 896, lane-dense decoder slab


def _round_up(n, m):
    return ((n + m - 1) // m) * m


def batch_tile(batch):
    """Batch tile policy: >=2 grid steps when possible (v7x megacore),
    sublane-aligned (multiple of 8), capped at 512 rows per tile."""
    block_b = max(8, min(512, _round_up(pl.cdiv(batch, 2), 8)))
    b_pad = _round_up(batch, block_b)
    return block_b, b_pad


# ---------------------------------------------------------------------------
# Fused forward kernel
# ---------------------------------------------------------------------------
def _vae_fwd_kernel(x_ref, eps_ref,
                    w1_ref, b1_ref, w2_ref, b2_ref,
                    w3_ref, b3_ref, w4_ref, b4_ref,
                    recon_ref, slab_ref,
                    *, latent_dim, enc_pad):
    f32 = jnp.float32
    bf16 = jnp.bfloat16

    # ----- encoder -------------------------------------------------------
    x = x_ref[...].astype(bf16)                                   # bf16 MXU operands
    h1 = jnp.dot(x, w1_ref[...], preferred_element_type=f32) + b1_ref[...]
    h1 = jnp.maximum(h1, 0.0)                                     # relu (f32)

    # merged fc21|fc22 heads: one matmul -> lane-dense slab [mu | logvar | 0]
    slab = jnp.dot(h1.astype(bf16), w2_ref[...],
                   preferred_element_type=f32) + b2_ref[...]
    slab_ref[...] = slab                                          # unmasked vst

    # ----- reparameterize: z = mu + eps * exp(0.5 * logvar) ----------------
    # Rotate the slab so the logvar lanes line up under the mu lanes (XLU op,
    # no sub-128 lane slicing), then lane-mask the exp so the lanes holding
    # rotated mu values produce std = 0 (avoids inf/NaN poisoning fc3).
    logvar_aligned = pltpu.roll(slab, shift=enc_pad - latent_dim, axis=1)
    lane = jax.lax.broadcasted_iota(jnp.int32, slab.shape, dimension=1)
    std = jnp.where(lane < latent_dim, jnp.exp(0.5 * logvar_aligned), 0.0)
    # Lanes >= latent_dim: std == 0  ->  z_pad = slab (finite), and the zero
    # rows of w3p annihilate them in the next matmul.
    z_pad = slab + eps_ref[...] * std

    # ----- decoder ---------------------------------------------------------
    h3 = jnp.dot(z_pad.astype(bf16), w3_ref[...],
                 preferred_element_type=f32) + b3_ref[...]
    h3 = jnp.maximum(h3, 0.0)                                     # relu
    logits = jnp.dot(h3.astype(bf16), w4_ref[...],
                     preferred_element_type=f32) + b4_ref[...]
    # sigmoid with the divide on the EUP slot
    recon_ref[...] = pl.reciprocal(1.0 + jnp.exp(-logits), approx=True)


# ---------------------------------------------------------------------------
# Parameter init (PyTorch nn.Linear default bounds) and packing
# ---------------------------------------------------------------------------
def init_vae_params(key, latent_dim):
    def linear(k, fan_in, fan_out):
        kw, kb = jax.random.split(k)
        bound = 1.0 / float(jnp.sqrt(fan_in))
        w = jax.random.uniform(kw, (fan_in, fan_out), jnp.float32, -bound, bound)
        b = jax.random.uniform(kb, (fan_out,), jnp.float32, -bound, bound)
        return w, b

    k1, k21, k22, k3, k4 = jax.random.split(key, 5)
    return {
        "fc1": linear(k1, DATA_DIM, HIDDEN_DIM),
        "fc21": linear(k21, HIDDEN_DIM, latent_dim),
        "fc22": linear(k22, HIDDEN_DIM, latent_dim),
        "fc3": linear(k3, latent_dim, HIDDEN_DIM),
        "fc4": linear(k4, HIDDEN_DIM, DATA_DIM),
    }


def pack_vae_params(params, latent_dim):
    """One-time packing: merge fc21/fc22, lane-pad narrow dims, cast weights
    to bf16 (MXU-native); biases stay f32 for the epilogue adds."""
    enc_pad = _round_up(max(2 * latent_dim, LANE), LANE)
    w1, b1 = params["fc1"]
    w21, b21 = params["fc21"]
    w22, b22 = params["fc22"]
    w3, b3 = params["fc3"]
    w4, b4 = params["fc4"]

    # merged encoder heads: columns [0:L] = mu head, [L:2L] = logvar head
    w2p = jnp.zeros((HIDDEN_DIM, enc_pad), jnp.float32)
    w2p = w2p.at[:, :latent_dim].set(w21).at[:, latent_dim:2 * latent_dim].set(w22)
    b2p = jnp.zeros((1, enc_pad), jnp.float32)
    b2p = b2p.at[0, :latent_dim].set(b21).at[0, latent_dim:2 * latent_dim].set(b22)

    # fc3 with zero rows beyond latent_dim (kills the padded z lanes)
    w3p = jnp.zeros((enc_pad, HIDDEN_DIM), jnp.float32).at[:latent_dim].set(w3)

    # fc4 lane-padded to DEC_PAD output columns
    w4p = jnp.zeros((HIDDEN_DIM, DEC_PAD), jnp.float32).at[:, :DATA_DIM].set(w4)
    b4p = jnp.zeros((1, DEC_PAD), jnp.float32).at[0, :DATA_DIM].set(b4)

    bf16 = jnp.bfloat16
    return (w1.astype(bf16), b1.reshape(1, -1),
            w2p.astype(bf16), b2p,
            w3p.astype(bf16), b3.reshape(1, -1),
            w4p.astype(bf16), b4p)


# ---------------------------------------------------------------------------
# Forward wrapper (single fused pallas_call, batch-tiled "parallel" grid)
# ---------------------------------------------------------------------------
def vae_forward(packed, x, eps_pad, *, latent_dim):
    """Returns lane-dense padded outputs:
         recon_pad : (B_pad, 896)     -- recon = recon_pad[:B, :784]
         slab      : (B_pad, enc_pad) -- mu = slab[:B, :L], logvar = slab[:B, L:2L]
    Trimming is intentionally left to the consumer (no extra HBM copy here)."""
    w1, b1, w2p, b2p, w3p, b3, w4p, b4p = packed
    enc_pad = w2p.shape[1]

    x2 = x.reshape(-1, DATA_DIM)                       # x.view(-1, 784)
    B = x2.shape[0]
    block_b, B_pad = batch_tile(B)
    if B_pad != B:
        x2 = jnp.pad(x2, ((0, B_pad - B), (0, 0)))
    if eps_pad.shape != (B_pad, enc_pad):              # fallback path only
        tmp = jnp.zeros((B_pad, enc_pad), jnp.float32)
        eps_pad = tmp.at[:eps_pad.shape[0], :eps_pad.shape[1]].set(eps_pad)

    grid = (B_pad // block_b,)

    def batch_spec(last):
        return pl.BlockSpec((block_b, last), lambda i: (i, 0))

    def const_spec(shape):
        return pl.BlockSpec(shape, lambda i: (0, 0))   # weights stay resident

    kern = functools.partial(_vae_fwd_kernel, latent_dim=latent_dim, enc_pad=enc_pad)
    recon_pad, slab = pl.pallas_call(
        kern,
        out_shape=(jax.ShapeDtypeStruct((B_pad, DEC_PAD), jnp.float32),
                   jax.ShapeDtypeStruct((B_pad, enc_pad), jnp.float32)),
        grid_spec=pltpu.PrefetchScalarGridSpec(
            num_scalar_prefetch=0,
            grid=grid,
            in_specs=[
                batch_spec(DATA_DIM),                       # x
                batch_spec(enc_pad),                        # eps (lane-padded)
                const_spec((DATA_DIM, HIDDEN_DIM)),         # fc1 W (bf16)
                const_spec((1, HIDDEN_DIM)),                # fc1 b
                const_spec((HIDDEN_DIM, enc_pad)),          # merged fc21|fc22 W (bf16)
                const_spec((1, enc_pad)),                   # merged b
                const_spec((enc_pad, HIDDEN_DIM)),          # fc3 W (bf16, row-padded)
                const_spec((1, HIDDEN_DIM)),                # fc3 b
                const_spec((HIDDEN_DIM, DEC_PAD)),          # fc4 W (bf16, lane-padded)
                const_spec((1, DEC_PAD)),                   # fc4 b
            ],
            out_specs=(batch_spec(DEC_PAD), batch_spec(enc_pad)),
        ),
        compiler_params=pltpu.CompilerParams(
            dimension_semantics=("parallel",),
            # ~1.6 MB resident bf16 weights + <=512-row double-buffered I/O
            # tiles + f32 intermediates stays well under 48 MiB; 48 MiB is
            # above v5e's 16 MiB scoped default and below v7x's 64 MiB/TC.
            vmem_limit_bytes=48 * 1024 * 1024),
    )(x2, eps_pad, w1, b1, w2p, b2p, w3p, b3, w4p, b4p)

    return recon_pad, slab


# ---------------------------------------------------------------------------
# Pure-JAX reference (for correctness check)
# ---------------------------------------------------------------------------
def vae_forward_ref(params, x, eps):
    hi = jax.lax.Precision.HIGHEST
    x2 = x.reshape(-1, DATA_DIM)
    w1, b1 = params["fc1"]
    w21, b21 = params["fc21"]
    w22, b22 = params["fc22"]
    w3, b3 = params["fc3"]
    w4, b4 = params["fc4"]
    h1 = jnp.maximum(jnp.dot(x2, w1, precision=hi) + b1, 0.0)
    mu = jnp.dot(h1, w21, precision=hi) + b21
    logvar = jnp.dot(h1, w22, precision=hi) + b22
    z = mu + eps * jnp.exp(0.5 * logvar)
    h3 = jnp.maximum(jnp.dot(z, w3, precision=hi) + b3, 0.0)
    recon = jax.nn.sigmoid(jnp.dot(h3, w4, precision=hi) + b4)
    return recon, mu, logvar


if __name__ == "__main__":
    latent_dim = 16
    batch = 8

    key = jax.random.PRNGKey(0)
    kp, kx, ke = jax.random.split(key, 3)
    params = init_vae_params(kp, latent_dim)
    packed = pack_vae_params(params, latent_dim)
    enc_pad = packed[2].shape[1]

    x = jax.random.uniform(kx, (batch, 1, 28, 28), dtype=jnp.float32)   # MNIST-like
    # eps is drawn directly in the lane-padded layout the kernel consumes; only
    # the first latent_dim lanes are semantically meaningful (std lane mask
    # zeroes the rest), so no wrapper pad/scatter is needed.
    _, b_pad = batch_tile(batch)
    eps_pad = jax.random.normal(ke, (b_pad, enc_pad), dtype=jnp.float32)

    fwd = jax.jit(functools.partial(vae_forward, latent_dim=latent_dim))
    recon_pad, slab = fwd(packed, x, eps_pad)
    jax.block_until_ready((recon_pad, slab))

    # Consumer-side trim (kept out of the fused kernel / hot path on purpose).
    recon = recon_pad[:batch, :DATA_DIM]
    mu = slab[:batch, :latent_dim]
    logvar = slab[:batch, latent_dim:2 * latent_dim]

    assert recon.shape == (batch, DATA_DIM)
    assert mu.shape == (batch, latent_dim)
    assert logvar.shape == (batch, latent_dim)

    eps = eps_pad[:batch, :latent_dim]
    r_ref, m_ref, lv_ref = vae_forward_ref(params, x, eps)
    # bf16 MXU operands vs. f32 HIGHEST-precision reference -> looser tolerance
    assert jnp.allclose(mu, m_ref, atol=2e-2, rtol=2e-2)
    assert jnp.allclose(logvar, lv_ref, atol=2e-2, rtol=2e-2)
    assert jnp.allclose(recon, r_ref, atol=2e-2, rtol=2e-2)
    assert bool(jnp.all(jnp.isfinite(recon_pad))) and bool(jnp.all(jnp.isfinite(slab)))

    print("KERNEL_OK")
</pallas_src>

<mosaic_0001>
module attributes {stable_mosaic.version = 11 : i64} {
  func.func @_vae_fwd_kernel(%arg0: i32, %arg1: memref<8x784xf32, #tpu.memory_space<vmem>>, %arg2: memref<8x128xf32, #tpu.memory_space<vmem>>, %arg3: memref<784x400xbf16, #tpu.memory_space<vmem>>, %arg4: memref<1x400xf32, #tpu.memory_space<vmem>>, %arg5: memref<400x128xbf16, #tpu.memory_space<vmem>>, %arg6: memref<1x128xf32, #tpu.memory_space<vmem>>, %arg7: memref<128x400xbf16, #tpu.memory_space<vmem>>, %arg8: memref<1x400xf32, #tpu.memory_space<vmem>>, %arg9: memref<400x896xbf16, #tpu.memory_space<vmem>>, %arg10: memref<1x896xf32, #tpu.memory_space<vmem>>, %arg11: memref<8x896xf32, #tpu.memory_space<vmem>>, %arg12: memref<8x128xf32, #tpu.memory_space<vmem>>) attributes {dimension_semantics = [#tpu.dimension_semantics<parallel>], iteration_bounds = array<i64: 1>, scalar_prefetch = 0 : i64, scratch_operands = 0 : i64, tpu.core_type = #tpu.core_type<tc>, window_params = [{transform_indices = @transform_0, window_bounds = array<i64: 8, 784>}, {transform_indices = @transform_1, window_bounds = array<i64: 8, 128>}, {pipeline_mode = #tpu.pipeline_mode<synchronous>, transform_indices = @transform_2, window_bounds = array<i64: 784, 400>}, {pipeline_mode = #tpu.pipeline_mode<synchronous>, transform_indices = @transform_3, window_bounds = array<i64: 1, 400>}, {pipeline_mode = #tpu.pipeline_mode<synchronous>, transform_indices = @transform_4, window_bounds = array<i64: 400, 128>}, {pipeline_mode = #tpu.pipeline_mode<synchronous>, transform_indices = @transform_5, window_bounds = array<i64: 1, 128>}, {pipeline_mode = #tpu.pipeline_mode<synchronous>, transform_indices = @transform_6, window_bounds = array<i64: 128, 400>}, {pipeline_mode = #tpu.pipeline_mode<synchronous>, transform_indices = @transform_7, window_bounds = array<i64: 1, 400>}, {pipeline_mode = #tpu.pipeline_mode<synchronous>, transform_indices = @transform_8, window_bounds = array<i64: 400, 896>}, {pipeline_mode = #tpu.pipeline_mode<synchronous>, transform_indices = @transform_9, window_bounds = array<i64: 1, 896>}, {transform_indices = @transform_10, window_bounds = array<i64: 8, 896>}, {transform_indices = @transform_11, window_bounds = array<i64: 8, 128>}]} {
    %c0 = arith.constant 0 : index
    %c0_0 = arith.constant 0 : index
    %0 = vector.load %arg1[%c0, %c0_0] : memref<8x784xf32, #tpu.memory_space<vmem>>, vector<8x784xf32>
    %1 = arith.truncf %0 : vector<8x784xf32> to vector<8x784xbf16>
    %c0_1 = arith.constant 0 : index
    %c0_2 = arith.constant 0 : index
    %2 = vector.load %arg3[%c0_1, %c0_2] : memref<784x400xbf16, #tpu.memory_space<vmem>>, vector<784x400xbf16>
    %cst = arith.constant dense<0.000000e+00> : vector<8x400xf32>
    %3 = tpu.matmul %1, %2, %cst {dimension_numbers = #tpu.dot_dimension_numbers<[1], [0], [0], [1], [0, 0, 1, 1], [], []>} : vector<8x784xbf16>, vector<784x400xbf16>, vector<8x400xf32> -> vector<8x400xf32>
    %c0_3 = arith.constant 0 : index
    %c0_4 = arith.constant 0 : index
    %4 = vector.load %arg4[%c0_3, %c0_4] : memref<1x400xf32, #tpu.memory_space<vmem>>, vector<1x400xf32>
    %5 = vector.broadcast %4 : vector<1x400xf32> to vector<8x400xf32>
    %6 = arith.addf %3, %5 : vector<8x400xf32>
    %cst_5 = arith.constant 0.000000e+00 : f32
    %7 = vector.broadcast %cst_5 : f32 to vector<8x400xf32>
    %8 = arith.maximumf %6, %7 : vector<8x400xf32>
    %9 = arith.truncf %8 : vector<8x400xf32> to vector<8x400xbf16>
    %c0_6 = arith.constant 0 : index
    %c0_7 = arith.constant 0 : index
    %10 = vector.load %arg5[%c0_6, %c0_7] : memref<400x128xbf16, #tpu.memory_space<vmem>>, vector<400x128xbf16>
    %cst_8 = arith.constant dense<0.000000e+00> : vector<8x128xf32>
    %11 = tpu.matmul %9, %10, %cst_8 {dimension_numbers = #tpu.dot_dimension_numbers<[1], [0], [0], [1], [0, 0, 1, 1], [], []>} : vector<8x400xbf16>, vector<400x128xbf16>, vector<8x128xf32> -> vector<8x128xf32>
    %c0_9 = arith.constant 0 : index
    %c0_10 = arith.constant 0 : index
    %12 = vector.load %arg6[%c0_9, %c0_10] : memref<1x128xf32, #tpu.memory_space<vmem>>, vector<1x128xf32>
    %13 = vector.broadcast %12 : vector<1x128xf32> to vector<8x128xf32>
    %14 = arith.addf %11, %13 : vector<8x128xf32>
    %c0_11 = arith.constant 0 : index
    %c0_12 = arith.constant 0 : index
    %15 = vector.load %arg12[%c0_11, %c0_12] : memref<8x128xf32, #tpu.memory_space<vmem>>, vector<8x128xf32>
    tpu.vector_store %arg12[%c0_11, %c0_12], %14 {strides = array<i32>} : memref<8x128xf32, #tpu.memory_space<vmem>>, vector<8x128xf32>,
    %c112_i32 = arith.constant 112 : i32
    %16 = tpu.dynamic_rotate %14 by %c112_i32 dim 1 : vector<8x128xf32>, i32 -> vector<8x128xf32>
    %17 = tpu.iota {dimensions = array<i32: 1>} : vector<8x128xi32>
    %c16_i32 = arith.constant 16 : i32
    %18 = vector.broadcast %c16_i32 : i32 to vector<8x128xi32>
    %19 = arith.cmpi slt, %17, %18 : vector<8x128xi32>
    %cst_13 = arith.constant 5.000000e-01 : f32
    %20 = vector.broadcast %cst_13 : f32 to vector<8x128xf32>
    %21 = arith.mulf %20, %16 : vector<8x128xf32>
    %22 = math.exp %21 : vector<8x128xf32>
    %cst_14 = arith.constant 0.000000e+00 : f32
    %23 = vector.broadcast %cst_14 : f32 to vector<8x128xf32>
    %24 = arith.select %19, %22, %23 : vector<8x128xi1>, vector<8x128xf32>
    %c0_15 = arith.constant 0 : index
    %c0_16 = arith.constant 0 : index
    %25 = vector.load %arg2[%c0_15, %c0_16] : memref<8x128xf32, #tpu.memory_space<vmem>>, vector<8x128xf32>
    %26 = arith.mulf %25, %24 : vector<8x128xf32>
    %27 = arith.addf %14, %26 : vector<8x128xf32>
    %28 = arith.truncf %27 : vector<8x128xf32> to vector<8x128xbf16>
    %c0_17 = arith.constant 0 : index
    %c0_18 = arith.constant 0 : index
    %29 = vector.load %arg7[%c0_17, %c0_18] : memref<128x400xbf16, #tpu.memory_space<vmem>>, vector<128x400xbf16>
    %cst_19 = arith.constant dense<0.000000e+00> : vector<8x400xf32>
    %30 = tpu.matmul %28, %29, %cst_19 {dimension_numbers = #tpu.dot_dimension_numbers<[1], [0], [0], [1], [0, 0, 1, 1], [], []>} : vector<8x128xbf16>, vector<128x400xbf16>, vector<8x400xf32> -> vector<8x400xf32>
    %c0_20 = arith.constant 0 : index
    %c0_21 = arith.constant 0 : index
    %31 = vector.load %arg8[%c0_20, %c0_21] : memref<1x400xf32, #tpu.memory_space<vmem>>, vector<1x400xf32>
    %32 = vector.broadcast %31 : vector<1x400xf32> to vector<8x400xf32>
    %33 = arith.addf %30, %32 : vector<8x400xf32>
    %cst_22 = arith.constant 0.000000e+00 : f32
    %34 = vector.broadcast %cst_22 : f32 to vector<8x400xf32>
    %35 = arith.maximumf %33, %34 : vector<8x400xf32>
    %36 = arith.truncf %35 : vector<8x400xf32> to vector<8x400xbf16>
    %c0_23 = arith.constant 0 : index
    %c0_24 = arith.constant 0 : index
    %37 = vector.load %arg9[%c0_23, %c0_24] : memref<400x896xbf16, #tpu.memory_space<vmem>>, vector<400x896xbf16>
    %cst_25 = arith.constant dense<0.000000e+00> : vector<8x896xf32>
    %38 = tpu.matmul %36, %37, %cst_25 {dimension_numbers = #tpu.dot_dimension_numbers<[1], [0], [0], [1], [0, 0, 1, 1], [], []>} : vector<8x400xbf16>, vector<400x896xbf16>, vector<8x896xf32> -> vector<8x896xf32>
    %c0_26 = arith.constant 0 : index
    %c0_27 = arith.constant 0 : index
    %39 = vector.load %arg10[%c0_26, %c0_27] : memref<1x896xf32, #tpu.memory_space<vmem>>, vector<1x896xf32>
    %40 = vector.broadcast %39 : vector<1x896xf32> to vector<8x896xf32>
    %41 = arith.addf %38, %40 : vector<8x896xf32>
    %cst_28 = arith.constant 0.000000e+00 : f32
    %42 = vector.broadcast %cst_28 : f32 to vector<8x896xf32>
    %43 = arith.subf %42, %41 : vector<8x896xf32>
    %44 = math.exp %43 : vector<8x896xf32>
    %cst_29 = arith.constant 1.000000e+00 : f32
    %45 = vector.broadcast %cst_29 : f32 to vector<8x896xf32>
    %46 = arith.addf %45, %44 : vector<8x896xf32>
    %47 = tpu.reciprocal %46 {approx = true} : vector<8x896xf32> -> vector<8x896xf32>
    %c0_30 = arith.constant 0 : index
    %c0_31 = arith.constant 0 : index
    %48 = vector.load %arg11[%c0_30, %c0_31] : memref<8x896xf32, #tpu.memory_space<vmem>>, vector<8x896xf32>
    tpu.vector_store %arg11[%c0_30, %c0_31], %47 {strides = array<i32>} : memref<8x896xf32, #tpu.memory_space<vmem>>, vector<8x896xf32>,
    return
  }
  func.func @transform_0(%arg0: i32) -> (i32, i32) {
    %c0_i32 = arith.constant 0 : i32
    %c0_i32_0 = arith.constant 0 : i32
    return %arg0, %c0_i32 : i32, i32
  }
  func.func @transform_1(%arg0: i32) -> (i32, i32) {
    %c0_i32 = arith.constant 0 : i32
    %c0_i32_0 = arith.constant 0 : i32
    return %arg0, %c0_i32 : i32, i32
  }
  func.func @transform_2(%arg0: i32) -> (i32, i32) {
    %c0_i32 = arith.constant 0 : i32
    %c0_i32_0 = arith.constant 0 : i32
    %c0_i32_1 = arith.constant 0 : i32
    return %c0_i32, %c0_i32_0 : i32, i32
  }
  func.func @transform_3(%arg0: i32) -> (i32, i32) {
    %c0_i32 = arith.constant 0 : i32
    %c0_i32_0 = arith.constant 0 : i32
    %c0_i32_1 = arith.constant 0 : i32
    return %c0_i32, %c0_i32_0 : i32, i32
  }
  func.func @transform_4(%arg0: i32) -> (i32, i32) {
    %c0_i32 = arith.constant 0 : i32
    %c0_i32_0 = arith.constant 0 : i32
    %c0_i32_1 = arith.constant 0 : i32
    return %c0_i32, %c0_i32_0 : i32, i32
  }
  func.func @transform_5(%arg0: i32) -> (i32, i32) {
    %c0_i32 = arith.constant 0 : i32
    %c0_i32_0 = arith.constant 0 : i32
    %c0_i32_1 = arith.constant 0 : i32
    return %c0_i32, %c0_i32_0 : i32, i32
  }
  func.func @transform_6(%arg0: i32) -> (i32, i32) {
    %c0_i32 = arith.constant 0 : i32
    %c0_i32_0 = arith.constant 0 : i32
    %c0_i32_1 = arith.constant 0 : i32
    return %c0_i32, %c0_i32_0 : i32, i32
  }
  func.func @transform_7(%arg0: i32) -> (i32, i32) {
    %c0_i32 = arith.constant 0 : i32
    %c0_i32_0 = arith.constant 0 : i32
    %c0_i32_1 = arith.constant 0 : i32
    return %c0_i32, %c0_i32_0 : i32, i32
  }
  func.func @transform_8(%arg0: i32) -> (i32, i32) {
    %c0_i32 = arith.constant 0 : i32
    %c0_i32_0 = arith.constant 0 : i32
    %c0_i32_1 = arith.constant 0 : i32
    return %c0_i32, %c0_i32_0 : i32, i32
  }
  func.func @transform_9(%arg0: i32) -> (i32, i32) {
    %c0_i32 = arith.constant 0 : i32
    %c0_i32_0 = arith.constant 0 : i32
    %c0_i32_1 = arith.constant 0 : i32
    return %c0_i32, %c0_i32_0 : i32, i32
  }
  func.func @transform_10(%arg0: i32) -> (i32, i32) {
    %c0_i32 = arith.constant 0 : i32
    %c0_i32_0 = arith.constant 0 : i32
    return %arg0, %c0_i32 : i32, i32
  }
  func.func @transform_11(%arg0: i32) -> (i32, i32) {
    %c0_i32 = arith.constant 0 : i32
    %c0_i32_0 = arith.constant 0 : i32
    return %arg0, %c0_i32 : i32, i32
  }
}

</mosaic_0001>

<bundles_post_ra>
// kernel: vae_forward.1
= control target key start
LH: loop header
LB: loop body
LE: loop exit
PB: predicated region body
PF: predicated region fallthrough
CT: control target
= control target key end

     0   :  { %17 = vsyncpa [#allocation3], 0  ;;  %vm1240_vm0 = vcmask 130048   ;;  %s8666_s0 = inlined_call_operand.vmem [shape: f32[8,784], index: 0, kind: input, shape index: {}]   ;;  %s8667_s1 = inlined_call_operand.vmem [shape: f32[8,128], index: 1, kind: input, shape index: {}]   ;;  %s8668_s2 = inlined_call_operand.vmem [shape: bf16[784,400], index: 2, kind: input, shape index: {}]   ;;  %s8669_s3 = inlined_call_operand.vmem [shape: f32[1,400], index: 3, kind: input, shape index: {}]   ;;  %s8670_s4 = inlined_call_operand.vmem [shape: bf16[400,128], index: 4, kind: input, shape index: {}]   ;;  %s8671_s5 = inlined_call_operand.vmem [shape: f32[1,128], index: 5, kind: input, shape index: {}]   ;;  %s8672_s6 = inlined_call_operand.vmem [shape: bf16[128,400], index: 6, kind: input, shape index: {}]   ;;  %s8673_s7 = inlined_call_operand.vmem [shape: f32[1,400], index: 7, kind: input, shape index: {}]   ;;  %s8674_s8 = inlined_call_operand.vmem [shape: bf16[400,896], index: 8, kind: input, shape index: {}]   ;;  %s8675_s9 = inlined_call_operand.vmem [shape: f32[1,896], index: 9, kind: input, shape index: {}]   ;;  %s8676_s10 = inlined_call_operand.hbm [shape: f32[8,896], index: 10, kind: output, shape index: {0}]   ;;  %s8677_s11 = inlined_call_operand.hbm [shape: f32[8,128], index: 11, kind: output, shape index: {1}]  }
   0x1   :  { %v3822_v0 = vld [vmem:[%s8668_s2 + $0xe0] sm:$0xf]  ;;  %v5462_v1 = vld [vmem:[%s8668_s2 + $0xec] sm:$0xf0] }
   0x2   :  { %v3950_v2 = vld [vmem:[%s8668_s2 + $0x1e0] sm:$0xf]  ;;  %v3823_v3 = vor.u32 %v5462_v1, %v3822_v0  ;;  %v5494_v4 = vld [vmem:[%s8668_s2 + $0x1ec] sm:$0xf0] }
   0x3   :  { %v4078_v5 = vld [vmem:[%s8668_s2 + $0x2e0] sm:$0xf]  ;;  %v5526_v6 = vld [vmem:[%s8668_s2 + $0x2ec] sm:$0xf0]  ;;  %v3951_v7 = vor.u32 %v5494_v4, %v3950_v2 }
   0x4   :  { %v4079_v8 = vor.u32 %v5526_v6, %v4078_v5  ;;  %v4206_v9 = vld [vmem:[%s8668_s2 + $0x3e0] sm:$0xf]  ;;  %v5558_v10 = vld [vmem:[%s8668_s2 + $0x3ec] sm:$0xf0]  ;;  %1244 = vmatpush.bf16.msra.mxu0 %v3823_v3 }
   0x5   :  { %v3806_v11 = vld [vmem:[%s8668_s2 + $0xc0] sm:$0xf]  ;;  %v4207_v12 = vor.u32 %v5558_v10, %v4206_v9  ;;  %v5458_v13 = vld [vmem:[%s8668_s2 + $0xcc] sm:$0xf0]  ;;  %1257 = vmatpush.bf16.msra.mxu1 %v3951_v7 }
   0x6   :  { %v3934_v14 = vld [vmem:[%s8668_s2 + $0x1c0] sm:$0xf]  ;;  %v5490_v15 = vld [vmem:[%s8668_s2 + $0x1cc] sm:$0xf0]  ;;  %1270 = vmatpush.bf16.msra.mxu2 %v4079_v8  ;;  %v3807_v16 = vor.u32 %v5458_v13, %v3806_v11 }
   0x7   :  { %v3935_v17 = vor.u32 %v5490_v15, %v3934_v14  ;;  %v4062_v18 = vld [vmem:[%s8668_s2 + $0x2c0] sm:$0xf]  ;;  %v5522_v19 = vld [vmem:[%s8668_s2 + $0x2cc] sm:$0xf0]  ;;  %1283 = vmatpush.bf16.msra.mxu3 %v4207_v12 }
   0x8   :  { %v4190_v20 = vld [vmem:[%s8668_s2 + $0x3c0] sm:$0xf]  ;;  %v4063_v21 = vor.u32 %v5522_v19, %v4062_v18  ;;  %v5554_v22 = vld [vmem:[%s8668_s2 + $0x3cc] sm:$0xf0]  ;;  %1245 = vmatpush.bf16.msra.mxu0 %v3807_v16 }
   0x9   :  { %v3790_v23 = vld [vmem:[%s8668_s2 + $0xa0] sm:$0xf]  ;;  %v5454_v24 = vld [vmem:[%s8668_s2 + $0xac] sm:$0xf0]  ;;  %v4191_v25 = vor.u32 %v5554_v22, %v4190_v20  ;;  %1258 = vmatpush.bf16.msra.mxu1 %v3935_v17 }
   0xa   :  { %v3918_v26 = vld [vmem:[%s8668_s2 + $0x1a0] sm:$0xf]  ;;  %v5486_v27 = vld [vmem:[%s8668_s2 + $0x1ac] sm:$0xf0]  ;;  %v3791_v29 = vor.u32 %v5454_v24, %v3790_v23  ;;  %1271 = vmatpush.bf16.msra.mxu2 %v4063_v21 }
   0xb   :  { %v4046_v28 = vld [vmem:[%s8668_s2 + $0x2a0] sm:$0xf]  ;;  %v5518_v30 = vld [vmem:[%s8668_s2 + $0x2ac] sm:$0xf0]  ;;  %v3919_v33 = vor.u32 %v5486_v27, %v3918_v26  ;;  %1284 = vmatpush.bf16.msra.mxu3 %v4191_v25 }
   0xc   :  { %v4174_v31 = vld [vmem:[%s8668_s2 + $0x3a0] sm:$0xf]  ;;  %v5550_v32 = vld [vmem:[%s8668_s2 + $0x3ac] sm:$0xf0]  ;;  %v4047_v34 = vor.u32 %v5518_v30, %v4046_v28  ;;  %1246 = vmatpush.bf16.msra.mxu0 %v3791_v29 }
   0xd   :  { %v3774_v35 = vld [vmem:[%s8668_s2 + $0x80] sm:$0xf]  ;;  %v5450_v36 = vld [vmem:[%s8668_s2 + $0x8c] sm:$0xf0]  ;;  %v4175_v38 = vor.u32 %v5550_v32, %v4174_v31  ;;  %1259 = vmatpush.bf16.msra.mxu1 %v3919_v33  ;;  %v5460_v33 = vld [vmem:[%s8668_s2 + $0xe4] sm:$0xf] }
   0xe   :  { %v3902_v37 = vld [vmem:[%s8668_s2 + $0x180] sm:$0xf]  ;;  %v5482_v39 = vld [vmem:[%s8668_s2 + $0x18c] sm:$0xf0]  ;;  %v3775_v44 = vor.u32 %v5450_v36, %v3774_v35  ;;  %1272 = vmatpush.bf16.msra.mxu2 %v4047_v34  ;;  %v3824_v34 = vld [vmem:[%s8668_s2 + $0xf0] sm:$0xf0] }
   0xf   :  { %v4030_v40 = vld [vmem:[%s8668_s2 + $0x280] sm:$0xf]  ;;  %v5514_v41 = vld [vmem:[%s8668_s2 + $0x28c] sm:$0xf0]  ;;  %v3903_v45 = vor.u32 %v5482_v39, %v3902_v37  ;;  %1285 = vmatpush.bf16.msra.mxu3 %v4175_v38 }
  0x10   :  { %v4158_v42 = vld [vmem:[%s8668_s2 + $0x380] sm:$0xf]  ;;  %v5546_v43 = vld [vmem:[%s8668_s2 + $0x38c] sm:$0xf0]  ;;  %v4031_v46 = vor.u32 %v5514_v41, %v4030_v40  ;;  %1247 = vmatpush.bf16.msra.mxu0 %v3775_v44  ;;  %v3952_v44 = vld [vmem:[%s8668_s2 + $0x1f0] sm:$0xf0] }
  0x11   :  { %v3758_v47 = vld [vmem:[%s8668_s2 + $0x60] sm:$0xf]  ;;  %v5446_v48 = vld [vmem:[%s8668_s2 + $0x6c] sm:$0xf0]  ;;  %v4159_v50 = vor.u32 %v5546_v43, %v4158_v42  ;;  %1260 = vmatpush.bf16.msra.mxu1 %v3903_v45  ;;  %v5492_v43 = vld [vmem:[%s8668_s2 + $0x1e4] sm:$0xf] }
  0x12   :  { %v3886_v49 = vld [vmem:[%s8668_s2 + $0x160] sm:$0xf]  ;;  %v5478_v51 = vld [vmem:[%s8668_s2 + $0x16c] sm:$0xf0]  ;;  %v3759_v56 = vor.u32 %v5446_v48, %v3758_v47  ;;  %1273 = vmatpush.bf16.msra.mxu2 %v4031_v46  ;;  %v43_v45 = vld [vmem:[%s8666_s0 + $0x18] sm:$0xff]  ;;  %v3827_v47 = vor.u32 %v5460_v33, %v3824_v34 }
  0x13   :  { %v4014_v52 = vld [vmem:[%s8668_s2 + $0x260] sm:$0xf]  ;;  %v5510_v53 = vld [vmem:[%s8668_s2 + $0x26c] sm:$0xf0]  ;;  %v3887_v57 = vor.u32 %v5478_v51, %v3886_v49  ;;  %1286 = vmatpush.bf16.msra.mxu3 %v4159_v50 }
  0x14   :  { %v4142_v54 = vld [vmem:[%s8668_s2 + $0x360] sm:$0xf]  ;;  %v5542_v55 = vld [vmem:[%s8668_s2 + $0x36c] sm:$0xf0]  ;;  %v4015_v58 = vor.u32 %v5510_v53, %v4014_v52  ;;  %1248 = vmatpush.bf16.msra.mxu0 %v3759_v56  ;;  %v5456_v53 = vld [vmem:[%s8668_s2 + $0xc4] sm:$0xf] }
  0x15   :  { %v3742_v59 = vld [vmem:[%s8668_s2 + $0x40] sm:$0xf]  ;;  %v5442_v60 = vld [vmem:[%s8668_s2 + $0x4c] sm:$0xf0]  ;;  %v4143_v62 = vor.u32 %v5542_v55, %v4142_v54  ;;  %1261 = vmatpush.bf16.msra.mxu1 %v3887_v57  ;;  %v3808_v54 = vld [vmem:[%s8668_s2 + $0xd0] sm:$0xf0]  ;;  %v6262_v57 = vpack.c.bf16 %v43_v45, %v43_v45 }
  0x16   :  { %v3870_v61 = vld [vmem:[%s8668_s2 + $0x140] sm:$0xf]  ;;  %v5474_v63 = vld [vmem:[%s8668_s2 + $0x14c] sm:$0xf0]  ;;  %v3743_v4 = vor.u32 %v5442_v60, %v3742_v59  ;;  %1274 = vmatpush.bf16.msra.mxu2 %v4015_v58  ;;  %v41_v58 = vld [vmem:[%s8666_s0 + $0x8] sm:$0xff]  ;;  %v3955_v59 = vor.u32 %v5492_v43, %v3952_v44 }
  0x17   :  { %v3998_v0 = vld [vmem:[%s8668_s2 + $0x240] sm:$0xf]  ;;  %v5506_v1 = vld [vmem:[%s8668_s2 + $0x24c] sm:$0xf0]  ;;  %v3871_v5 = vor.u32 %v5474_v63, %v3870_v61  ;;  %1287 = vmatpush.bf16.msra.mxu3 %v4143_v62  ;;  %v5488_v61 = vld [vmem:[%s8668_s2 + $0x1c4] sm:$0xf] }
  0x18   :  { %v4126_v2 = vld [vmem:[%s8668_s2 + $0x340] sm:$0xf]  ;;  %v5538_v3 = vld [vmem:[%s8668_s2 + $0x34c] sm:$0xf0]  ;;  %v3999_v6 = vor.u32 %v5506_v1, %v3998_v0  ;;  %1249 = vmatpush.bf16.msra.mxu0 %v3743_v4  ;;  %v3936_v62 = vld [vmem:[%s8668_s2 + $0x1d0] sm:$0xf0]  ;;  %v3811_v0 = vor.u32 %v5456_v53, %v3808_v54 }
  0x19   :  { %v3726_v7 = vld [vmem:[%s8668_s2 + $0x20] sm:$0xf]  ;;  %v5438_v8 = vld [vmem:[%s8668_s2 + $0x2c] sm:$0xf0]  ;;  %v4127_v10 = vor.u32 %v5538_v3, %v4126_v2  ;;  %1262 = vmatpush.bf16.msra.mxu1 %v3871_v5  ;;  %v5452_v5 = vld [vmem:[%s8668_s2 + $0xa4] sm:$0xf] }
  0x1a   :  { %v3854_v9 = vld [vmem:[%s8668_s2 + $0x120] sm:$0xf]  ;;  %v5470_v11 = vld [vmem:[%s8668_s2 + $0x12c] sm:$0xf0]  ;;  %v3727_v16 = vor.u32 %v5438_v8, %v3726_v7  ;;  %1275 = vmatpush.bf16.msra.mxu2 %v3999_v6  ;;  %v3792_v6 = vld [vmem:[%s8668_s2 + $0xb0] sm:$0xf0]  ;;  %v6293_v7 = vpack.c.bf16 %v41_v58, %v41_v58  ;;  %v3939_v8 = vor.u32 %v5488_v61, %v3936_v62 }
  0x1b   :  { %v3982_v12 = vld [vmem:[%s8668_s2 + $0x220] sm:$0xf]  ;;  %v5502_v13 = vld [vmem:[%s8668_s2 + $0x22c] sm:$0xf0]  ;;  %v3855_v20 = vor.u32 %v5470_v11, %v3854_v9  ;;  %1288 = vmatpush.bf16.msra.mxu3 %v4127_v10  ;;  %v5484_v10 = vld [vmem:[%s8668_s2 + $0x1a4] sm:$0xf] }
  0x1c   :  { %v4110_v14 = vld [vmem:[%s8668_s2 + $0x320] sm:$0xf]  ;;  %v5534_v15 = vld [vmem:[%s8668_s2 + $0x32c] sm:$0xf0]  ;;  %v3983_v21 = vor.u32 %v5502_v13, %v3982_v12  ;;  %1250 = vmatpush.bf16.msra.mxu0 %v3727_v16  ;;  %v3920_v11 = vld [vmem:[%s8668_s2 + $0x1b0] sm:$0xf0]  ;;  %v3795_v13 = vor.u32 %v5452_v5, %v3792_v6 }
  0x1d   :  { %v3710_v17 = vld [vmem:[%s8668_s2] sm:$0xf]  ;;  %v5434_v18 = vld [vmem:[%s8668_s2 + $0xc] sm:$0xf0]  ;;  %v4111_v25 = vor.u32 %v5534_v15, %v4110_v14  ;;  %1263 = vmatpush.bf16.msra.mxu1 %v3855_v20  ;;  %v3923_v20 = vor.u32 %v5484_v10, %v3920_v11  ;;  %v5440_v43 = vld [vmem:[%s8668_s2 + $0x44] sm:$0xf] }
  0x1e   :  { %v3838_v19 = vld [vmem:[%s8668_s2 + $0x100] sm:$0xf]  ;;  %v5466_v22 = vld [vmem:[%s8668_s2 + $0x10c] sm:$0xf0]  ;;  %v3711_v32 = vor.u32 %v5434_v18, %v3710_v17  ;;  %1276 = vmatpush.bf16.msra.mxu2 %v3983_v21  ;;  %v5448_v18 = vld [vmem:[%s8668_s2 + $0x84] sm:$0xf] }
  0x1f   :  { %v3966_v23 = vld [vmem:[%s8668_s2 + $0x200] sm:$0xf]  ;;  %v5498_v24 = vld [vmem:[%s8668_s2 + $0x20c] sm:$0xf0]  ;;  %v3839_v36 = vor.u32 %v5466_v22, %v3838_v19  ;;  %1289 = vmatpush.bf16.msra.mxu3 %v4111_v25  ;;  %v3776_v19 = vld [vmem:[%s8668_s2 + $0x90] sm:$0xf0] }
  0x20   :  { %v4094_v26 = vld [vmem:[%s8668_s2 + $0x300] sm:$0xf]  ;;  %v5530_v27 = vld [vmem:[%s8668_s2 + $0x30c] sm:$0xf0]  ;;  %v3967_v37 = vor.u32 %v5498_v24, %v3966_v23  ;;  %1251 = vmatpush.bf16.msra.mxu0 %v3711_v32  ;;  %v5480_v22 = vld [vmem:[%s8668_s2 + $0x184] sm:$0xf]  ;;  %v3779_v25 = vor.u32 %v5448_v18, %v3776_v19 }
  0x21   :  { %v4334_v28 = vld [vmem:[%s8668_s2 + $0x4e0] sm:$0xf]  ;;  %v5590_v29 = vld [vmem:[%s8668_s2 + $0x4ec] sm:$0xf0]  ;;  %v4095_v41 = vor.u32 %v5530_v27, %v4094_v26  ;;  %1264 = vmatpush.bf16.msra.mxu1 %v3839_v36  ;;  %v3904_v23 = vld [vmem:[%s8668_s2 + $0x190] sm:$0xf0] }
  0x22   :  { %v4462_v30 = vld [vmem:[%s8668_s2 + $0x5e0] sm:$0xf]  ;;  %v5622_v31 = vld [vmem:[%s8668_s2 + $0x5ec] sm:$0xf0]  ;;  %v4335_v42 = vor.u32 %v5590_v29, %v4334_v28  ;;  %1277 = vmatpush.bf16.msra.mxu2 %v3967_v37  ;;  %v3907_v33 = vor.u32 %v5480_v22, %v3904_v23  ;;  %v3888_v36 = vld [vmem:[%s8668_s2 + $0x170] sm:$0xf0] }
  0x23   :  { %v42_v35 = vld [vmem:[%s8666_s0 + $0x10] sm:$0xff]  ;;  %v4478_v38 = vld [vmem:[%s8668_s2 + $0x600] sm:$0xf]  ;;  %v4463_v46 = vor.u32 %v5622_v31, %v4462_v30  ;;  %1290 = vmatpush.bf16.msra.mxu3 %v4095_v41  ;;  %v5444_v30 = vld [vmem:[%s8668_s2 + $0x64] sm:$0xf] }
  0x24   :  { %v5626_v39 = vld [vmem:[%s8668_s2 + $0x60c] sm:$0xf0]  ;;  %v40_v40 = vld [vmem:[%s8666_s0] sm:$0xff]  ;;  %v6249_v51 = vpack.c.bf16 %v42_v35, %v42_v35  ;;  %1296 = vmatpush.bf16.msrb.mxu0 %v4335_v42  ;;  %1265 = vmatmul.bf16.vlgmr.msra.gmra.mxu1 %v6293_v7  ;;  %v3760_v31 = vld [vmem:[%s8668_s2 + $0x70] sm:$0xf0] }
  0x25   :  { %v4318_v48 = vld [vmem:[%s8668_s2 + $0x4c0] sm:$0xf]  ;;  %v5586_v49 = vld [vmem:[%s8668_s2 + $0x4cc] sm:$0xf0]  ;;  %v6260_v55 = vpack.c.bf16 %v40_v40, %v40_v40  ;;  %v4479_v56 = vor.u32 %v5626_v39, %v4478_v38  ;;  %1309 = vmatpush.bf16.msrb.mxu1 %v4463_v46  ;;  %v5476_v35 = vld [vmem:[%s8668_s2 + $0x164] sm:$0xf]  ;;  %v3763_v38 = vor.u32 %v5444_v30, %v3760_v31 }
  0x26   :  { %v4446_v50 = vld [vmem:[%s8668_s2 + $0x5c0] sm:$0xf]  ;;  %v5618_v52 = vld [vmem:[%s8668_s2 + $0x5cc] sm:$0xf0]  ;;  %v4319_v60 = vor.u32 %v5586_v49, %v4318_v48  ;;  %1278 = vmatmul.bf16.vlgmr.msra.gmra.mxu2 %v6249_v51  ;;  %1291 = vmatmul.bf16.vlgmr.msra.gmra.mxu3 %v6262_v57  ;;  %v3744_v44 = vld [vmem:[%s8668_s2 + $0x50] sm:$0xf0]  ;;  %v3891_v46 = vor.u32 %v5476_v35, %v3888_v36 }
  0x27   :  { %1335 = vmatpush.bf16.msrb.mxu3 %v3827_v47  ;;  %v4447_v63 = vor.u32 %v5618_v52, %v4446_v50  ;;  %v4302_v1 = vld [vmem:[%s8668_s2 + $0x4a0] sm:$0xf]  ;;  %v5582_v2 = vld [vmem:[%s8668_s2 + $0x4ac] sm:$0xf0]  ;;  %1252 = vmatmul.bf16.vlgmr.msra.gmra.mxu0 %v6260_v55  ;;  %v5472_v48 = vld [vmem:[%s8668_s2 + $0x144] sm:$0xf]  ;;  %v3747_v52 = vor.u32 %v5440_v43, %v3744_v44 }
  0x28   :  { %v4430_v3 = vld [vmem:[%s8668_s2 + $0x5a0] sm:$0xf]  ;;  %v5614_v4 = vld [vmem:[%s8668_s2 + $0x5ac] sm:$0xf0]  ;;  %1329 = vmatpush.bf16.msrb.mxu2 %v4479_v56  ;;  %1297 = vmatpush.bf16.msrb.mxu0 %v4319_v60  ;;  %v4303_v9 = vor.u32 %v5582_v2, %v4302_v1  ;;  %v3872_v49 = vld [vmem:[%s8668_s2 + $0x150] sm:$0xf0] }
  0x29   :  { %1310 = vmatpush.bf16.msrb.mxu1 %v4447_v63  ;;  %v4431_v12 = vor.u32 %v5614_v4, %v4430_v3  ;;  %v4286_v14 = vld [vmem:[%s8668_s2 + $0x480] sm:$0xf]  ;;  %v5578_v15 = vld [vmem:[%s8668_s2 + $0x48c] sm:$0xf0]  ;;  %v3728_v60 = vld [vmem:[%s8668_s2 + $0x30] sm:$0xf0]  ;;  %v3875_v61 = vor.u32 %v5472_v48, %v3872_v49 }
  0x2a   :  { %v4414_v16 = vld [vmem:[%s8668_s2 + $0x580] sm:$0xf]  ;;  %v5610_v17 = vld [vmem:[%s8668_s2 + $0x58c] sm:$0xf0]  ;;  %v4287_v21 = vor.u32 %v5578_v15, %v4286_v14  ;;  %v5468_v63 = vld [vmem:[%s8668_s2 + $0x124] sm:$0xf] }
  0x2b   :  { %1336 = vmatpush.bf16.msrb.mxu3 %v3811_v0  ;;  %v4415_v24 = vor.u32 %v5610_v17, %v4414_v16  ;;  %v4270_v26 = vld [vmem:[%s8668_s2 + $0x460] sm:$0xf]  ;;  %v5574_v27 = vld [vmem:[%s8668_s2 + $0x46c] sm:$0xf0]  ;;  %v3856_v0 = vld [vmem:[%s8668_s2 + $0x130] sm:$0xf0] }
  0x2c   :  { %1348 = vmatpush.bf16.msra.mxu2 %v3955_v59  ;;  %1298 = vmatpush.bf16.msrb.mxu0 %v4303_v9  ;;  %v4398_v28 = vld [vmem:[%s8668_s2 + $0x560] sm:$0xf]  ;;  %v5606_v29 = vld [vmem:[%s8668_s2 + $0x56c] sm:$0xf0]  ;;  %v4271_v34 = vor.u32 %v5574_v27, %v4270_v26  ;;  %v5436_v59 = vld [vmem:[%s8668_s2 + $0x24] sm:$0xf]  ;;  %v3859_v14 = vor.u32 %v5468_v63, %v3856_v0 }
  0x2d   :  { %1311 = vmatpush.bf16.msrb.mxu1 %v4431_v12  ;;  %v46_v32 = vld [vmem:[%s8666_s0 + $0x30] sm:$0xff]  ;;  %v4399_v37 = vor.u32 %v5606_v29, %v4398_v28  ;;  %v4254_v39 = vld [vmem:[%s8668_s2 + $0x440] sm:$0xf]  ;;  %v3731_v3 = vor.u32 %v5436_v59, %v3728_v60  ;;  %v5524_v10 = vld [vmem:[%s8668_s2 + $0x2e4] sm:$0xf] }
  0x2e   :  { %v5570_v40 = vld [vmem:[%s8668_s2 + $0x44c] sm:$0xf0]  ;;  %v4382_v41 = vld [vmem:[%s8668_s2 + $0x540] sm:$0xf]  ;;  %v6372_v45 = vpack.c.bf16 %v46_v32, %v46_v32  ;;  %v3712_v9 = vld [vmem:[%s8668_s2 + $0x10] sm:$0xf0] }
  0x2f   :  { %1337 = vmatpush.bf16.msrb.mxu3 %v3795_v13  ;;  %v5602_v42 = vld [vmem:[%s8668_s2 + $0x54c] sm:$0xf0]  ;;  %v4255_v47 = vor.u32 %v5570_v40, %v4254_v39  ;;  %v4238_v53 = vld [vmem:[%s8668_s2 + $0x420] sm:$0xf]  ;;  %v4080_v11 = vld [vmem:[%s8668_s2 + $0x2f0] sm:$0xf0] }
  0x30   :  { %1349 = vmatpush.bf16.msra.mxu2 %v3939_v8  ;;  %1299 = vmatpush.bf16.msrb.mxu0 %v4287_v21  ;;  %v4383_v50 = vor.u32 %v5602_v42, %v4382_v41  ;;  %v5566_v54 = vld [vmem:[%s8668_s2 + $0x42c] sm:$0xf0]  ;;  %v4366_v56 = vld [vmem:[%s8668_s2 + $0x520] sm:$0xf]  ;;  %v5432_v8 = vld [vmem:[%s8668_s2 + $0x4] sm:$0xf] }
  0x31   :  { %1312 = vmatpush.bf16.msrb.mxu1 %v4415_v24  ;;  %v5598_v58 = vld [vmem:[%s8668_s2 + $0x52c] sm:$0xf0]  ;;  %v4239_v62 = vor.u32 %v5566_v54, %v4238_v53  ;;  %v4222_v1 = vld [vmem:[%s8668_s2 + $0x400] sm:$0xf]  ;;  %v5556_v12 = vld [vmem:[%s8668_s2 + $0x3e4] sm:$0xf]  ;;  %v4083_v24 = vor.u32 %v5524_v10, %v4080_v11 }
  0x32   :  { %v4367_v2 = vor.u32 %v5598_v58, %v4366_v56  ;;  %v5562_v4 = vld [vmem:[%s8668_s2 + $0x40c] sm:$0xf0]  ;;  %v4350_v5 = vld [vmem:[%s8668_s2 + $0x500] sm:$0xf]  ;;  %v4208_v13 = vld [vmem:[%s8668_s2 + $0x3f0] sm:$0xf0] }
  0x33   :  { %1338 = vmatpush.bf16.msrb.mxu3 %v3779_v25  ;;  %v5594_v6 = vld [vmem:[%s8668_s2 + $0x50c] sm:$0xf0]  ;;  %v4223_v15 = vor.u32 %v5562_v4, %v4222_v1  ;;  %v5588_v16 = vld [vmem:[%s8668_s2 + $0x4e4] sm:$0xf]  ;;  %v4336_v17 = vld [vmem:[%s8668_s2 + $0x4f0] sm:$0xf0]  ;;  %v4211_v25 = vor.u32 %v5556_v12, %v4208_v13 }
  0x34   :  { %1350 = vmatpush.bf16.msra.mxu2 %v3923_v20  ;;  %1300 = vmatpush.bf16.msrb.mxu0 %v4271_v34  ;;  %v44_v18 = vld [vmem:[%s8666_s0 + $0x20] sm:$0xff]  ;;  %v4351_v19 = vor.u32 %v5594_v6, %v4350_v5  ;;  %v3715_v20 = vor.u32 %v5432_v8, %v3712_v9  ;;  %v3840_v22 = vld [vmem:[%s8668_s2 + $0x110] sm:$0xf0]  ;;  %v45_v23 = vld [vmem:[%s8666_s0 + $0x28] sm:$0xff]  ;;  %v4339_v29 = vor.u32 %v5588_v16, %v4336_v17 }
  0x35   :  { %1313 = vmatpush.bf16.msrb.mxu1 %v4399_v37  ;;  %v5464_v21 = vld [vmem:[%s8668_s2 + $0x104] sm:$0xf]  ;;  %v4464_v27 = vld [vmem:[%s8668_s2 + $0x5f0] sm:$0xf0]  ;;  %v6463_v30 = vpack.c.bf16 %v44_v18, %v44_v18  ;;  %v6474_v35 = vpack.c.bf16 %v45_v23, %v45_v23 }
  0x36   :  { %4492 = vmatmul.msk.bf16.vlgmr.msrb.gmra.mxu2 %vm1240_vm0, %v6372_v45  ;;  %v5620_v26 = vld [vmem:[%s8668_s2 + $0x5e4] sm:$0xf]  ;;  %v4064_v31 = vld [vmem:[%s8668_s2 + $0x2d0] sm:$0xf0]  ;;  %v3843_v34 = vor.u32 %v5464_v21, %v3840_v22 }
  0x37   :  { %1339 = vmatpush.bf16.msrb.mxu3 %v3763_v38  ;;  %v5520_v28 = vld [vmem:[%s8668_s2 + $0x2c4] sm:$0xf]  ;;  %v4320_v37 = vld [vmem:[%s8668_s2 + $0x4d0] sm:$0xf0]  ;;  %v4467_v38 = vor.u32 %v5620_v26, %v4464_v27 }
  0x38   :  { %1351 = vmatpush.bf16.msra.mxu2 %v3907_v33  ;;  %1301 = vmatpush.bf16.msrb.mxu0 %v4255_v47  ;;  %v5552_v32 = vld [vmem:[%s8668_s2 + $0x3c4] sm:$0xf]  ;;  %v4192_v33 = vld [vmem:[%s8668_s2 + $0x3d0] sm:$0xf0]  ;;  %v4067_v39 = vor.u32 %v5520_v28, %v4064_v31 }
  0x39   :  { %1314 = vmatpush.bf16.msrb.mxu1 %v4383_v50  ;;  %v5584_v36 = vld [vmem:[%s8668_s2 + $0x4c4] sm:$0xf]  ;;  %v4195_v40 = vor.u32 %v5552_v32, %v4192_v33  ;;  %v4448_v42 = vld [vmem:[%s8668_s2 + $0x5d0] sm:$0xf0] }
  0x3a   :  { %v5616_v41 = vld [vmem:[%s8668_s2 + $0x5c4] sm:$0xf]  ;;  %v4323_v44 = vor.u32 %v5584_v36, %v4320_v37  ;;  %v4176_v48 = vld [vmem:[%s8668_s2 + $0x3b0] sm:$0xf0] }
  0x3b   :  { %1340 = vmatpush.bf16.msrb.mxu3 %v3747_v52  ;;  %v5516_v43 = vld [vmem:[%s8668_s2 + $0x2a4] sm:$0xf]  ;;  %v4304_v50 = vld [vmem:[%s8668_s2 + $0x4b0] sm:$0xf0]  ;;  %v4451_v52 = vor.u32 %v5616_v41, %v4448_v42 }
  0x3c   :  { %1352 = vmatpush.bf16.msra.mxu2 %v3891_v46  ;;  %1302 = vmatpush.bf16.msrb.mxu0 %v4239_v62  ;;  %v4048_v46 = vld [vmem:[%s8668_s2 + $0x2b0] sm:$0xf0]  ;;  %v5548_v47 = vld [vmem:[%s8668_s2 + $0x3a4] sm:$0xf] }
  0x3d   :  { %1315 = vmatpush.bf16.msrb.mxu1 %v4367_v2  ;;  %v5580_v49 = vld [vmem:[%s8668_s2 + $0x4a4] sm:$0xf]  ;;  %v4051_v53 = vor.u32 %v5516_v43, %v4048_v46  ;;  %v4179_v54 = vor.u32 %v5548_v47, %v4176_v48  ;;  %v4432_v58 = vld [vmem:[%s8668_s2 + $0x5b0] sm:$0xf0] }
  0x3e   :  { %v5612_v56 = vld [vmem:[%s8668_s2 + $0x5a4] sm:$0xf]  ;;  %v4307_v60 = vor.u32 %v5580_v49, %v4304_v50  ;;  %v4160_v63 = vld [vmem:[%s8668_s2 + $0x390] sm:$0xf0] }
  0x3f   :  { %1341 = vmatpush.bf16.msrb.mxu3 %v3731_v3  ;;  %v5512_v59 = vld [vmem:[%s8668_s2 + $0x284] sm:$0xf]  ;;  %v4288_v1 = vld [vmem:[%s8668_s2 + $0x490] sm:$0xf0]  ;;  %v4435_v2 = vor.u32 %v5612_v56, %v4432_v58  ;;  %v3830_v56 = vld [vmem:[%s8668_s2 + $0xe8] sm:$0xf] }
  0x40   :  { %1353 = vmatpush.bf16.msra.mxu2 %v3875_v61  ;;  %1303 = vmatpush.bf16.msrb.mxu0 %v4223_v15  ;;  %v4032_v61 = vld [vmem:[%s8668_s2 + $0x290] sm:$0xf0]  ;;  %v5544_v62 = vld [vmem:[%s8668_s2 + $0x384] sm:$0xf]  ;;  %v5463_v58 = vld [vmem:[%s8668_s2 + $0xf4] sm:$0xf0] }
  0x41   :  { %1316 = vmatpush.bf16.msrb.mxu1 %v4351_v19  ;;  %v5576_v0 = vld [vmem:[%s8668_s2 + $0x484] sm:$0xf]  ;;  %v4035_v3 = vor.u32 %v5512_v59, %v4032_v61  ;;  %v4163_v4 = vor.u32 %v5544_v62, %v4160_v63  ;;  %v4416_v6 = vld [vmem:[%s8668_s2 + $0x590] sm:$0xf0]  ;;  %v3958_v59 = vld [vmem:[%s8668_s2 + $0x1e8] sm:$0xf] }
  0x42   :  { %v5608_v5 = vld [vmem:[%s8668_s2 + $0x584] sm:$0xf]  ;;  %v4291_v9 = vor.u32 %v5576_v0, %v4288_v1  ;;  %v4016_v10 = vld [vmem:[%s8668_s2 + $0x270] sm:$0xf0]  ;;  %v5495_v61 = vld [vmem:[%s8668_s2 + $0x1f4] sm:$0xf0] }
  0x43   :  { %1342 = vmatpush.bf16.msrb.mxu3 %v3715_v20  ;;  %1304 = vmatmul.bf16.vlgmr.msrb.gmra.mxu0 %v6463_v30  ;;  %v5508_v8 = vld [vmem:[%s8668_s2 + $0x264] sm:$0xf]  ;;  %v4144_v12 = vld [vmem:[%s8668_s2 + $0x370] sm:$0xf0]  ;;  %v4419_v15 = vor.u32 %v5608_v5, %v4416_v6  ;;  %v3831_v6 = vor.u32 %v5463_v58, %v3830_v56 }
  0x44   :  { %1354 = vmatpush.bf16.msra.mxu2 %v3859_v14  ;;  %1361 = vmatpush.bf16.msra.mxu0 %v4083_v24  ;;  %v5540_v11 = vld [vmem:[%s8668_s2 + $0x364] sm:$0xf]  ;;  %v4272_v14 = vld [vmem:[%s8668_s2 + $0x470] sm:$0xf0]  ;;  %v4019_v16 = vor.u32 %v5508_v8, %v4016_v10  ;;  %v5527_v8 = vld [vmem:[%s8668_s2 + $0x2f4] sm:$0xf0] }
  0x45   :  { %1374 = vmatpush.bf16.msra.mxu1 %v4211_v25  ;;  %v5572_v13 = vld [vmem:[%s8668_s2 + $0x464] sm:$0xf]  ;;  %v4147_v17 = vor.u32 %v5540_v11, %v4144_v12  ;;  %v4400_v19 = vld [vmem:[%s8668_s2 + $0x570] sm:$0xf0]  ;;  %v5559_v10 = vld [vmem:[%s8668_s2 + $0x3f4] sm:$0xf0]  ;;  %v3959_v11 = vor.u32 %v5495_v61, %v3958_v59 }
  0x46   :  { %1317 = vmatmul.bf16.vlgmr.msrb.gmra.mxu1 %v6474_v35  ;;  %1343 = vmatmul.bf16.vlgmr.msrb.gmra.mxu3 %v6260_v55  ;;  %v5604_v18 = vld [vmem:[%s8668_s2 + $0x564] sm:$0xf]  ;;  %v4275_v21 = vor.u32 %v5572_v13, %v4272_v14  ;;  %v4000_v22 = vld [vmem:[%s8668_s2 + $0x250] sm:$0xf0]  ;;  %v3814_v13 = vld [vmem:[%s8668_s2 + $0xc8] sm:$0xf] }
  0x47   :  { %1387 = vmatpush.bf16.msra.mxu3 %v4339_v29  ;;  %v5504_v20 = vld [vmem:[%s8668_s2 + $0x244] sm:$0xf]  ;;  %v4128_v24 = vld [vmem:[%s8668_s2 + $0x350] sm:$0xf0]  ;;  %v4403_v27 = vor.u32 %v5604_v18, %v4400_v19  ;;  %v5459_v14 = vld [vmem:[%s8668_s2 + $0xd4] sm:$0xf0] }
  0x48   :  { %1355 = vmatpush.bf16.msra.mxu2 %v3843_v34  ;;  %1362 = vmatpush.bf16.msra.mxu0 %v4067_v39  ;;  %v5536_v23 = vld [vmem:[%s8668_s2 + $0x344] sm:$0xf]  ;;  %v4256_v26 = vld [vmem:[%s8668_s2 + $0x450] sm:$0xf0]  ;;  %v4003_v28 = vor.u32 %v5504_v20, %v4000_v22  ;;  %v4070_v20 = vld [vmem:[%s8668_s2 + $0x2c8] sm:$0xf] }
  0x49   :  { %1375 = vmatpush.bf16.msra.mxu1 %v4195_v40  ;;  %v5568_v25 = vld [vmem:[%s8668_s2 + $0x444] sm:$0xf]  ;;  %v4131_v29 = vor.u32 %v5536_v23, %v4128_v24  ;;  %v4384_v32 = vld [vmem:[%s8668_s2 + $0x550] sm:$0xf0]  ;;  %v5523_v22 = vld [vmem:[%s8668_s2 + $0x2d4] sm:$0xf0] }
  0x4a   :  { %v5600_v31 = vld [vmem:[%s8668_s2 + $0x544] sm:$0xf]  ;;  %v4259_v34 = vor.u32 %v5568_v25, %v4256_v26  ;;  %v3984_v36 = vld [vmem:[%s8668_s2 + $0x230] sm:$0xf0]  ;;  %v4198_v23 = vld [vmem:[%s8668_s2 + $0x3c8] sm:$0xf] }
  0x4b   :  { %1388 = vmatpush.bf16.msra.mxu3 %v4323_v44  ;;  %1356 = vmatmul.bf16.vlgmr.msra.gmra.mxu2 %v6293_v7  ;;  %v5500_v33 = vld [vmem:[%s8668_s2 + $0x224] sm:$0xf]  ;;  %v4240_v40 = vld [vmem:[%s8668_s2 + $0x430] sm:$0xf0]  ;;  %v4387_v41 = vor.u32 %v5600_v31, %v4384_v32  ;;  %v5555_v24 = vld [vmem:[%s8668_s2 + $0x3d4] sm:$0xf0] }
  0x4c   :  { %1400 = vmatpush.bf16.msrb.mxu2 %v4467_v38  ;;  %1363 = vmatpush.bf16.msra.mxu0 %v4051_v53  ;;  %v5532_v37 = vld [vmem:[%s8668_s2 + $0x324] sm:$0xf]  ;;  %v4112_v38 = vld [vmem:[%s8668_s2 + $0x330] sm:$0xf0]  ;;  %v3987_v44 = vor.u32 %v5500_v33, %v3984_v36  ;;  %v3798_v26 = vld [vmem:[%s8668_s2 + $0xa8] sm:$0xf] }
  0x4d   :  { %1376 = vmatpush.bf16.msra.mxu1 %v4179_v54  ;;  %v5564_v39 = vld [vmem:[%s8668_s2 + $0x424] sm:$0xf]  ;;  %v4368_v43 = vld [vmem:[%s8668_s2 + $0x530] sm:$0xf0]  ;;  %v4115_v46 = vor.u32 %v5532_v37, %v4112_v38 }
  0x4e   :  { %v5596_v42 = vld [vmem:[%s8668_s2 + $0x524] sm:$0xf]  ;;  %v3968_v48 = vld [vmem:[%s8668_s2 + $0x210] sm:$0xf0]  ;;  %v4243_v50 = vor.u32 %v5564_v39, %v4240_v40 }
  0x4f   :  { %1389 = vmatpush.bf16.msra.mxu3 %v4307_v60  ;;  %v5496_v47 = vld [vmem:[%s8668_s2 + $0x204] sm:$0xf]  ;;  %v4224_v54 = vld [vmem:[%s8668_s2 + $0x410] sm:$0xf0]  ;;  %v4371_v60 = vor.u32 %v5596_v42, %v4368_v43 }
  0x50   :  { %1401 = vmatpush.bf16.msrb.mxu2 %v4451_v52  ;;  %1364 = vmatpush.bf16.msra.mxu0 %v4035_v3  ;;  %v5528_v49 = vld [vmem:[%s8668_s2 + $0x304] sm:$0xf]  ;;  %v4096_v52 = vld [vmem:[%s8668_s2 + $0x310] sm:$0xf0]  ;;  %v3971_v0 = vor.u32 %v5496_v47, %v3968_v48 }
  0x51   :  { %1377 = vmatpush.bf16.msra.mxu1 %v4163_v4  ;;  %v5560_v53 = vld [vmem:[%s8668_s2 + $0x404] sm:$0xf]  ;;  %v4480_v63 = vld [vmem:[%s8668_s2 + $0x610] sm:$0xf0]  ;;  %v4099_v1 = vor.u32 %v5528_v49, %v4096_v52  ;;  %v4086_v4 = vld [vmem:[%s8668_s2 + $0x2e8] sm:$0xf] }
  0x52   :  { %v5624_v62 = vld [vmem:[%s8668_s2 + $0x604] sm:$0xf]  ;;  %v4352_v3 = vld [vmem:[%s8668_s2 + $0x510] sm:$0xf0]  ;;  %v4227_v5 = vor.u32 %v5560_v53, %v4224_v54  ;;  %v4087_v18 = vor.u32 %v5527_v8, %v4086_v4 }
  0x53   :  { %1390 = vmatpush.bf16.msra.mxu3 %v4291_v9  ;;  %v4214_v9 = vld [vmem:[%s8668_s2 + $0x3e8] sm:$0xf]  ;;  %v4483_v12 = vor.u32 %v5624_v62, %v4480_v63 }
  0x54   :  { %1402 = vmatpush.bf16.msrb.mxu2 %v4435_v2  ;;  %1365 = vmatpush.bf16.msra.mxu0 %v4019_v16  ;;  %v5592_v2 = vld [vmem:[%s8668_s2 + $0x504] sm:$0xf]  ;;  %v3942_v16 = vld [vmem:[%s8668_s2 + $0x1c8] sm:$0xf]  ;;  %v4215_v19 = vor.u32 %v5559_v10, %v4214_v9 }
  0x55   :  { %1378 = vmatpush.bf16.msra.mxu1 %v4147_v17  ;;  %v5491_v17 = vld [vmem:[%s8668_s2 + $0x1d4] sm:$0xf0] }
  0x56   :  { %v3943_v25 = vor.u32 %v5491_v17, %v3942_v16 }
  0x57   :  { %1391 = vmatpush.bf16.msra.mxu3 %v4275_v21  ;;  %v3815_v21 = vor.u32 %v5459_v14, %v3814_v13 }
  0x58   :  { %1403 = vmatpush.bf16.msrb.mxu2 %v4419_v15  ;;  %1366 = vmatpush.bf16.msra.mxu0 %v4003_v28  ;;  %v4355_v15 = vor.u32 %v5592_v2, %v4352_v3  ;;  %v3926_v28 = vld [vmem:[%s8668_s2 + $0x1a8] sm:$0xf] }
  0x59   :  { %1379 = vmatpush.bf16.msra.mxu1 %v4131_v29  ;;  %v5487_v29 = vld [vmem:[%s8668_s2 + $0x1b4] sm:$0xf0] }
  0x5b   :  { %1392 = vmatpush.bf16.msra.mxu3 %v4259_v34 }
  0x5c   :  { %1404 = vmatpush.bf16.msrb.mxu2 %v4403_v27  ;;  %1367 = vmatpush.bf16.msra.mxu0 %v3987_v44  ;;  %v5455_v27 = vld [vmem:[%s8668_s2 + $0xb4] sm:$0xf0] }
  0x5d   :  { %1380 = vmatpush.bf16.msra.mxu1 %v4115_v46 }
  0x5f   :  { %1393 = vmatpush.bf16.msra.mxu3 %v4243_v50 }
  0x60   :  { %1405 = vmatpush.bf16.msrb.mxu2 %v4387_v41  ;;  %1368 = vmatpush.bf16.msra.mxu0 %v3971_v0 }
  0x61   :  { %1381 = vmatpush.bf16.msra.mxu1 %v4099_v1 }
  0x63   :  { %1394 = vmatpush.bf16.msra.mxu3 %v4227_v5  ;;  %1369 = vmatmul.bf16.vlgmr.msra.gmra.mxu0 %v6249_v51 }
  0x64   :  { %1406 = vmatpush.bf16.msrb.mxu2 %v4371_v60  ;;  %1420 = vmatpush.bf16.msrb.mxu0 %v4483_v12 }
  0x65   :  { %1426 = vmatpush.bf16.msrb.mxu1 %v3831_v6 }
  0x67   :  { %1439 = vmatpush.bf16.msrb.mxu3 %v3959_v11 }
  0x68   :  { %1407 = vmatpush.bf16.msrb.mxu2 %v4355_v15 }
  0x69   :  { %18 = vsyncpa [#allocation5], 0  ;;  %1452 = vmatpush.bf16.msra.mxu0 %v4087_v18  ;;  %v4071_v31 = vor.u32 %v5523_v22, %v4070_v20  ;;  %v4199_v32 = vor.u32 %v5555_v24, %v4198_v23  ;;  %v4054_v33 = vld [vmem:[%s8668_s2 + $0x2a8] sm:$0xf]  ;;  %1427 = vmatpush.bf16.msrb.mxu1 %v3815_v21  ;;  %v3799_v34 = vor.u32 %v5455_v27, %v3798_v26  ;;  %v5519_v36 = vld [vmem:[%s8668_s2 + $0x2b4] sm:$0xf0] }
  0x6a   :  { %1395 = vmatmul.bf16.vlgmr.msra.gmra.mxu3 %v6463_v30  ;;  %v4182_v37 = vld [vmem:[%s8668_s2 + $0x3a8] sm:$0xf]  ;;  %v5551_v38 = vld [vmem:[%s8668_s2 + $0x3b4] sm:$0xf0]  ;;  %v3927_v39 = vor.u32 %v5487_v29, %v3926_v28  ;;  %1382 = vmatmul.bf16.vlgmr.msra.gmra.mxu1 %v6262_v57  ;;  %v4055_v44 = vor.u32 %v5519_v36, %v4054_v33  ;;  %s5946_s16 = smov 112   ;;  %s3683_s19 = sshll.u32 %s8676_s10, 4  ;;  %s3684_s19 = int_to_ptr.hbm [resolvable:$true] %s3683_s19 }
  0x6b   :  { %1440 = vmatpush.bf16.msrb.mxu3 %v3943_v25  ;;  %1408 = vmatmul.bf16.vlgmr.msrb.gmra.mxu2 %v6474_v35  ;;  %v3782_v40 = vld [vmem:[%s8668_s2 + $0x88] sm:$0xf]  ;;  %v5451_v41 = vld [vmem:[%s8668_s2 + $0x94] sm:$0xf0]  ;;  %v4183_v46 = vor.u32 %v5551_v38, %v4182_v37 }
  0x6c   :  { %1465 = vmatpush.bf16.msra.mxu2 %v4215_v19  ;;  %v3910_v42 = vld [vmem:[%s8668_s2 + $0x188] sm:$0xf]  ;;  %v5483_v43 = vld [vmem:[%s8668_s2 + $0x194] sm:$0xf0]  ;;  %v3783_v48 = vor.u32 %v5451_v41, %v3782_v40 }
  0x6d   :  { %1453 = vmatpush.bf16.msra.mxu0 %v4071_v31  ;;  %v4038_v47 = vld [vmem:[%s8668_s2 + $0x288] sm:$0xf]  ;;  %1428 = vmatpush.bf16.msrb.mxu1 %v3799_v34  ;;  %v5515_v49 = vld [vmem:[%s8668_s2 + $0x294] sm:$0xf0]  ;;  %v3911_v53 = vor.u32 %v5483_v43, %v3910_v42 }
  0x6e   :  { %v4166_v50 = vld [vmem:[%s8668_s2 + $0x388] sm:$0xf]  ;;  %v5547_v52 = vld [vmem:[%s8668_s2 + $0x394] sm:$0xf0]  ;;  %v4039_v60 = vor.u32 %v5515_v49, %v4038_v47  ;;  %v5461_v47 = vld [vmem:[%s8668_s2 + $0xec] sm:$0xf] }
  0x6f   :  { %1441 = vmatpush.bf16.msrb.mxu3 %v3927_v39  ;;  %v3766_v54 = vld [vmem:[%s8668_s2 + $0x68] sm:$0xf]  ;;  %v5447_v56 = vld [vmem:[%s8668_s2 + $0x74] sm:$0xf0]  ;;  %v4167_v61 = vor.u32 %v5547_v52, %v4166_v50  ;;  %v3832_v50 = vld [vmem:[%s8668_s2 + $0xf8] sm:$0xf0] }
  0x70   :  { %1466 = vmatpush.bf16.msra.mxu2 %v4199_v32  ;;  %v3894_v58 = vld [vmem:[%s8668_s2 + $0x168] sm:$0xf]  ;;  %v5479_v59 = vld [vmem:[%s8668_s2 + $0x174] sm:$0xf0]  ;;  %v3767_v63 = vor.u32 %v5447_v56, %v3766_v54 }
  0x71   :  { %1454 = vmatpush.bf16.msra.mxu0 %v4055_v44  ;;  %v4022_v62 = vld [vmem:[%s8668_s2 + $0x268] sm:$0xf]  ;;  %1429 = vmatpush.bf16.msrb.mxu1 %v3783_v48  ;;  %v5511_v0 = vld [vmem:[%s8668_s2 + $0x274] sm:$0xf0]  ;;  %v3895_v3 = vor.u32 %v5479_v59, %v3894_v58 }
  0x72   :  { %v4150_v1 = vld [vmem:[%s8668_s2 + $0x368] sm:$0xf]  ;;  %v5543_v2 = vld [vmem:[%s8668_s2 + $0x374] sm:$0xf0]  ;;  %v4023_v9 = vor.u32 %v5511_v0, %v4022_v62 }
  0x73   :  { %1442 = vmatpush.bf16.msrb.mxu3 %v3911_v53  ;;  %v3750_v4 = vld [vmem:[%s8668_s2 + $0x48] sm:$0xf]  ;;  %v5443_v5 = vld [vmem:[%s8668_s2 + $0x54] sm:$0xf0]  ;;  %v4151_v10 = vor.u32 %v5543_v2, %v4150_v1  ;;  %4493 = vmatmul.msk.bf16.vlgmr.msrb.gmra.mxu0 %vm1240_vm0, %v6372_v45  ;;  %v5493_v1 = vld [vmem:[%s8668_s2 + $0x1ec] sm:$0xf] }
  0x74   :  { %1467 = vmatpush.bf16.msra.mxu2 %v4183_v46  ;;  %v3878_v6 = vld [vmem:[%s8668_s2 + $0x148] sm:$0xf]  ;;  %v5475_v8 = vld [vmem:[%s8668_s2 + $0x154] sm:$0xf0]  ;;  %v3751_v12 = vor.u32 %v5443_v5, %v3750_v4  ;;  %v3960_v2 = vld [vmem:[%s8668_s2 + $0x1f8] sm:$0xf0] }
  0x75   :  { %1455 = vmatpush.bf16.msra.mxu0 %v4039_v60  ;;  %v4006_v11 = vld [vmem:[%s8668_s2 + $0x248] sm:$0xf]  ;;  %1430 = vmatpush.bf16.msrb.mxu1 %v3767_v63  ;;  %v5507_v13 = vld [vmem:[%s8668_s2 + $0x254] sm:$0xf0]  ;;  %v3879_v16 = vor.u32 %v5475_v8, %v3878_v6  ;;  %v3835_v63 = vor.u32 %v5461_v47, %v3832_v50  ;;  %v5457_v4 = vld [vmem:[%s8668_s2 + $0xcc] sm:$0xf] }
  0x76   :  { %v4134_v14 = vld [vmem:[%s8668_s2 + $0x348] sm:$0xf]  ;;  %v5539_v15 = vld [vmem:[%s8668_s2 + $0x354] sm:$0xf0]  ;;  %v4007_v21 = vor.u32 %v5507_v13, %v4006_v11  ;;  %v3816_v5 = vld [vmem:[%s8668_s2 + $0xd8] sm:$0xf0] }
  0x77   :  { %1443 = vmatpush.bf16.msrb.mxu3 %v3895_v3  ;;  %v3734_v17 = vld [vmem:[%s8668_s2 + $0x28] sm:$0xf]  ;;  %v5439_v18 = vld [vmem:[%s8668_s2 + $0x34] sm:$0xf0]  ;;  %v4135_v22 = vor.u32 %v5539_v15, %v4134_v14  ;;  %v3819_v13 = vor.u32 %v5457_v4, %v3816_v5  ;;  %v5489_v14 = vld [vmem:[%s8668_s2 + $0x1cc] sm:$0xf] }
  0x78   :  { %1468 = vmatpush.bf16.msra.mxu2 %v4167_v61  ;;  %v3862_v19 = vld [vmem:[%s8668_s2 + $0x128] sm:$0xf]  ;;  %v5471_v20 = vld [vmem:[%s8668_s2 + $0x134] sm:$0xf0]  ;;  %v3735_v25 = vor.u32 %v5439_v18, %v3734_v17  ;;  %v3944_v15 = vld [vmem:[%s8668_s2 + $0x1d8] sm:$0xf0] }
  0x79   :  { %1456 = vmatpush.bf16.msra.mxu0 %v4023_v9  ;;  %v3990_v23 = vld [vmem:[%s8668_s2 + $0x228] sm:$0xf]  ;;  %v5503_v24 = vld [vmem:[%s8668_s2 + $0x234] sm:$0xf0]  ;;  %1431 = vmatpush.bf16.msrb.mxu1 %v3751_v12  ;;  %v3863_v29 = vor.u32 %v5471_v20, %v3862_v19  ;;  %v5453_v17 = vld [vmem:[%s8668_s2 + $0xac] sm:$0xf] }
  0x7a   :  { %v4118_v26 = vld [vmem:[%s8668_s2 + $0x328] sm:$0xf]  ;;  %v5535_v27 = vld [vmem:[%s8668_s2 + $0x334] sm:$0xf0]  ;;  %v3991_v38 = vor.u32 %v5503_v24, %v3990_v23  ;;  %v3800_v18 = vld [vmem:[%s8668_s2 + $0xb8] sm:$0xf0] }
  0x7b   :  { %v3718_v28 = vld [vmem:[%s8668_s2 + $0x8] sm:$0xf]  ;;  %1444 = vmatpush.bf16.msrb.mxu3 %v3879_v16  ;;  %v5435_v31 = vld [vmem:[%s8668_s2 + $0x14] sm:$0xf0]  ;;  %v4119_v39 = vor.u32 %v5535_v27, %v4118_v26  ;;  %v5485_v26 = vld [vmem:[%s8668_s2 + $0x1ac] sm:$0xf] }
  0x7c   :  { %1469 = vmatpush.bf16.msra.mxu2 %v4151_v10  ;;  %v3846_v32 = vld [vmem:[%s8668_s2 + $0x108] sm:$0xf]  ;;  %v5467_v33 = vld [vmem:[%s8668_s2 + $0x114] sm:$0xf0]  ;;  %v3719_v43 = vor.u32 %v5435_v31, %v3718_v28  ;;  %v3963_v10 = vor.u32 %v5493_v1, %v3960_v2  ;;  %v3928_v27 = vld [vmem:[%s8668_s2 + $0x1b8] sm:$0xf0] }
  0x7d   :  { %v4342_v34 = vld [vmem:[%s8668_s2 + $0x4e8] sm:$0xf]  ;;  %v5591_v36 = vld [vmem:[%s8668_s2 + $0x4f4] sm:$0xf0]  ;;  %1457 = vmatpush.bf16.msra.mxu0 %v4007_v21  ;;  %1432 = vmatpush.bf16.msrb.mxu1 %v3735_v25  ;;  %v3847_v48 = vor.u32 %v5467_v33, %v3846_v32  ;;  %v3803_v25 = vor.u32 %v5453_v17, %v3800_v18  ;;  %v3784_v31 = vld [vmem:[%s8668_s2 + $0x98] sm:$0xf0] }
  0x7e   :  { %v4470_v37 = vld [vmem:[%s8668_s2 + $0x5e8] sm:$0xf]  ;;  %v5623_v40 = vld [vmem:[%s8668_s2 + $0x5f4] sm:$0xf0]  ;;  %v4343_v49 = vor.u32 %v5591_v36, %v4342_v34  ;;  %v3931_v36 = vor.u32 %v5485_v26, %v3928_v27  ;;  %v5473_v4 = vld [vmem:[%s8668_s2 + $0x14c] sm:$0xf] }
  0x7f   :  { %v3974_v41 = vld [vmem:[%s8668_s2 + $0x208] sm:$0xf]  ;;  %v5499_v42 = vld [vmem:[%s8668_s2 + $0x214] sm:$0xf0]  ;;  %1445 = vmatpush.bf16.msrb.mxu3 %v3863_v29  ;;  %v4471_v54 = vor.u32 %v5623_v40, %v4470_v37  ;;  %v5449_v29 = vld [vmem:[%s8668_s2 + $0x8c] sm:$0xf] }
  0x80   :  { %1470 = vmatpush.bf16.msra.mxu2 %v4135_v22  ;;  %v4102_v44 = vld [vmem:[%s8668_s2 + $0x308] sm:$0xf]  ;;  %v5531_v46 = vld [vmem:[%s8668_s2 + $0x314] sm:$0xf0]  ;;  %v3975_v59 = vor.u32 %v5499_v42, %v3974_v41  ;;  %v3947_v22 = vor.u32 %v5489_v14, %v3944_v15  ;;  %v5481_v40 = vld [vmem:[%s8668_s2 + $0x18c] sm:$0xf] }
  0x81   :  { %v4486_v52 = vld [vmem:[%s8668_s2 + $0x608] sm:$0xf]  ;;  %v5627_v53 = vld [vmem:[%s8668_s2 + $0x614] sm:$0xf0]  ;;  %1458 = vmatpush.bf16.msra.mxu0 %v3991_v38  ;;  %v4103_v60 = vor.u32 %v5531_v46, %v4102_v44  ;;  %1433 = vmatpush.bf16.msrb.mxu1 %v3719_v43  ;;  %v3912_v41 = vld [vmem:[%s8668_s2 + $0x198] sm:$0xf0] }
  0x82   :  { %v4326_v56 = vld [vmem:[%s8668_s2 + $0x4c8] sm:$0xf]  ;;  %v5587_v58 = vld [vmem:[%s8668_s2 + $0x4d4] sm:$0xf0]  ;;  %v4487_v0 = vor.u32 %v5627_v53, %v4486_v52  ;;  %v5445_v43 = vld [vmem:[%s8668_s2 + $0x6c] sm:$0xf] }
  0x83   :  { %v4454_v61 = vld [vmem:[%s8668_s2 + $0x5c8] sm:$0xf]  ;;  %v5619_v62 = vld [vmem:[%s8668_s2 + $0x5d4] sm:$0xf0]  ;;  %1446 = vmatpush.bf16.msrb.mxu3 %v3847_v48  ;;  %v4327_v3 = vor.u32 %v5587_v58, %v4326_v56  ;;  %v3768_v44 = vld [vmem:[%s8668_s2 + $0x78] sm:$0xf0] }
  0x84   :  { %1471 = vmatpush.bf16.msra.mxu2 %v4119_v39  ;;  %v4455_v6 = vor.u32 %v5619_v62, %v4454_v61  ;;  %v4310_v8 = vld [vmem:[%s8668_s2 + $0x4a8] sm:$0xf]  ;;  %v5583_v9 = vld [vmem:[%s8668_s2 + $0x4b4] sm:$0xf0]  ;;  %1434 = vmatmul.bf16.vlgmr.msrb.gmra.mxu1 %v6260_v55  ;;  %v3787_v39 = vor.u32 %v5449_v29, %v3784_v31  ;;  %v3771_v53 = vor.u32 %v5445_v43, %v3768_v44  ;;  %v3896_v56 = vld [vmem:[%s8668_s2 + $0x178] sm:$0xf0] }
  0x85   :  { %1478 = vmatpush.bf16.msra.mxu1 %v4343_v49  ;;  %1459 = vmatpush.bf16.msra.mxu0 %v3975_v59  ;;  %v4438_v11 = vld [vmem:[%s8668_s2 + $0x5a8] sm:$0xf]  ;;  %v5615_v12 = vld [vmem:[%s8668_s2 + $0x5b4] sm:$0xf0]  ;;  %v4311_v16 = vor.u32 %v5583_v9, %v4310_v8  ;;  %v3915_v49 = vor.u32 %v5481_v40, %v3912_v41  ;;  %v5441_v59 = vld [vmem:[%s8668_s2 + $0x4c] sm:$0xf] }
  0x86   :  { %1447 = vmatmul.bf16.vlgmr.msrb.gmra.mxu3 %v6293_v7  ;;  %v4439_v19 = vor.u32 %v5615_v12, %v4438_v11  ;;  %v4294_v20 = vld [vmem:[%s8668_s2 + $0x488] sm:$0xf]  ;;  %v5579_v21 = vld [vmem:[%s8668_s2 + $0x494] sm:$0xf0]  ;;  %v3880_v5 = vld [vmem:[%s8668_s2 + $0x158] sm:$0xf0] }
  0x87   :  { %1491 = vmatpush.bf16.msra.mxu3 %v4471_v54  ;;  %v4422_v23 = vld [vmem:[%s8668_s2 + $0x588] sm:$0xf]  ;;  %v5611_v24 = vld [vmem:[%s8668_s2 + $0x594] sm:$0xf0]  ;;  %v4295_v28 = vor.u32 %v5579_v21, %v4294_v20  ;;  %v5477_v54 = vld [vmem:[%s8668_s2 + $0x16c] sm:$0xf]  ;;  %v3883_v15 = vor.u32 %v5473_v4, %v3880_v5 }
  0x88   :  { %1472 = vmatpush.bf16.msra.mxu2 %v4103_v60  ;;  %1460 = vmatmul.bf16.vlgmr.msra.gmra.mxu0 %v6249_v51  ;;  %v4423_v32 = vor.u32 %v5611_v24, %v4422_v23  ;;  %v4278_v33 = vld [vmem:[%s8668_s2 + $0x468] sm:$0xf]  ;;  %v5575_v34 = vld [vmem:[%s8668_s2 + $0x474] sm:$0xf0]  ;;  %v3752_v60 = vld [vmem:[%s8668_s2 + $0x58] sm:$0xf0] }
  0x89   :  { %1511 = vmatpush.bf16.msrb.mxu0 %v4487_v0  ;;  %1479 = vmatpush.bf16.msra.mxu1 %v4327_v3  ;;  %v4406_v37 = vld [vmem:[%s8668_s2 + $0x568] sm:$0xf]  ;;  %v5607_v38 = vld [vmem:[%s8668_s2 + $0x574] sm:$0xf0]  ;;  %v4279_v42 = vor.u32 %v5575_v34, %v4278_v33  ;;  %v3899_v0 = vor.u32 %v5477_v54, %v3896_v56  ;;  %v3755_v3 = vor.u32 %v5441_v59, %v3752_v60  ;;  %v5437_v8 = vld [vmem:[%s8668_s2 + $0x2c] sm:$0xf] }
  0x8a   :  { %v4407_v46 = vor.u32 %v5607_v38, %v4406_v37  ;;  %v4262_v47 = vld [vmem:[%s8668_s2 + $0x448] sm:$0xf]  ;;  %v5571_v48 = vld [vmem:[%s8668_s2 + $0x454] sm:$0xf0]  ;;  %v3736_v9 = vld [vmem:[%s8668_s2 + $0x38] sm:$0xf0] }
  0x8b   :  { %1492 = vmatpush.bf16.msra.mxu3 %v4455_v6  ;;  %1473 = vmatmul.bf16.vlgmr.msra.gmra.mxu2 %v6262_v57  ;;  %v4390_v50 = vld [vmem:[%s8668_s2 + $0x548] sm:$0xf]  ;;  %v5603_v52 = vld [vmem:[%s8668_s2 + $0x554] sm:$0xf0]  ;;  %v4263_v58 = vor.u32 %v5571_v48, %v4262_v47  ;;  %v4088_v17 = vld [vmem:[%s8668_s2 + $0x2f8] sm:$0xf0] }
  0x8c   :  { %1517 = vmatpush.bf16.msrb.mxu2 %v3835_v63  ;;  %v4391_v61 = vor.u32 %v5603_v52, %v4390_v50  ;;  %v4246_v62 = vld [vmem:[%s8668_s2 + $0x428] sm:$0xf]  ;;  %v5567_v63 = vld [vmem:[%s8668_s2 + $0x434] sm:$0xf0]  ;;  %v5557_v18 = vld [vmem:[%s8668_s2 + $0x3ec] sm:$0xf] }
  0x8d   :  { %1530 = vmatpush.bf16.msra.mxu0 %v3963_v10  ;;  %1480 = vmatpush.bf16.msra.mxu1 %v4311_v16  ;;  %v4374_v1 = vld [vmem:[%s8668_s2 + $0x528] sm:$0xf]  ;;  %v5599_v2 = vld [vmem:[%s8668_s2 + $0x534] sm:$0xf0]  ;;  %v4247_v6 = vor.u32 %v5567_v63, %v4246_v62  ;;  %v5525_v16 = vld [vmem:[%s8668_s2 + $0x2ec] sm:$0xf] }
  0x8e   :  { %v4230_v10 = vld [vmem:[%s8668_s2 + $0x408] sm:$0xf]  ;;  %v4375_v11 = vor.u32 %v5599_v2, %v4374_v1  ;;  %v5563_v12 = vld [vmem:[%s8668_s2 + $0x414] sm:$0xf0]  ;;  %v4216_v20 = vld [vmem:[%s8668_s2 + $0x3f8] sm:$0xf0]  ;;  %v4091_v27 = vor.u32 %v5525_v16, %v4088_v17 }
  0x8f   :  { %1493 = vmatpush.bf16.msra.mxu3 %v4439_v19  ;;  %v5595_v14 = vld [vmem:[%s8668_s2 + $0x514] sm:$0xf0]  ;;  %v3739_v19 = vor.u32 %v5437_v8, %v3736_v9  ;;  %v5469_v21 = vld [vmem:[%s8668_s2 + $0x12c] sm:$0xf]  ;;  %v4231_v23 = vor.u32 %v5563_v12, %v4230_v10  ;;  %v4344_v29 = vld [vmem:[%s8668_s2 + $0x4f8] sm:$0xf0]  ;;  %v4219_v31 = vor.u32 %v5557_v18, %v4216_v20 }
  0x90   :  { %1518 = vmatpush.bf16.msrb.mxu2 %v3819_v13  ;;  %v4358_v13 = vld [vmem:[%s8668_s2 + $0x508] sm:$0xf]  ;;  %v5433_v24 = vld [vmem:[%s8668_s2 + $0xc] sm:$0xf]  ;;  %v4072_v34 = vld [vmem:[%s8668_s2 + $0x2d8] sm:$0xf0] }
  0x91   :  { %1531 = vmatpush.bf16.msra.mxu0 %v3947_v22  ;;  %1481 = vmatpush.bf16.msra.mxu1 %v4295_v28  ;;  %v3864_v22 = vld [vmem:[%s8668_s2 + $0x138] sm:$0xf0]  ;;  %v4359_v26 = vor.u32 %v5595_v14, %v4358_v13  ;;  %v5589_v28 = vld [vmem:[%s8668_s2 + $0x4ec] sm:$0xf] }
  0x92   :  { %v5521_v33 = vld [vmem:[%s8668_s2 + $0x2cc] sm:$0xf]  ;;  %v4200_v38 = vld [vmem:[%s8668_s2 + $0x3d8] sm:$0xf0]  ;;  %v4347_v41 = vor.u32 %v5589_v28, %v4344_v29 }
  0x93   :  { %1494 = vmatpush.bf16.msra.mxu3 %v4423_v32  ;;  %v3867_v32 = vor.u32 %v5469_v21, %v3864_v22  ;;  %v3848_v40 = vld [vmem:[%s8668_s2 + $0x118] sm:$0xf0]  ;;  %v4075_v44 = vor.u32 %v5521_v33, %v4072_v34  ;;  %v5517_v50 = vld [vmem:[%s8668_s2 + $0x2ac] sm:$0xf] }
  0x94   :  { %1519 = vmatpush.bf16.msrb.mxu2 %v3803_v25  ;;  %v3720_v25 = vld [vmem:[%s8668_s2 + $0x18] sm:$0xf0]  ;;  %v5549_v54 = vld [vmem:[%s8668_s2 + $0x3ac] sm:$0xf] }
  0x95   :  { %1532 = vmatpush.bf16.msra.mxu0 %v3931_v36  ;;  %1482 = vmatpush.bf16.msra.mxu1 %v4279_v42  ;;  %v5553_v36 = vld [vmem:[%s8668_s2 + $0x3cc] sm:$0xf]  ;;  %v3723_v37 = vor.u32 %v5433_v24, %v3720_v25  ;;  %v4472_v43 = vld [vmem:[%s8668_s2 + $0x5f8] sm:$0xf0] }
  0x96   :  { %v5621_v42 = vld [vmem:[%s8668_s2 + $0x5ec] sm:$0xf]  ;;  %v4328_v47 = vld [vmem:[%s8668_s2 + $0x4d8] sm:$0xf0]  ;;  %v4203_v48 = vor.u32 %v5553_v36, %v4200_v38 }
  0x97   :  { %1495 = vmatpush.bf16.msra.mxu3 %v4407_v46  ;;  %v5585_v46 = vld [vmem:[%s8668_s2 + $0x4cc] sm:$0xf]  ;;  %v4056_v52 = vld [vmem:[%s8668_s2 + $0x2b8] sm:$0xf0] }
  0x98   :  { %1520 = vmatpush.bf16.msrb.mxu2 %v3787_v39  ;;  %4494 = vmatmul.msk.bf16.vlgmr.msrb.gmra.mxu0 %vm1240_vm0, %v6372_v45  ;;  %v5465_v39 = vld [vmem:[%s8668_s2 + $0x10c] sm:$0xf]  ;;  %v4184_v56 = vld [vmem:[%s8668_s2 + $0x3b8] sm:$0xf0] }
  0x99   :  { %1533 = vmatpush.bf16.msra.mxu0 %v3915_v49  ;;  %1483 = vmatpush.bf16.msra.mxu1 %v4263_v58  ;;  %v3851_v49 = vor.u32 %v5465_v39, %v3848_v40  ;;  %v4331_v58 = vor.u32 %v5585_v46, %v4328_v47  ;;  %v5617_v59 = vld [vmem:[%s8668_s2 + $0x5cc] sm:$0xf]  ;;  %v4456_v60 = vld [vmem:[%s8668_s2 + $0x5d8] sm:$0xf0] }
  0x9a   :  { %v5581_v62 = vld [vmem:[%s8668_s2 + $0x4ac] sm:$0xf]  ;;  %v4312_v63 = vld [vmem:[%s8668_s2 + $0x4b8] sm:$0xf0] }
  0x9b   :  { %1496 = vmatpush.bf16.msra.mxu3 %v4391_v61  ;;  %v4059_v61 = vor.u32 %v5517_v50, %v4056_v52  ;;  %v5513_v1 = vld [vmem:[%s8668_s2 + $0x28c] sm:$0xf]  ;;  %v4040_v2 = vld [vmem:[%s8668_s2 + $0x298] sm:$0xf0] }
  0x9c   :  { %1521 = vmatpush.bf16.msrb.mxu2 %v3771_v53  ;;  %v4475_v53 = vor.u32 %v5621_v42, %v4472_v43  ;;  %v5545_v4 = vld [vmem:[%s8668_s2 + $0x38c] sm:$0xf]  ;;  %v4168_v5 = vld [vmem:[%s8668_s2 + $0x398] sm:$0xf0]  ;;  %v4043_v10 = vor.u32 %v5513_v1, %v4040_v2 }
  0x9d   :  { %1534 = vmatpush.bf16.msra.mxu0 %v3899_v0  ;;  %1484 = vmatpush.bf16.msra.mxu1 %v4247_v6  ;;  %v4187_v0 = vor.u32 %v5549_v54, %v4184_v56  ;;  %v4315_v6 = vor.u32 %v5581_v62, %v4312_v63  ;;  %v5613_v8 = vld [vmem:[%s8668_s2 + $0x5ac] sm:$0xf]  ;;  %v4440_v9 = vld [vmem:[%s8668_s2 + $0x5b8] sm:$0xf0]  ;;  %v4171_v12 = vor.u32 %v5545_v4, %v4168_v5 }
  0x9e   :  { %v5509_v13 = vld [vmem:[%s8668_s2 + $0x26c] sm:$0xf]  ;;  %v4024_v14 = vld [vmem:[%s8668_s2 + $0x278] sm:$0xf0] }
  0x9f   :  { %1497 = vmatpush.bf16.msra.mxu3 %v4375_v11  ;;  %v5577_v11 = vld [vmem:[%s8668_s2 + $0x48c] sm:$0xf]  ;;  %v4424_v20 = vld [vmem:[%s8668_s2 + $0x598] sm:$0xf0]  ;;  %v4027_v21 = vor.u32 %v5509_v13, %v4024_v14 }
  0xa0   :  { %1522 = vmatpush.bf16.msrb.mxu2 %v3755_v3  ;;  %v4459_v3 = vor.u32 %v5617_v59, %v4456_v60  ;;  %v5541_v16 = vld [vmem:[%s8668_s2 + $0x36c] sm:$0xf]  ;;  %v4408_v34 = vld [vmem:[%s8668_s2 + $0x578] sm:$0xf0] }
  0xa1   :  { %1535 = vmatpush.bf16.msra.mxu0 %v3883_v15  ;;  %1485 = vmatpush.bf16.msra.mxu1 %v4231_v23  ;;  %v4443_v15 = vor.u32 %v5613_v8, %v4440_v9  ;;  %v5573_v22 = vld [vmem:[%s8668_s2 + $0x46c] sm:$0xf]  ;;  %v4280_v23 = vld [vmem:[%s8668_s2 + $0x478] sm:$0xf0]  ;;  %v7170_v28 = vpop.f32.mrf.mxu1 }
  0xa2   :  { %v5505_v25 = vld [vmem:[%s8668_s2 + $0x24c] sm:$0xf]  ;;  %v4264_v39 = vld [vmem:[%s8668_s2 + $0x458] sm:$0xf0] }
  0xa3   :  { %1498 = vmatpush.bf16.msra.mxu3 %v4359_v26  ;;  %v4008_v26 = vld [vmem:[%s8668_s2 + $0x258] sm:$0xf0]  ;;  %v5537_v29 = vld [vmem:[%s8668_s2 + $0x34c] sm:$0xf] }
  0xa4   :  { %1523 = vmatpush.bf16.msrb.mxu2 %v3739_v19  ;;  %1486 = vmatmul.bf16.vlgmr.msra.gmra.mxu1 %v6463_v30  ;;  %v7150_v17 = vpop.f32.mrf.mxu0  ;;  %v5609_v19 = vld [vmem:[%s8668_s2 + $0x58c] sm:$0xf]  ;;  %v3992_v43 = vld [vmem:[%s8668_s2 + $0x238] sm:$0xf0] }
  0xa5   :  { %1543 = vmatpush.bf16.msrb.mxu1 %v4091_v27  ;;  %1536 = vmatpush.bf16.msra.mxu0 %v3867_v32  ;;  %v4427_v27 = vor.u32 %v5609_v19, %v4424_v20  ;;  %v4283_v32 = vor.u32 %v5573_v22, %v4280_v23  ;;  %v5605_v33 = vld [vmem:[%s8668_s2 + $0x56c] sm:$0xf]  ;;  %v4120_v47 = vld [vmem:[%s8668_s2 + $0x338] sm:$0xf0]  ;;  %v5634_v22 = vld [vmem:[%s8670_s4 + $0x30] sm:$0xff] }
  0xa6   :  { %1499 = vmatmul.bf16.vlgmr.msra.gmra.mxu3 %v6474_v35  ;;  %v5569_v38 = vld [vmem:[%s8668_s2 + $0x44c] sm:$0xf]  ;;  %v4392_v52 = vld [vmem:[%s8668_s2 + $0x558] sm:$0xf0] }
  0xa7   :  { %1556 = vmatpush.bf16.msrb.mxu3 %v4219_v31  ;;  %v4136_v31 = vld [vmem:[%s8668_s2 + $0x358] sm:$0xf0]  ;;  %v5501_v42 = vld [vmem:[%s8668_s2 + $0x22c] sm:$0xf] }
  0xa8   :  { %1524 = vmatpush.bf16.msrb.mxu2 %v3723_v37  ;;  %v4011_v37 = vor.u32 %v5505_v25, %v4008_v26  ;;  %v4139_v40 = vor.u32 %v5537_v29, %v4136_v31  ;;  %v5533_v46 = vld [vmem:[%s8668_s2 + $0x32c] sm:$0xf]  ;;  %v3995_v54 = vor.u32 %v5501_v42, %v3992_v43  ;;  %v4360_v19 = vld [vmem:[%s8668_s2 + $0x518] sm:$0xf0]  ;;  %v5640_v31 = vld [vmem:[%s8670_s4 + $0x60] sm:$0xff] }
  0xa9   :  { %1544 = vmatpush.bf16.msrb.mxu1 %v4075_v44  ;;  %1537 = vmatpush.bf16.msra.mxu0 %v3851_v49  ;;  %v7184_v36 = vpop.f32.mrf.mxu2  ;;  %v4411_v44 = vor.u32 %v5605_v33, %v4408_v34  ;;  %v4267_v49 = vor.u32 %v5569_v38, %v4264_v39  ;;  %v5601_v50 = vld [vmem:[%s8668_s2 + $0x54c] sm:$0xf]  ;;  %v4123_v59 = vor.u32 %v5533_v46, %v4120_v47  ;;  %v1268_v1 = vpop.f32.mrf.mxu1  ;;  %v5643_v20 = vld [vmem:[%s8670_s4 + $0x78] sm:$0xff]  ;;  %v5628_v46 = vld [vmem:[%s8670_s4] sm:$0xff] }
  0xaa   :  { %v5565_v56 = vld [vmem:[%s8668_s2 + $0x42c] sm:$0xf]  ;;  %v4395_v63 = vor.u32 %v5601_v50, %v4392_v52  ;;  %v5639_v34 = vld [vmem:[%s8670_s4 + $0x58] sm:$0xff] }
  0xab   :  { %1557 = vmatpush.bf16.msrb.mxu3 %v4203_v48  ;;  %1525 = vmatmul.bf16.vlgmr.msrb.gmra.mxu2 %v6260_v55  ;;  %v4296_v55 = vld [vmem:[%s8668_s2 + $0x498] sm:$0xf0]  ;;  %v5497_v60 = vld [vmem:[%s8668_s2 + $0x20c] sm:$0xf] }
  0xac   :  { %1569 = vmatpush.bf16.msra.mxu2 %v4347_v41  ;;  %1538 = vmatmul.bf16.vlgmr.msra.gmra.mxu0 %v6293_v7  ;;  %v4152_v7 = vld [vmem:[%s8668_s2 + $0x378] sm:$0xf0]  ;;  %v4299_v18 = vor.u32 %v5577_v11, %v4296_v55  ;;  %v7192_v41 = vpop.f32.mrf.mxu3  ;;  %v1255_v48 = vpop.f32.mrf.mxu0  ;;  %v5529_v62 = vld [vmem:[%s8668_s2 + $0x30c] sm:$0xf] }
  0xad   :  { %1582 = vmatpush.bf16.msrb.mxu0 %v4475_v53  ;;  %1545 = vmatpush.bf16.msrb.mxu1 %v4059_v61  ;;  %v4155_v24 = vor.u32 %v5541_v16, %v4152_v7  ;;  %v7215_v53 = vld [vmem:[%s8669_s3] sm:$0xf]  ;;  %v3976_v61 = vld [vmem:[%s8668_s2 + $0x218] sm:$0xf0]  ;;  %v5625_v2 = vld [vmem:[%s8668_s2 + $0x60c] sm:$0xf] }
  0xae   :  { %v5597_v5 = vld [vmem:[%s8668_s2 + $0x52c] sm:$0xf]  ;;  %v3979_v9 = vor.u32 %v5497_v60, %v3976_v61  ;;  %v4232_v11 = vld [vmem:[%s8668_s2 + $0x418] sm:$0xf0]  ;;  %v252_v55 = vperm.slane %v7215_v53, 0  ;;  %v253_v52 = vperm.slane %v7215_v53, 1 }
  0xaf   :  { %1558 = vmatpush.bf16.msrb.mxu3 %v4187_v0  ;;  %v4104_v0 = vld [vmem:[%s8668_s2 + $0x318] sm:$0xf0]  ;;  %v5633_v26 = vld [vmem:[%s8670_s4 + $0x28] sm:$0xff] }
  0xb0   :  { %1570 = vmatpush.bf16.msra.mxu2 %v4331_v58  ;;  %v4248_v58 = vld [vmem:[%s8668_s2 + $0x438] sm:$0xf0]  ;;  %v5629_v43 = vld [vmem:[%s8670_s4 + $0x8] sm:$0xff] }
  0xb1   :  { %1583 = vmatpush.bf16.msrb.mxu0 %v4459_v3  ;;  %1546 = vmatpush.bf16.msrb.mxu1 %v4043_v10  ;;  %v4488_v3 = vld [vmem:[%s8668_s2 + $0x618] sm:$0xf0]  ;;  %v4251_v4 = vor.u32 %v5565_v56, %v4248_v58  ;;  %v1281_v8 = vpop.f32.mrf.mxu2  ;;  %v5561_v10 = vld [vmem:[%s8668_s2 + $0x40c] sm:$0xf] }
  0xb2   :  { %v4491_v13 = vor.u32 %v5625_v2, %v4488_v3  ;;  %v4235_v7 = vor.u32 %v5561_v10, %v4232_v11  ;;  %v5651_v1 = vld [vmem:[%s8670_s4 + $0xb8] sm:$0xff]  ;;  %v5649_v8 = vld [vmem:[%s8670_s4 + $0xa8] sm:$0xff] }
  0xb3   :  { %1559 = vmatpush.bf16.msrb.mxu3 %v4171_v12  ;;  %v4107_v12 = vor.u32 %v5529_v62, %v4104_v0 }
  0xb4   :  { %1571 = vmatpush.bf16.msra.mxu2 %v4315_v6  ;;  %v4376_v6 = vld [vmem:[%s8668_s2 + $0x538] sm:$0xf0]  ;;  %v1294_v14 = vpop.f32.mrf.mxu3 }
  0xb5   :  { %1584 = vmatpush.bf16.msrb.mxu0 %v4443_v15  ;;  %1547 = vmatpush.bf16.msrb.mxu1 %v4027_v21  ;;  %v5635_v15 = vld [vmem:[%s8670_s4 + $0x38] sm:$0xff]  ;;  %v4379_v16 = vor.u32 %v5597_v5, %v4376_v6  ;;  %v1254_v21 = vadd.f32 %v7150_v17, %v252_v55  ;;  %v5642_v17 = vld [vmem:[%s8670_s4 + $0x70] sm:$0xff] }
  0xb7   :  { %1560 = vmatpush.bf16.msrb.mxu3 %v4155_v24  ;;  %v1267_v25 = vadd.f32 %v7170_v28, %v1254_v21 }
  0xb8   :  { %1572 = vmatpush.bf16.msra.mxu2 %v4299_v18  ;;  %v5593_v18 = vld [vmem:[%s8668_s2 + $0x50c] sm:$0xf]  ;;  %s3694_s2 = sshll.u32 %s8677_s11, 4  ;;  %s5948_s11 = smov [#allocation2]   ;;  %s3695_s2 = int_to_ptr.hbm [resolvable:$true] %s3694_s2 }
  0xb9   :  { %1585 = vmatpush.bf16.msrb.mxu0 %v4427_v27  ;;  %1548 = vmatpush.bf16.msrb.mxu1 %v4011_v37  ;;  %v4363_v23 = vor.u32 %v5593_v18, %v4360_v19  ;;  %v1331_v24 = vpop.f32.mrf.mxu2  ;;  %v5632_v27 = vld [vmem:[%s8670_s4 + $0x20] sm:$0xff] }
  0xbb   :  { %1561 = vmatpush.bf16.msrb.mxu3 %v4139_v40 }
  0xbc   :  { %1573 = vmatpush.bf16.msra.mxu2 %v4283_v32 }
  0xbd   :  { %1586 = vmatpush.bf16.msrb.mxu0 %v4411_v44  ;;  %1549 = vmatpush.bf16.msrb.mxu1 %v3995_v54 }
  0xbf   :  { %1562 = vmatpush.bf16.msrb.mxu3 %v4123_v59 }
  0xc0   :  { %1574 = vmatpush.bf16.msra.mxu2 %v4267_v49  ;;  %v5636_v49 = vld [vmem:[%s8670_s4 + $0x40] sm:$0xff] }
  0xc1   :  { %1587 = vmatpush.bf16.msrb.mxu0 %v4395_v63  ;;  %1550 = vmatpush.bf16.msrb.mxu1 %v3979_v9  ;;  %v1333_v29 = vpop.f32.mrf.mxu2 }
  0xc3   :  { %1563 = vmatpush.bf16.msrb.mxu3 %v4107_v12  ;;  %v1318_v28 = vpop.f32.mrf.mxu1  ;;  %v5648_v12 = vld [vmem:[%s8670_s4 + $0xa0] sm:$0xff] }
  0xc4   :  { %1575 = vmatpush.bf16.msra.mxu2 %v4251_v4  ;;  %1551 = vmatmul.bf16.vlgmr.msrb.gmra.mxu1 %v6249_v51  ;;  %v5641_v51 = vld [vmem:[%s8670_s4 + $0x68] sm:$0xff]  ;;  %v5650_v4 = vld [vmem:[%s8670_s4 + $0xb0] sm:$0xff] }
  0xc5   :  { %1602 = vmatpush.bf16.msra.mxu1 %v4491_v13  ;;  %1588 = vmatpush.bf16.msrb.mxu0 %v4379_v16  ;;  %v5647_v16 = vld [vmem:[%s8670_s4 + $0x98] sm:$0xff] }
  0xc6   :  { %1564 = vmatmul.bf16.vlgmr.msrb.gmra.mxu3 %v6262_v57  ;;  %v1280_v57 = vadd.f32 %v7184_v36, %v1267_v25  ;;  %v5630_v36 = vld [vmem:[%s8670_s4 + $0x10] sm:$0xff] }
  0xc7   :  { %1823 = vmatpush.bf16.msra.mxu3 %v5635_v15 }
  0xc8   :  { %1576 = vmatpush.bf16.msra.mxu2 %v4235_v7  ;;  %v1293_v32 = vadd.f32 %v7192_v41, %v1280_v57  ;;  %v5638_v41 = vld [vmem:[%s8670_s4 + $0x50] sm:$0xff] }
  0xc9   :  { %1836 = vmatpush.bf16.msrb.mxu1 %v5643_v20  ;;  %1589 = vmatpush.bf16.msrb.mxu0 %v4363_v23  ;;  %v1344_v39 = vpop.f32.mrf.mxu3  ;;  %v5646_v7 = vld [vmem:[%s8670_s4 + $0x90] sm:$0xff]  ;;  %v5645_v20 = vld [vmem:[%s8670_s4 + $0x88] sm:$0xff] }
  0xca   :  { %v1345_v56 = vadd.f32 %v1344_v39, %v253_v52 }
  0xcb   :  { %1824 = vmatpush.bf16.msra.mxu3 %v5634_v22  ;;  %1577 = vmatmul.bf16.vlgmr.msra.gmra.mxu2 %v6463_v30  ;;  %v1305_v30 = vpop.f32.mrf.mxu0  ;;  %v1320_v40 = vpop.f32.mrf.mxu1  ;;  %v5644_v22 = vld [vmem:[%s8670_s4 + $0x80] sm:$0xff] }
  0xcc   :  { %1590 = vmatmul.bf16.vlgmr.msrb.gmra.mxu0 %v6474_v35  ;;  %v5631_v35 = vld [vmem:[%s8670_s4 + $0x18] sm:$0xff]  ;;  %v1306_v33 = vadd.f32 %v1305_v30, %v1293_v32  ;;  %1849 = vmatpush.bf16.msrb.mxu2 %v5651_v1 }
  0xcd   :  { %1837 = vmatpush.bf16.msrb.mxu1 %v5642_v17 }
  0xce   :  { %v1319_v37 = vadd.f32 %v1318_v28, %v1306_v33  ;;  %v1357_v42 = vpop.f32.mrf.mxu2 }
  0xcf   :  { %1825 = vmatpush.bf16.msra.mxu3 %v5633_v26  ;;  %v1358_v58 = vadd.f32 %v1357_v42, %v1345_v56  ;;  %v254_v26 = vperm.slane %v7215_v53, 2 }
  0xd0   :  { %v1332_v44 = vadd.f32 %v1331_v24, %v1319_v37  ;;  %1850 = vmatpush.bf16.msrb.mxu2 %v5650_v4 }
  0xd1   :  { %1838 = vmatpush.bf16.msrb.mxu1 %v5641_v51  ;;  %v1346_v48 = vpop.f32.mrf.mxu3 }
  0xd2   :  { %v1608_v47 = vmax.f32 %v1332_v44, 0.0  ;;  %v5652_v44 = vld [vmem:[%s8670_s4 + $0xc0] sm:$0xff] }
  0xd3   :  { %1826 = vmatpush.bf16.msra.mxu3 %v5632_v27  ;;  %v1307_v38 = vpop.f32.mrf.mxu0  ;;  %1869 = vmatpush.bf16.msra.mxu0 %v5652_v44 }
  0xd4   :  { %4495 = vmatmul.msk.bf16.vlgmr.msra.gmra.mxu1 %vm1240_vm0, %v6372_v45  ;;  %v5637_v45 = vld [vmem:[%s8670_s4 + $0x48] sm:$0xff]  ;;  %v1612_v54 = vpack.c.bf16 %v1608_v47, %v1608_v47  ;;  %1851 = vmatpush.bf16.msrb.mxu2 %v5649_v8  ;;  %v5863_v8 = vld [vmem:[%s8671_s5] ss:$0 sm:$0xff] }
  0xd5   :  { %1839 = vmatpush.bf16.msrb.mxu1 %v5640_v31 }
  0xd6   :  { %v1359_v50 = vpop.f32.mrf.mxu2 }
  0xd7   :  { %1827 = vmatpush.bf16.msra.mxu3 %v5631_v35 }
  0xd8   :  { %1852 = vmatpush.bf16.msrb.mxu2 %v5648_v12 }
  0xd9   :  { %1840 = vmatpush.bf16.msrb.mxu1 %v5639_v34 }
  0xdb   :  { %1828 = vmatpush.bf16.msra.mxu3 %v5630_v36 }
  0xdc   :  { %1853 = vmatpush.bf16.msrb.mxu2 %v5647_v16 }
  0xdd   :  { %1841 = vmatpush.bf16.msrb.mxu1 %v5638_v41 }
  0xdf   :  { %1829 = vmatpush.bf16.msra.mxu3 %v5629_v43 }
  0xe0   :  { %v1370_v59 = vpop.f32.mrf.mxu0  ;;  %1854 = vmatpush.bf16.msrb.mxu2 %v5646_v7  ;;  %v4713_v7 = vld [vmem:[%s8672_s6 + $0xf0] sm:$0xf0] }
  0xe1   :  { %1842 = vmatpush.bf16.msrb.mxu1 %v5637_v45  ;;  %v1371_v60 = vadd.f32 %v1370_v59, %v1358_v58 }
  0xe3   :  { %1830 = vmatpush.bf16.msra.mxu3 %v5628_v46  ;;  %v255_v46 = vperm.slane %v7215_v53, 3 }
  0xe4   :  { %1855 = vmatpush.bf16.msrb.mxu2 %v5645_v20 }
  0xe5   :  { %1843 = vmatpush.bf16.msrb.mxu1 %v5636_v49 }
  0xe6   :  { %1831 = vmatmul.bf16.vlgmr.msra.gmra.mxu3 %v1612_v54 }
  0xe7   :  { %v1383_v61 = vpop.f32.mrf.mxu1 }
  0xe8   :  { %v1384_v62 = vadd.f32 %v1383_v61, %v1371_v60  ;;  %v1372_v63 = vpop.f32.mrf.mxu0  ;;  %1856 = vmatpush.bf16.msrb.mxu2 %v5644_v22 }
  0xed   :  { %v1396_v0 = vpop.f32.mrf.mxu3 }
  0xee   :  { %v1397_v2 = vadd.f32 %v1396_v0, %v1384_v62  ;;  %v1409_v3 = vpop.f32.mrf.mxu2 }
  0xef   :  { %v1385_v5 = vpop.f32.mrf.mxu1 }
  0xf0   :  { %v1410_v6 = vadd.f32 %v1409_v3, %v1397_v2  ;;  %v1422_v9 = vpop.f32.mrf.mxu0 }
  0xf2   :  { %v1423_v11 = vadd.f32 %v1422_v9, %v1410_v6 }
  0xf4   :  { %v1609_v13 = vmax.f32 %v1423_v11, 0.0 }
  0xf5   :  { %v1398_v10 = vpop.f32.mrf.mxu3 }
  0xf6   :  { %v1411_v55 = vpop.f32.mrf.mxu2  ;;  %v1613_v14 = vpack.c.bf16 %v1609_v13, %v1609_v13  ;;  %v4711_v13 = vld [vmem:[%s8672_s6 + $0xe0] sm:$0xf] }
  0xf8   :  { %1844 = vmatmul.bf16.vlgmr.msrb.gmra.mxu1 %v1613_v14  ;;  %v1424_v15 = vpop.f32.mrf.mxu0  ;;  %v5683_v14 = vld [vmem:[%s8672_s6 + $0xec] sm:$0xf0] }
  0xf9   :  { %v5681_v15 = vld [vmem:[%s8672_s6 + $0xe4] sm:$0xf]  ;;  %v4712_v16 = vor.u32 %v5683_v14, %v4711_v13  ;;  %v4631_v14 = vld [vmem:[%s8672_s6 + $0x40] sm:$0xf] }
  0xfb   :  { %2091 = vmatpush.bf16.msrb.mxu3 %v4712_v16  ;;  %v5661_v16 = vld [vmem:[%s8672_s6 + $0x44] sm:$0xf] }
 0x101   :  { %v1435_v19 = vpop.f32.mrf.mxu1 }
 0x102   :  { %v1436_v27 = vadd.f32 %v1435_v19, %v254_v26  ;;  %v5684_v19 = vld [vmem:[%s8672_s6 + $0xf4] sm:$0xf0]  ;;  %v5679_v26 = vld [vmem:[%s8672_s6 + $0xcc] sm:$0xf0] }
 0x105   :  { %v1461_v18 = vpop.f32.mrf.mxu0 }
 0x109   :  { %v1448_v21 = vpop.f32.mrf.mxu3  ;;  %v1437_v17 = vpop.f32.mrf.mxu1 }
 0x10a   :  { %v1449_v30 = vadd.f32 %v1448_v21, %v1436_v27  ;;  %v4716_v21 = vor.u32 %v5681_v15, %v4713_v7  ;;  %v4695_v17 = vld [vmem:[%s8672_s6 + $0xc0] sm:$0xf]  ;;  %v5663_v15 = vld [vmem:[%s8672_s6 + $0x4c] sm:$0xf0] }
 0x10b   :  { %v4696_v27 = vor.u32 %v5679_v26, %v4695_v17  ;;  %v4632_v7 = vor.u32 %v5663_v15, %v4631_v14  ;;  %v5659_v26 = vld [vmem:[%s8672_s6 + $0x2c] sm:$0xf0]  ;;  %v5315_v15 = vld [vmem:[%s8674_s8 + $0x498] sm:$0xf] }
 0x10c   :  { %v1462_v29 = vadd.f32 %v1461_v18, %v1449_v30  ;;  %v4719_v18 = vld [vmem:[%s8672_s6 + $0xe8] sm:$0xf]  ;;  %2104 = vmatpush.bf16.msrb.mxu0 %v4716_v21 }
 0x10d   :  { %v1463_v23 = vpop.f32.mrf.mxu0  ;;  %v4720_v22 = vor.u32 %v5684_v19, %v4719_v18  ;;  %2092 = vmatpush.bf16.msrb.mxu3 %v4696_v27  ;;  %v4633_v18 = vld [vmem:[%s8672_s6 + $0x50] sm:$0xf0]  ;;  %v4639_v19 = vld [vmem:[%s8672_s6 + $0x48] sm:$0xf] }
 0x10e   :  { %v1474_v24 = vpop.f32.mrf.mxu2  ;;  %v5682_v23 = vld [vmem:[%s8672_s6 + $0xec] sm:$0xf]  ;;  %v4636_v21 = vor.u32 %v5661_v16, %v4633_v18  ;;  %v4617_v27 = vld [vmem:[%s8672_s6 + $0x30] sm:$0xf0]  ;;  %v5399_v18 = vld [vmem:[%s8674_s8 + $0x540] sm:$0xf] }
 0x10f   :  { %v1475_v32 = vadd.f32 %v1474_v24, %v1462_v29  ;;  %v4721_v24 = vld [vmem:[%s8672_s6 + $0xf8] sm:$0xf0]  ;;  %2117 = vmatpush.bf16.msra.mxu1 %v4720_v22  ;;  %v5680_v29 = vld [vmem:[%s8672_s6 + $0xd4] sm:$0xf0] }
 0x111   :  { %v1450_v25 = vpop.f32.mrf.mxu3 }
 0x112   :  { %v4724_v25 = vor.u32 %v5682_v23, %v4721_v24  ;;  %v5662_v23 = vld [vmem:[%s8672_s6 + $0x4c] sm:$0xf]  ;;  %v4641_v24 = vld [vmem:[%s8672_s6 + $0x58] sm:$0xf0] }
 0x113   :  { %v4644_v17 = vor.u32 %v5662_v23, %v4641_v24 }
 0x114   :  { %2130 = vmatpush.bf16.msra.mxu2 %v4724_v25  ;;  %v4615_v25 = vld [vmem:[%s8672_s6 + $0x20] sm:$0xf] }
 0x115   :  { %v1513_v51 = vpop.f32.mrf.mxu0 }
 0x116   :  { %v1476_v57 = vpop.f32.mrf.mxu2 }
 0x117   :  { %v4697_v57 = vld [vmem:[%s8672_s6 + $0xd0] sm:$0xf0] }
 0x11d   :  { %v1515_v28 = vpop.f32.mrf.mxu0 }
 0x11e   :  { %v4703_v28 = vld [vmem:[%s8672_s6 + $0xc8] sm:$0xf] }
 0x121   :  { %v1487_v31 = vpop.f32.mrf.mxu1 }
 0x122   :  { %v1488_v35 = vadd.f32 %v1487_v31, %v1475_v32  ;;  %v5678_v31 = vld [vmem:[%s8672_s6 + $0xcc] sm:$0xf]  ;;  %v4704_v32 = vor.u32 %v5680_v29, %v4703_v28  ;;  %v5660_v28 = vld [vmem:[%s8672_s6 + $0x34] sm:$0xf0] }
 0x124   :  { %2118 = vmatpush.bf16.msra.mxu1 %v4704_v32  ;;  %v5658_v32 = vld [vmem:[%s8672_s6 + $0x2c] sm:$0xf] }
 0x129   :  { %v1539_v33 = vpop.f32.mrf.mxu0  ;;  %v1500_v34 = vpop.f32.mrf.mxu3 }
 0x12a   :  { %v1501_v36 = vadd.f32 %v1500_v34, %v1488_v35  ;;  %v1489_v37 = vpop.f32.mrf.mxu1  ;;  %v4705_v35 = vld [vmem:[%s8672_s6 + $0xd8] sm:$0xf0]  ;;  %v5675_v34 = vld [vmem:[%s8672_s6 + $0xac] sm:$0xf0] }
 0x12b   :  { %v5673_v37 = vld [vmem:[%s8672_s6 + $0xa4] sm:$0xf] }
 0x12c   :  { %v1514_v38 = vadd.f32 %v1513_v51, %v1501_v36  ;;  %v5677_v51 = vld [vmem:[%s8672_s6 + $0xc4] sm:$0xf]  ;;  %v4708_v36 = vor.u32 %v5678_v31, %v4705_v35  ;;  %v4625_v35 = vld [vmem:[%s8672_s6 + $0x38] sm:$0xf0] }
 0x12d   :  { %v4700_v30 = vor.u32 %v5677_v51, %v4697_v57  ;;  %v5657_v51 = vld [vmem:[%s8672_s6 + $0x24] sm:$0xf]  ;;  %v4616_v57 = vor.u32 %v5659_v26, %v4615_v25  ;;  %v5035_v26 = vld [vmem:[%s8674_s8 + $0x268] sm:$0xf] }
 0x12e   :  { %v1526_v39 = vpop.f32.mrf.mxu2  ;;  %v1610_v40 = vmax.f32 %v1514_v38, 0.0  ;;  %v4681_v38 = vld [vmem:[%s8672_s6 + $0xb0] sm:$0xf0]  ;;  %2131 = vmatpush.bf16.msra.mxu2 %v4708_v36  ;;  %v4620_v29 = vor.u32 %v5657_v51, %v4617_v27  ;;  %v5655_v36 = vld [vmem:[%s8672_s6 + $0xc] sm:$0xf0] }
 0x12f   :  { %v1527_v47 = vadd.f32 %v1526_v39, %v255_v46  ;;  %v4687_v39 = vld [vmem:[%s8672_s6 + $0xa8] sm:$0xf]  ;;  %2105 = vmatpush.bf16.msrb.mxu0 %v4700_v30  ;;  %v4684_v44 = vor.u32 %v5673_v37, %v4681_v38  ;;  %v5653_v37 = vld [vmem:[%s8672_s6 + $0x4] sm:$0xf] }
 0x130   :  { %v1614_v41 = vpack.c.bf16 %v1610_v40, %v1610_v40  ;;  %v4623_v30 = vld [vmem:[%s8672_s6 + $0x28] sm:$0xf]  ;;  %v5765_v51 = vld [vmem:[%s8674_s8 + $0x280] sm:$0xf0] }
 0x131   :  { %v1541_v42 = vpop.f32.mrf.mxu0  ;;  %v1502_v43 = vpop.f32.mrf.mxu3  ;;  %v1540_v49 = vadd.f32 %v1539_v33, %v1527_v47  ;;  %v4679_v33 = vld [vmem:[%s8672_s6 + $0xa0] sm:$0xf]  ;;  %v4624_v31 = vor.u32 %v5660_v28, %v4623_v30 }
 0x132   :  { %1857 = vmatmul.bf16.vlgmr.msrb.gmra.mxu2 %v1614_v41  ;;  %v4680_v40 = vor.u32 %v5675_v34, %v4679_v33  ;;  %v5676_v41 = vld [vmem:[%s8672_s6 + $0xb4] sm:$0xf0]  ;;  %v5674_v42 = vld [vmem:[%s8672_s6 + $0xac] sm:$0xf]  ;;  %v4689_v43 = vld [vmem:[%s8672_s6 + $0xb8] sm:$0xf0]  ;;  %v4628_v33 = vor.u32 %v5658_v32, %v4625_v35  ;;  %v5036_v35 = vor.u32 %v5765_v51, %v5035_v26 }
 0x133   :  { %v4692_v46 = vor.u32 %v5674_v42, %v4689_v43  ;;  %2106 = vmatpush.bf16.msrb.mxu0 %v4684_v44  ;;  %v4599_v34 = vld [vmem:[%s8672_s6] sm:$0xf]  ;;  %v5654_v44 = vld [vmem:[%s8672_s6 + $0xc] sm:$0xf]  ;;  %v5832_v51 = vld [vmem:[%s8674_s8 + $0x49c] sm:$0xf] }
 0x134   :  { %2093 = vmatpush.bf16.msrb.mxu3 %v4680_v40  ;;  %v4600_v38 = vor.u32 %v5655_v36, %v4599_v34  ;;  %v4607_v40 = vld [vmem:[%s8672_s6 + $0x8] sm:$0xf]  ;;  %v5287_v28 = vld [vmem:[%s8674_s8 + $0x460] sm:$0xf]  ;;  %v5702_v32 = vld [vmem:[%s8674_s8 + $0x88] sm:$0xf0] }
 0x135   :  { %2132 = vmatpush.bf16.msra.mxu2 %v4692_v46  ;;  %v5007_v34 = vld [vmem:[%s8674_s8 + $0x230] sm:$0xf]  ;;  %v5758_v36 = vld [vmem:[%s8674_s8 + $0x248] sm:$0xf0] }
 0x136   :  { %v1528_v45 = vpop.f32.mrf.mxu2 }
 0x137   :  { %v4688_v45 = vor.u32 %v5676_v41, %v4687_v39  ;;  %v4601_v39 = vld [vmem:[%s8672_s6 + $0x10] sm:$0xf0]  ;;  %v5656_v41 = vld [vmem:[%s8672_s6 + $0x14] sm:$0xf0] }
 0x138   :  { %v4604_v42 = vor.u32 %v5653_v37, %v4601_v39  ;;  %v4608_v43 = vor.u32 %v5656_v41, %v4607_v40  ;;  %v5259_v39 = vld [vmem:[%s8674_s8 + $0x428] sm:$0xf]  ;;  %v5821_v40 = vld [vmem:[%s8674_s8 + $0x440] sm:$0xf0]  ;;  %v4755_v41 = vld [vmem:[%s8674_s8 + $0x38] sm:$0xf] }
 0x139   :  { %2119 = vmatpush.bf16.msra.mxu1 %v4688_v45  ;;  %v4609_v45 = vld [vmem:[%s8672_s6 + $0x18] sm:$0xf0] }
 0x13a   :  { %v4612_v46 = vor.u32 %v5654_v44, %v4609_v45  ;;  %v4979_v44 = vld [vmem:[%s8674_s8 + $0x1f8] sm:$0xf]  ;;  %v5751_v45 = vld [vmem:[%s8674_s8 + $0x210] sm:$0xf0] }
 0x141   :  { %v1552_v48 = vpop.f32.mrf.mxu1 }
 0x142   :  { %v1553_v50 = vadd.f32 %v1552_v48, %v1540_v49 }
 0x149   :  { %v1565_v52 = vpop.f32.mrf.mxu3  ;;  %v1591_v54 = vpop.f32.mrf.mxu0 }
 0x14a   :  { %v1566_v56 = vadd.f32 %v1565_v52, %v1553_v50  ;;  %v1554_v58 = vpop.f32.mrf.mxu1  ;;  %v4663_v52 = vld [vmem:[%s8672_s6 + $0x80] sm:$0xf] }
 0x14e   :  { %v1578_v59 = vpop.f32.mrf.mxu2 }
 0x14f   :  { %v1579_v60 = vadd.f32 %v1578_v59, %v1566_v56  ;;  %v5669_v56 = vld [vmem:[%s8672_s6 + $0x84] sm:$0xf]  ;;  %v4665_v59 = vld [vmem:[%s8672_s6 + $0x90] sm:$0xf0] }
 0x151   :  { %v1567_v61 = vpop.f32.mrf.mxu3  ;;  %v1593_v62 = vpop.f32.mrf.mxu0  ;;  %v1592_v63 = vadd.f32 %v1591_v54, %v1579_v60  ;;  %v5671_v54 = vld [vmem:[%s8672_s6 + $0x8c] sm:$0xf0]  ;;  %v4671_v60 = vld [vmem:[%s8672_s6 + $0x88] sm:$0xf] }
 0x152   :  { %v1604_v0 = vpop.f32.mrf.mxu1  ;;  %v4664_v58 = vor.u32 %v5671_v54, %v4663_v52  ;;  %v5672_v61 = vld [vmem:[%s8672_s6 + $0x94] sm:$0xf0]  ;;  %v4668_v62 = vor.u32 %v5669_v56, %v4665_v59  ;;  %v5730_v54 = vld [vmem:[%s8674_s8 + $0x168] sm:$0xf0]  ;;  %v5147_v56 = vld [vmem:[%s8674_s8 + $0x348] sm:$0xf] }
 0x153   :  { %v1605_v1 = vadd.f32 %v1604_v0, %v1592_v63  ;;  %v4672_v63 = vor.u32 %v5672_v61, %v4671_v60  ;;  %v5670_v0 = vld [vmem:[%s8672_s6 + $0x8c] sm:$0xf]  ;;  %v5119_v60 = vld [vmem:[%s8674_s8 + $0x310] sm:$0xf] }
 0x154   :  { %2094 = vmatpush.bf16.msrb.mxu3 %v4664_v58  ;;  %2107 = vmatpush.bf16.msrb.mxu0 %v4668_v62  ;;  %v5793_v58 = vld [vmem:[%s8674_s8 + $0x360] sm:$0xf0]  ;;  %v5786_v62 = vld [vmem:[%s8674_s8 + $0x328] sm:$0xf0] }
 0x155   :  { %v1611_v3 = vmax.f32 %v1605_v1, 0.0  ;;  %v4673_v1 = vld [vmem:[%s8672_s6 + $0x98] sm:$0xf0]  ;;  %2120 = vmatpush.bf16.msra.mxu1 %v4672_v63  ;;  %v5148_v59 = vor.u32 %v5793_v58, %v5147_v56  ;;  %v4867_v63 = vld [vmem:[%s8674_s8 + $0x118] sm:$0xf]  ;;  %v4980_v58 = vor.u32 %v5751_v45, %v4979_v44 }
 0x156   :  { %v1580_v2 = vpop.f32.mrf.mxu2  ;;  %v5825_v44 = vld [vmem:[%s8674_s8 + $0x464] sm:$0xf] }
 0x157   :  { %v1615_v4 = vpack.c.bf16 %v1611_v3, %v1611_v3  ;;  %v4676_v2 = vor.u32 %v5670_v0, %v4673_v1  ;;  %v4647_v3 = vld [vmem:[%s8672_s6 + $0x60] sm:$0xf]  ;;  %v5723_v0 = vld [vmem:[%s8674_s8 + $0x130] sm:$0xf0]  ;;  %v5120_v1 = vor.u32 %v5786_v62, %v5119_v60  ;;  %v5734_v62 = vld [vmem:[%s8674_s8 + $0x18c] sm:$0xf] }
 0x158   :  { %v4727_v60 = vld [vmem:[%s8674_s8] sm:$0xf] }
 0x159   :  { %4596 = vmatmul.msk.bf16.vlgmr.msra.gmra.mxu0 %vm1240_vm0, %v1615_v4  ;;  %v5667_v4 = vld [vmem:[%s8672_s6 + $0x6c] sm:$0xf0]  ;;  %2133 = vmatpush.bf16.msra.mxu2 %v4676_v2  ;;  %v5091_v2 = vld [vmem:[%s8674_s8 + $0x2d8] sm:$0xf] }
 0x15a   :  { %v1606_v53 = vpop.f32.mrf.mxu1 }
 0x15b   :  { %v4648_v53 = vor.u32 %v5667_v4, %v4647_v3  ;;  %v5779_v3 = vld [vmem:[%s8674_s8 + $0x2f0] sm:$0xf0]  ;;  %v5371_v4 = vld [vmem:[%s8674_s8 + $0x508] sm:$0xf] }
 0x15d   :  { %2095 = vmatpush.bf16.msrb.mxu3 %v4648_v53  ;;  %v4868_v53 = vor.u32 %v5723_v0, %v4867_v63  ;;  %v4925_v63 = vld [vmem:[%s8674_s8 + $0x1a4] sm:$0xf0]  ;;  %v5790_v0 = vld [vmem:[%s8674_s8 + $0x34c] sm:$0xf] }
 0x161   :  { %2096 = vmatpush.bf16.msrb.mxu3 %v4632_v7  ;;  %v5835_v7 = vld [vmem:[%s8674_s8 + $0x4b0] sm:$0xf0] }
 0x165   :  { %2097 = vmatpush.bf16.msrb.mxu3 %v4616_v57  ;;  %v5316_v57 = vor.u32 %v5835_v7, %v5315_v15  ;;  %v5783_v15 = vld [vmem:[%s8674_s8 + $0x314] sm:$0xf] }
 0x169   :  { %v1832_v5 = vpop.f32.mrf.mxu3  ;;  %2098 = vmatpush.bf16.msrb.mxu3 %v4600_v38 }
 0x16a   :  { %v1833_v9 = vadd.f32 %v5863_v8, %v1832_v5  ;;  %v5665_v5 = vld [vmem:[%s8672_s6 + $0x64] sm:$0xf]  ;;  %v4655_v8 = vld [vmem:[%s8672_s6 + $0x68] sm:$0xf] }
 0x171   :  { %v1834_v6 = vpop.f32.mrf.mxu3 }
 0x172   :  { %v4649_v6 = vld [vmem:[%s8672_s6 + $0x70] sm:$0xf0] }
 0x175   :  { %v1845_v10 = vpop.f32.mrf.mxu1 }
 0x176   :  { %v1846_v11 = vadd.f32 %v1845_v10, %v1833_v9  ;;  %v4652_v9 = vor.u32 %v5665_v5, %v4649_v6  ;;  %v5668_v10 = vld [vmem:[%s8672_s6 + $0x74] sm:$0xf0]  ;;  %v5849_v5 = vld [vmem:[%s8674_s8 + $0x520] sm:$0xf0]  ;;  %v4839_v6 = vld [vmem:[%s8674_s8 + $0xe0] sm:$0xf] }
 0x178   :  { %2108 = vmatpush.bf16.msrb.mxu0 %v4652_v9  ;;  %v5092_v9 = vor.u32 %v5779_v3, %v5091_v2 }
 0x17c   :  { %2109 = vmatpush.bf16.msrb.mxu0 %v4636_v21  ;;  %v4811_v21 = vld [vmem:[%s8674_s8 + $0xa8] sm:$0xf] }
 0x17d   :  { %v1847_v55 = vpop.f32.mrf.mxu1 }
 0x17e   :  { %v4656_v55 = vor.u32 %v5668_v10, %v4655_v8  ;;  %v5716_v8 = vld [vmem:[%s8674_s8 + $0xf8] sm:$0xf0]  ;;  %v5372_v10 = vor.u32 %v5849_v5, %v5371_v4  ;;  %v4951_v4 = vld [vmem:[%s8674_s8 + $0x1c0] sm:$0xf]  ;;  %v5846_v5 = vld [vmem:[%s8674_s8 + $0x50c] sm:$0xf] }
 0x17f   :  { %v4840_v16 = vor.u32 %v5716_v8, %v4839_v6  ;;  %v5373_v6 = vld [vmem:[%s8674_s8 + $0x524] sm:$0xf0]  ;;  %v5807_v8 = vld [vmem:[%s8674_s8 + $0x3d0] sm:$0xf0] }
 0x180   :  { %2121 = vmatpush.bf16.msra.mxu1 %v4656_v55  ;;  %2110 = vmatpush.bf16.msrb.mxu0 %v4620_v29  ;;  %v5063_v55 = vld [vmem:[%s8674_s8 + $0x2a0] sm:$0xf]  ;;  %v5828_v29 = vld [vmem:[%s8674_s8 + $0x478] sm:$0xf0]  ;;  %v5376_v7 = vor.u32 %v5846_v5, %v5373_v6  ;;  %v5811_v6 = vld [vmem:[%s8674_s8 + $0x3f4] sm:$0xf] }
 0x181   :  { %v5288_v37 = vor.u32 %v5828_v29, %v5287_v28  ;;  %v5713_v28 = vld [vmem:[%s8674_s8 + $0xe4] sm:$0xf]  ;;  %v4841_v29 = vld [vmem:[%s8674_s8 + $0xfc] sm:$0xf0] }
 0x184   :  { %2111 = vmatpush.bf16.msrb.mxu0 %v4604_v42  ;;  %v5695_v42 = vld [vmem:[%s8674_s8 + $0x50] sm:$0xf0] }
 0x188   :  { %3283 = vmatpush.bf16.msra.mxu0 %v5148_v59 }
 0x18c   :  { %3284 = vmatpush.bf16.msra.mxu0 %v5120_v1  ;;  %v5149_v1 = vld [vmem:[%s8674_s8 + $0x364] sm:$0xf0] }
 0x190   :  { %3285 = vmatpush.bf16.msra.mxu0 %v5092_v9 }
 0x1b5   :  { %v1858_v12 = vpop.f32.mrf.mxu2 }
 0x1b6   :  { %v1859_v47 = vadd.f32 %v1858_v12, %v1846_v11  ;;  %v5666_v11 = vld [vmem:[%s8672_s6 + $0x6c] sm:$0xf]  ;;  %v4657_v12 = vld [vmem:[%s8672_s6 + $0x78] sm:$0xf0] }
 0x1b7   :  { %v4660_v13 = vor.u32 %v5666_v11, %v4657_v12  ;;  %v5343_v11 = vld [vmem:[%s8674_s8 + $0x4d0] sm:$0xf]  ;;  %v5772_v12 = vld [vmem:[%s8674_s8 + $0x2b8] sm:$0xf0] }
 0x1b8   :  { %v5064_v23 = vor.u32 %v5772_v12, %v5063_v55  ;;  %v5152_v55 = vor.u32 %v5790_v0, %v5149_v1  ;;  %v5727_v12 = vld [vmem:[%s8674_s8 + $0x154] sm:$0xf]  ;;  %v5692_v1 = vld [vmem:[%s8674_s8 + $0x3c] sm:$0xf] }
 0x1b9   :  { %2134 = vmatpush.bf16.msra.mxu2 %v4660_v13  ;;  %v5842_v13 = vld [vmem:[%s8674_s8 + $0x4e8] sm:$0xf0] }
 0x1ba   :  { %v5344_v14 = vor.u32 %v5842_v13, %v5343_v11  ;;  %3286 = vmatpush.bf16.msra.mxu0 %v5064_v23  ;;  %v4928_v11 = vor.u32 %v5734_v62, %v4925_v63  ;;  %v4897_v13 = vld [vmem:[%s8674_s8 + $0x16c] sm:$0xf0]  ;;  %v5720_v23 = vld [vmem:[%s8674_s8 + $0x11c] sm:$0xf]  ;;  %v5818_v62 = vld [vmem:[%s8674_s8 + $0x42c] sm:$0xf] }
 0x1bb   :  { %v5261_v63 = vld [vmem:[%s8674_s8 + $0x444] sm:$0xf0] }
 0x1bc   :  { %v5264_v0 = vor.u32 %v5818_v62, %v5261_v63  ;;  %v5843_v62 = vld [vmem:[%s8674_s8 + $0x4f0] sm:$0xf0] }
 0x1bd   :  { %v1860_v20 = vpop.f32.mrf.mxu2  ;;  %2135 = vmatpush.bf16.msra.mxu2 %v4644_v17  ;;  %v1878_v17 = vlaneseq }
 0x1be   :  { %v5664_v20 = vld [vmem:[%s8672_s6 + $0x54] sm:$0xf0]  ;;  %3287 = vmatpush.bf16.msra.mxu0 %v5036_v35 }
 0x1bf   :  { %v4640_v22 = vor.u32 %v5664_v20, %v4639_v19  ;;  %v5856_v19 = vld [vmem:[%s8674_s8 + $0x558] sm:$0xf0] }
 0x1c0   :  { %v5400_v24 = vor.u32 %v5856_v19, %v5399_v18  ;;  %v5839_v19 = vld [vmem:[%s8674_s8 + $0x4d4] sm:$0xf] }
 0x1c1   :  { %2122 = vmatpush.bf16.msra.mxu1 %v4640_v22  ;;  %2136 = vmatpush.bf16.msra.mxu2 %v4628_v33  ;;  %v5709_v22 = vld [vmem:[%s8674_s8 + $0xc0] sm:$0xf0]  ;;  %v1879_v33 = vand.u32 127, %v1878_v17  ;;  %v5776_v17 = vld [vmem:[%s8674_s8 + $0x2dc] sm:$0xf] }
 0x1c2   :  { %v4812_v30 = vor.u32 %v5709_v22, %v4811_v21  ;;  %v4900_v21 = vor.u32 %v5727_v12, %v4897_v13  ;;  %v4953_v12 = vld [vmem:[%s8674_s8 + $0x1dc] sm:$0xf0] }
 0x1c3   :  { %vm1880_vm1 = vcmp.lt.s32.totalorder %v1879_v33, 16  ;;  %v4844_v33 = vor.u32 %v5713_v28, %v4841_v29 }
 0x1c5   :  { %2123 = vmatpush.bf16.msra.mxu1 %v4624_v31  ;;  %2137 = vmatpush.bf16.msra.mxu2 %v4612_v46  ;;  %v4783_v31 = vld [vmem:[%s8674_s8 + $0x70] sm:$0xf]  ;;  %v1885_v46 = vld [vmem:[%s8667_s1] sm:$0xff] }
 0x1c6   :  { %v4784_v38 = vor.u32 %v5702_v32, %v4783_v31  ;;  %v5769_v31 = vld [vmem:[%s8674_s8 + $0x2a4] sm:$0xf]  ;;  %v5065_v32 = vld [vmem:[%s8674_s8 + $0x2bc] sm:$0xf0] }
 0x1c9   :  { %2124 = vmatpush.bf16.msra.mxu1 %v4608_v43  ;;  %3316 = vmatpush.bf16.msrb.mxu2 %v5400_v24  ;;  %v5008_v43 = vor.u32 %v5758_v36, %v5007_v34  ;;  %v4869_v24 = vld [vmem:[%s8674_s8 + $0x134] sm:$0xf0]  ;;  %v5068_v34 = vor.u32 %v5769_v31, %v5065_v32  ;;  %v5706_v36 = vld [vmem:[%s8674_s8 + $0xac] sm:$0xf] }
 0x1cb   :  { %3288 = vmatpush.bf16.msra.mxu0 %v5008_v43  ;;  %v5800_v43 = vld [vmem:[%s8674_s8 + $0x398] sm:$0xf0] }
 0x1cd   :  { %3296 = vmatpush.bf16.msrb.mxu1 %v5372_v10 }
 0x1cf   :  { %3289 = vmatpush.bf16.msra.mxu0 %v4980_v58 }
 0x1d1   :  { %3297 = vmatpush.bf16.msrb.mxu1 %v5344_v14 }
 0x1d5   :  { %3298 = vmatpush.bf16.msrb.mxu1 %v5316_v57  ;;  %v5317_v57 = vld [vmem:[%s8674_s8 + $0x4b4] sm:$0xf0] }
 0x1d6   :  { %v1871_v48 = vpop.f32.mrf.mxu0  ;;  %v5320_v35 = vor.u32 %v5832_v51, %v5317_v57  ;;  %v4931_v57 = vld [vmem:[%s8674_s8 + $0x190] sm:$0xf] }
 0x1d7   :  { %v7424_v49 = vadd.f32 %v1871_v48, %v1859_v47  ;;  %v4923_v47 = vld [vmem:[%s8674_s8 + $0x188] sm:$0xf]  ;;  %v5737_v48 = vld [vmem:[%s8674_s8 + $0x1a0] sm:$0xf0] }
 0x1d8   :  { %v4924_v52 = vor.u32 %v5737_v48, %v4923_v47  ;;  %v5260_v47 = vor.u32 %v5821_v40, %v5259_v39  ;;  %v5037_v40 = vld [vmem:[%s8674_s8 + $0x284] sm:$0xf0] }
 0x1d9   :  { %1875 = vst [vmem:[#allocation4] sm:$0xff] %v7424_v49  ;;  %1876 = vrot.lane.b32.xlu0 %v7424_v49, %s5946_s16  ;;  %3299 = vmatpush.bf16.msrb.mxu1 %v5288_v37  ;;  %v4813_v37 = vld [vmem:[%s8674_s8 + $0xc4] sm:$0xf0]  ;;  %s3681_s16 = sshll.u32 %s5948_s11, 4  ;;  %s3682_s16 = int_to_ptr.vmem [resolvable:$true] %s3681_s16 }
 0x1da   :  { %3270 = vmatpush.bf16.msra.mxu3 %v4924_v52  ;;  %v5231_v52 = vld [vmem:[%s8674_s8 + $0x3f0] sm:$0xf]  ;;  %v4816_v39 = vor.u32 %v5706_v36, %v4813_v37  ;;  %v4903_v37 = vld [vmem:[%s8674_s8 + $0x158] sm:$0xf] }
 0x1dd   :  { %3300 = vmatpush.bf16.msrb.mxu1 %v5260_v47  ;;  %v5699_v47 = vld [vmem:[%s8674_s8 + $0x74] sm:$0xf] }
 0x1de   :  { %v1873_v50 = vpop.f32.mrf.mxu0 }
 0x1df   :  { %v4895_v50 = vld [vmem:[%s8674_s8 + $0x150] sm:$0xf] }
 0x1e0   :  { %v4896_v61 = vor.u32 %v5730_v54, %v4895_v50  ;;  %v4756_v50 = vor.u32 %v5695_v42, %v4755_v41  ;;  %v5814_v54 = vld [vmem:[%s8674_s8 + $0x408] sm:$0xf0]  ;;  %v5175_v42 = vld [vmem:[%s8674_s8 + $0x380] sm:$0xf] }
 0x1e1   :  { %v5232_v2 = vor.u32 %v5814_v54, %v5231_v52  ;;  %v5176_v45 = vor.u32 %v5800_v43, %v5175_v42  ;;  %v5755_v54 = vld [vmem:[%s8674_s8 + $0x234] sm:$0xf]  ;;  %v5850_v42 = vld [vmem:[%s8674_s8 + $0x528] sm:$0xf0] }
 0x1e2   :  { %3271 = vmatpush.bf16.msra.mxu3 %v4896_v61  ;;  %v5688_v61 = vld [vmem:[%s8674_s8 + $0x18] sm:$0xf0] }
 0x1e3   :  { %v4728_v10 = vor.u32 %v5688_v61, %v4727_v60  ;;  %3301 = vmatpush.bf16.msrb.mxu1 %v5232_v2  ;;  %v5401_v60 = vld [vmem:[%s8674_s8 + $0x55c] sm:$0xf0]  ;;  %v4757_v2 = vld [vmem:[%s8674_s8 + $0x54] sm:$0xf0] }
 0x1e6   :  { %3272 = vmatpush.bf16.msra.mxu3 %v4868_v53  ;;  %v5744_v53 = vld [vmem:[%s8674_s8 + $0x1d8] sm:$0xf0] }
 0x1e7   :  { %v4952_v14 = vor.u32 %v5744_v53, %v4951_v4  ;;  %v4760_v4 = vor.u32 %v5692_v1, %v4757_v2  ;;  %v4981_v53 = vld [vmem:[%s8674_s8 + $0x214] sm:$0xf0]  ;;  %v5787_v1 = vld [vmem:[%s8674_s8 + $0x330] sm:$0xf0] }
 0x1e9   :  { %3290 = vmatpush.bf16.msra.mxu0 %v4952_v14  ;;  %v5804_v14 = vld [vmem:[%s8674_s8 + $0x3bc] sm:$0xf] }
 0x1ea   :  { %3273 = vmatpush.bf16.msra.mxu3 %v4840_v16  ;;  %v5121_v16 = vld [vmem:[%s8674_s8 + $0x32c] sm:$0xf0] }
 0x1eb   :  { %v5124_v22 = vor.u32 %v5783_v15, %v5121_v16  ;;  %v5205_v15 = vld [vmem:[%s8674_s8 + $0x3d4] sm:$0xf0] }
 0x1ec   :  { %v5208_v16 = vor.u32 %v5804_v14, %v5205_v15  ;;  %v4819_v15 = vld [vmem:[%s8674_s8 + $0xb0] sm:$0xf] }
 0x1ee   :  { %3274 = vmatpush.bf16.msra.mxu3 %v4812_v30 }
 0x1f2   :  { %3275 = vmatpush.bf16.msra.mxu3 %v4784_v38  ;;  %v5762_v38 = vld [vmem:[%s8674_s8 + $0x26c] sm:$0xf] }
 0x1f3   :  { %v5040_v41 = vor.u32 %v5762_v38, %v5037_v40  ;;  %v5731_v38 = vld [vmem:[%s8674_s8 + $0x170] sm:$0xf0] }
 0x1f6   :  { %3276 = vmatpush.bf16.msra.mxu3 %v4756_v50 }
 0x1fa   :  { %3277 = vmatpush.bf16.msra.mxu3 %v4728_v10  ;;  %v4729_v10 = vld [vmem:[%s8674_s8 + $0x1c] sm:$0xf0] }
 0x24b   :  { %v1877_v20 = vpop.permute.xlu0 %1876 }
 0x24c   :  { %v1881_v25 = vmul.f32 0.5, %v1877_v20  ;;  %v5345_v20 = vld [vmem:[%s8674_s8 + $0x4ec] sm:$0xf0] }
 0x24d   :  { %v5348_v26 = vor.u32 %v5839_v19, %v5345_v20  ;;  %v1921_v20 = vld [vmem:[%s8673_s7] sm:$0xf] }
 0x24e   :  { %v1882_v27 = vmul.f32 1.442695, %v1881_v25  ;;  %v5093_v25 = vld [vmem:[%s8674_s8 + $0x2f4] sm:$0xf0]  ;;  %v1923_v28 = vperm.slane %v1921_v20, 0  ;;  %v1926_v31 = vperm.slane %v1921_v20, 3 }
 0x24f   :  { %v5096_v30 = vor.u32 %v5776_v17, %v5093_v25  ;;  %v5407_v25 = vld [vmem:[%s8674_s8 + $0x548] sm:$0xf] }
 0x250   :  { %5864 = vpow2.f32 %v1882_v27  ;;  %v4872_v27 = vor.u32 %v5720_v23, %v4869_v24 }
 0x256   :  { %v5865_v48 = vpop.eup %5864 }
 0x257   :  { %v1884_v56 = vsel %vm1880_vm1, %v5865_v48, 0.0  ;;  %v4785_v48 = vld [vmem:[%s8674_s8 + $0x8c] sm:$0xf0] }
 0x258   :  { %v1886_v59 = vmul.f32 %v1885_v46, %v1884_v56  ;;  %v5289_v46 = vld [vmem:[%s8674_s8 + $0x47c] sm:$0xf0]  ;;  %v4788_v52 = vor.u32 %v5699_v47, %v4785_v48  ;;  %v5009_v56 = vld [vmem:[%s8674_s8 + $0x24c] sm:$0xf0] }
 0x259   :  { %v5292_v50 = vor.u32 %v5825_v44, %v5289_v46  ;;  %v5012_v58 = vor.u32 %v5755_v54, %v5009_v56  ;;  %v5794_v46 = vld [vmem:[%s8674_s8 + $0x368] sm:$0xf0]  ;;  %v4875_v56 = vld [vmem:[%s8674_s8 + $0x120] sm:$0xf] }
 0x25a   :  { %v1887_v3 = vadd.f32 %v1886_v59, %v7424_v49  ;;  %v5203_v49 = vld [vmem:[%s8674_s8 + $0x3b8] sm:$0xf]  ;;  %v5853_v59 = vld [vmem:[%s8674_s8 + $0x544] sm:$0xf] }
 0x25b   :  { %v5204_v18 = vor.u32 %v5807_v8, %v5203_v49  ;;  %v5404_v61 = vor.u32 %v5853_v59, %v5401_v60  ;;  %v5233_v49 = vld [vmem:[%s8674_s8 + $0x40c] sm:$0xf0] }
 0x25c   :  { %v1888_v9 = vpack.c.bf16 %v1887_v3, %v1887_v3  ;;  %v5748_v3 = vld [vmem:[%s8674_s8 + $0x1fc] sm:$0xf]  ;;  %v5236_v8 = vor.u32 %v5811_v6, %v5233_v49 }
 0x25d   :  { %3302 = vmatpush.bf16.msrb.mxu1 %v5204_v18  ;;  %v4984_v5 = vor.u32 %v5748_v3, %v4981_v53  ;;  %v5177_v18 = vld [vmem:[%s8674_s8 + $0x39c] sm:$0xf0]  ;;  %v4847_v53 = vld [vmem:[%s8674_s8 + $0xe8] sm:$0xf] }
 0x25e   :  { %2099 = vmatmul.bf16.vlgmr.msrb.gmra.mxu3 %v1888_v9  ;;  %2112 = vmatmul.bf16.vlgmr.msrb.gmra.mxu0 %v1888_v9 }
 0x25f   :  { %2125 = vmatmul.bf16.vlgmr.msra.gmra.mxu1 %v1888_v9  ;;  %2138 = vmatmul.bf16.vlgmr.msra.gmra.mxu2 %v1888_v9  ;;  %v5685_v9 = vld [vmem:[%s8674_s8 + $0x4] sm:$0xf] }
 0x260   :  { %3322 = vmatpush.bf16.msra.mxu2 %v4928_v11  ;;  %3335 = vmatpush.bf16.msrb.mxu3 %v5152_v55  ;;  %v4732_v11 = vor.u32 %v5685_v9, %v4729_v10  ;;  %v5741_v55 = vld [vmem:[%s8674_s8 + $0x1c4] sm:$0xf]  ;;  %v5836_v9 = vld [vmem:[%s8674_s8 + $0x4b8] sm:$0xf0]  ;;  %v5099_v10 = vld [vmem:[%s8674_s8 + $0x2e0] sm:$0xf] }
 0x261   :  { %3348 = vmatpush.bf16.msrb.mxu0 %v5376_v7  ;;  %3303 = vmatpush.bf16.msrb.mxu1 %v5176_v45  ;;  %v4956_v13 = vor.u32 %v5741_v55, %v4953_v12  ;;  %v5797_v7 = vld [vmem:[%s8674_s8 + $0x384] sm:$0xf]  ;;  %v5155_v45 = vld [vmem:[%s8674_s8 + $0x350] sm:$0xf]  ;;  %v5735_v12 = vld [vmem:[%s8674_s8 + $0x194] sm:$0xf] }
 0x262   :  { %v5180_v19 = vor.u32 %v5797_v7, %v5177_v18  ;;  %v5156_v60 = vor.u32 %v5794_v46, %v5155_v45  ;;  %v5295_v18 = vld [vmem:[%s8674_s8 + $0x468] sm:$0xf]  ;;  %v5759_v45 = vld [vmem:[%s8674_s8 + $0x250] sm:$0xf0] }
 0x264   :  { %3323 = vmatpush.bf16.msra.mxu2 %v4900_v21  ;;  %3336 = vmatpush.bf16.msrb.mxu3 %v5124_v22  ;;  %v1924_v21 = vperm.slane %v1921_v20, 1  ;;  %v1925_v22 = vperm.slane %v1921_v20, 2 }
 0x265   :  { %3349 = vmatpush.bf16.msrb.mxu0 %v5348_v26  ;;  %3368 = vmatpush.bf16.msra.mxu1 %v5404_v61  ;;  %v5857_v26 = vld [vmem:[%s8674_s8 + $0x560] sm:$0xf0]  ;;  %v5351_v61 = vld [vmem:[%s8674_s8 + $0x4d8] sm:$0xf] }
 0x266   :  { %v5408_v32 = vor.u32 %v5857_v26, %v5407_v25  ;;  %v4791_v26 = vld [vmem:[%s8674_s8 + $0x78] sm:$0xf] }
 0x268   :  { %3324 = vmatpush.bf16.msra.mxu2 %v4872_v27  ;;  %3337 = vmatpush.bf16.msrb.mxu3 %v5096_v30  ;;  %v5738_v27 = vld [vmem:[%s8674_s8 + $0x1a8] sm:$0xf0] }
 0x269   :  { %3350 = vmatpush.bf16.msrb.mxu0 %v5320_v35 }
 0x26c   :  { %3325 = vmatpush.bf16.msra.mxu2 %v4844_v33  ;;  %3338 = vmatpush.bf16.msrb.mxu3 %v5068_v34  ;;  %v4932_v33 = vor.u32 %v5738_v27, %v4931_v57  ;;  %v5267_v27 = vld [vmem:[%s8674_s8 + $0x430] sm:$0xf] }
 0x26d   :  { %3351 = vmatpush.bf16.msrb.mxu0 %v5292_v50  ;;  %v4904_v50 = vor.u32 %v5731_v38, %v4903_v37  ;;  %v4763_v38 = vld [vmem:[%s8674_s8 + $0x40] sm:$0xf] }
 0x270   :  { %3326 = vmatpush.bf16.msra.mxu2 %v4816_v39  ;;  %3339 = vmatpush.bf16.msrb.mxu3 %v5040_v41  ;;  %v5379_v41 = vld [vmem:[%s8674_s8 + $0x510] sm:$0xf] }
 0x271   :  { %3352 = vmatpush.bf16.msrb.mxu0 %v5264_v0  ;;  %v5380_v54 = vor.u32 %v5850_v42, %v5379_v41  ;;  %v5127_v0 = vld [vmem:[%s8674_s8 + $0x318] sm:$0xf]  ;;  %v5815_v42 = vld [vmem:[%s8674_s8 + $0x410] sm:$0xf0] }
 0x272   :  { %v5128_v49 = vor.u32 %v5787_v1, %v5127_v0  ;;  %v5239_v41 = vld [vmem:[%s8674_s8 + $0x3f8] sm:$0xf]  ;;  %v4987_v1 = vld [vmem:[%s8674_s8 + $0x200] sm:$0xf] }
 0x274   :  { %3327 = vmatpush.bf16.msra.mxu2 %v4788_v52  ;;  %3340 = vmatpush.bf16.msrb.mxu3 %v5012_v58  ;;  %v5724_v58 = vld [vmem:[%s8674_s8 + $0x138] sm:$0xf0] }
 0x275   :  { %3353 = vmatpush.bf16.msrb.mxu0 %v5236_v8  ;;  %v4876_v2 = vor.u32 %v5724_v58, %v4875_v56  ;;  %v5323_v8 = vld [vmem:[%s8674_s8 + $0x4a0] sm:$0xf]  ;;  %v5791_v56 = vld [vmem:[%s8674_s8 + $0x354] sm:$0xf] }
 0x276   :  { %v5324_v14 = vor.u32 %v5836_v9, %v5323_v8  ;;  %v5129_v8 = vld [vmem:[%s8674_s8 + $0x334] sm:$0xf0]  ;;  %v4959_v9 = vld [vmem:[%s8674_s8 + $0x1c8] sm:$0xf] }
 0x278   :  { %3328 = vmatpush.bf16.msra.mxu2 %v4760_v4  ;;  %3341 = vmatpush.bf16.msrb.mxu3 %v4984_v5  ;;  %v5352_v4 = vor.u32 %v5843_v62, %v5351_v61  ;;  %v5717_v5 = vld [vmem:[%s8674_s8 + $0x100] sm:$0xf0]  ;;  %v5211_v61 = vld [vmem:[%s8674_s8 + $0x3c0] sm:$0xf]  ;;  %v5808_v62 = vld [vmem:[%s8674_s8 + $0x3d8] sm:$0xf0] }
 0x279   :  { %3354 = vmatpush.bf16.msrb.mxu0 %v5208_v16  ;;  %v4848_v55 = vor.u32 %v5717_v5, %v4847_v53  ;;  %v5710_v16 = vld [vmem:[%s8674_s8 + $0xc8] sm:$0xf0]  ;;  %v4821_v53 = vld [vmem:[%s8674_s8 + $0xcc] sm:$0xf0] }
 0x27c   :  { %3329 = vmatpush.bf16.msra.mxu2 %v4732_v11  ;;  %3342 = vmatpush.bf16.msrb.mxu3 %v4956_v13  ;;  %v5780_v11 = vld [vmem:[%s8674_s8 + $0x2f8] sm:$0xf0]  ;;  %v4933_v13 = vld [vmem:[%s8674_s8 + $0x1ac] sm:$0xf0] }
 0x27d   :  { %3355 = vmatpush.bf16.msrb.mxu0 %v5180_v19  ;;  %v5100_v7 = vor.u32 %v5780_v11, %v5099_v10  ;;  %v5829_v19 = vld [vmem:[%s8674_s8 + $0x480] sm:$0xf0]  ;;  %v4936_v20 = vor.u32 %v5735_v12, %v4933_v13 }
 0x27e   :  { %v5296_v25 = vor.u32 %v5829_v19, %v5295_v18  ;;  %v5745_v11 = vld [vmem:[%s8674_s8 + $0x1e0] sm:$0xf0]  ;;  %v5700_v18 = vld [vmem:[%s8674_s8 + $0x7c] sm:$0xf]  ;;  %v4793_v19 = vld [vmem:[%s8674_s8 + $0x94] sm:$0xf0] }
 0x27f   :  { %v5801_v12 = vld [vmem:[%s8674_s8 + $0x3a0] sm:$0xf0] }
 0x2db   :  { %v2113_v23 = vpop.f32.mrf.mxu0 }
 0x2dc   :  { %v2114_v24 = vadd.f32 %v2113_v23, %v1924_v21  ;;  %v2126_v17 = vpop.f32.mrf.mxu1  ;;  %v5071_v21 = vld [vmem:[%s8674_s8 + $0x2a8] sm:$0xf]  ;;  %v4820_v23 = vor.u32 %v5710_v16, %v4819_v15  ;;  %v5854_v15 = vld [vmem:[%s8674_s8 + $0x54c] sm:$0xf] }
 0x2dd   :  { %v2127_v51 = vadd.f32 %v2126_v17, %v1925_v22  ;;  %v5773_v22 = vld [vmem:[%s8674_s8 + $0x2c0] sm:$0xf0]  ;;  %v4905_v17 = vld [vmem:[%s8674_s8 + $0x174] sm:$0xf0]  ;;  %v5409_v16 = vld [vmem:[%s8674_s8 + $0x564] sm:$0xf0] }
 0x2de   :  { %v2144_v30 = vmax.f32 %v2114_v24, 0.0  ;;  %v5728_v24 = vld [vmem:[%s8674_s8 + $0x15c] sm:$0xf]  ;;  %v5072_v57 = vor.u32 %v5773_v22, %v5071_v21  ;;  %v4960_v22 = vor.u32 %v5745_v11, %v4959_v9  ;;  %v5269_v11 = vld [vmem:[%s8674_s8 + $0x44c] sm:$0xf0] }
 0x2df   :  { %v2145_v29 = vmax.f32 %v2127_v51, 0.0  ;;  %v5703_v51 = vld [vmem:[%s8674_s8 + $0x90] sm:$0xf0] }
 0x2e0   :  { %v7867_v35 = vpack.c.bf16 %v2144_v30, %v2144_v30  ;;  %v5822_v30 = vld [vmem:[%s8674_s8 + $0x448] sm:$0xf0] }
 0x2e1   :  { %v7869_v34 = vpack.c.bf16 %v2145_v29, %v2145_v29  ;;  %v2100_v36 = vpop.f32.mrf.mxu3  ;;  %v5043_v29 = vld [vmem:[%s8674_s8 + $0x270] sm:$0xf]  ;;  %v5268_v37 = vor.u32 %v5822_v30, %v5267_v27  ;;  %v5840_v27 = vld [vmem:[%s8674_s8 + $0x4dc] sm:$0xf]  ;;  %v5353_v30 = vld [vmem:[%s8674_s8 + $0x4f4] sm:$0xf0] }
 0x2e2   :  { %v2101_v39 = vadd.f32 %v2100_v36, %v1923_v28  ;;  %v2139_v40 = vpop.f32.mrf.mxu2  ;;  %3291 = vmatmul.bf16.vlgmr.msra.gmra.mxu0 %v7867_v35  ;;  %v4908_v28 = vor.u32 %v5728_v24, %v4905_v17  ;;  %v4877_v36 = vld [vmem:[%s8674_s8 + $0x13c] sm:$0xf0]  ;;  %v5412_v17 = vor.u32 %v5854_v15, %v5409_v16  ;;  %v5749_v15 = vld [vmem:[%s8674_s8 + $0x204] sm:$0xf] }
 0x2e3   :  { %v2140_v43 = vadd.f32 %v2139_v40, %v1926_v31  ;;  %3304 = vmatmul.bf16.vlgmr.msrb.gmra.mxu1 %v7869_v34  ;;  %v2115_v44 = vpop.f32.mrf.mxu0  ;;  %3420 = vmatpush.bf16.msra.mxu0 %v5408_v32  ;;  %v5766_v31 = vld [vmem:[%s8674_s8 + $0x288] sm:$0xf0]  ;;  %v4792_v32 = vor.u32 %v5703_v51, %v4791_v26  ;;  %v5101_v24 = vld [vmem:[%s8674_s8 + $0x2fc] sm:$0xf0]  ;;  %v4796_v26 = vor.u32 %v5700_v18, %v4793_v19  ;;  %v4939_v51 = vld [vmem:[%s8674_s8 + $0x198] sm:$0xf] }
 0x2e4   :  { %v2143_v47 = vmax.f32 %v2101_v39, 0.0  ;;  %3374 = vmatpush.bf16.msrb.mxu1 %v4932_v33  ;;  %v2128_v48 = vpop.f32.mrf.mxu1  ;;  %v5721_v33 = vld [vmem:[%s8674_s8 + $0x124] sm:$0xf]  ;;  %v5696_v39 = vld [vmem:[%s8674_s8 + $0x58] sm:$0xf0]  ;;  %v5044_v40 = vor.u32 %v5766_v31, %v5043_v29 }
 0x2e5   :  { %v2146_v52 = vmax.f32 %v2140_v43, 0.0  ;;  %v4880_v43 = vor.u32 %v5721_v33, %v4877_v36  ;;  %v5015_v44 = vld [vmem:[%s8674_s8 + $0x238] sm:$0xf]  ;;  %v4764_v46 = vor.u32 %v5696_v39, %v4763_v38  ;;  %v4849_v48 = vld [vmem:[%s8674_s8 + $0x104] sm:$0xf0] }
 0x2e6   :  { %v7897_v59 = vpack.c.bf16 %v2143_v47, %v2143_v47  ;;  %v5714_v47 = vld [vmem:[%s8674_s8 + $0xec] sm:$0xf]  ;;  %v5016_v58 = vor.u32 %v5759_v45, %v5015_v44  ;;  %v4765_v29 = vld [vmem:[%s8674_s8 + $0x5c] sm:$0xf0]  ;;  %v5073_v36 = vld [vmem:[%s8674_s8 + $0x2c4] sm:$0xf0] }
 0x2e7   :  { %v7905_v63 = vpack.c.bf16 %v2146_v52, %v2146_v52  ;;  %v4735_v52 = vld [vmem:[%s8674_s8 + $0x8] sm:$0xf]  ;;  %v4852_v0 = vor.u32 %v5714_v47, %v4849_v48  ;;  %v5770_v33 = vld [vmem:[%s8674_s8 + $0x2ac] sm:$0xf]  ;;  %v4911_v39 = vld [vmem:[%s8674_s8 + $0x160] sm:$0xf] }
 0x2e8   :  { %3375 = vmatpush.bf16.msrb.mxu1 %v4904_v50  ;;  %3278 = vmatmul.bf16.vlgmr.msra.gmra.mxu3 %v7897_v59  ;;  %v5240_v50 = vor.u32 %v5815_v42, %v5239_v41  ;;  %v5833_v41 = vld [vmem:[%s8674_s8 + $0x4a4] sm:$0xf]  ;;  %v5325_v42 = vld [vmem:[%s8674_s8 + $0x4bc] sm:$0xf0]  ;;  %v4737_v44 = vld [vmem:[%s8674_s8 + $0x24] sm:$0xf0]  ;;  %v5076_v45 = vor.u32 %v5770_v33, %v5073_v36 }
 0x2e9   :  { %5425 = vmatmul.msk.bf16.vlgmr.msrb.gmra.mxu2 %vm1240_vm0, %v7905_v63  ;;  %3400 = vmatpush.bf16.msra.mxu3 %v5380_v54  ;;  %v2102_v3 = vpop.f32.mrf.mxu3  ;;  %v5689_v54 = vld [vmem:[%s8674_s8 + $0x20] sm:$0xf0]  ;;  %v5795_v47 = vld [vmem:[%s8674_s8 + $0x370] sm:$0xf0]  ;;  %v4989_v16 = vld [vmem:[%s8674_s8 + $0x21c] sm:$0xf0] }
 0x2ea   :  { %3387 = vmatpush.bf16.msrb.mxu2 %v5156_v60  ;;  %v2141_v6 = vpop.f32.mrf.mxu2  ;;  %v5157_v60 = vld [vmem:[%s8674_s8 + $0x36c] sm:$0xf0]  ;;  %v4736_v3 = vor.u32 %v5689_v54, %v4735_v52  ;;  %v5328_v54 = vor.u32 %v5833_v41, %v5325_v42  ;;  %v4827_v18 = vld [vmem:[%s8674_s8 + $0xb8] sm:$0xf]  ;;  %v5711_v19 = vld [vmem:[%s8674_s8 + $0xd0] sm:$0xf0] }
 0x2eb   :  { %v5160_v5 = vor.u32 %v5791_v56, %v5157_v60  ;;  %v5212_v6 = vor.u32 %v5808_v62, %v5211_v61  ;;  %v5045_v52 = vld [vmem:[%s8674_s8 + $0x28c] sm:$0xf0]  ;;  %v5725_v60 = vld [vmem:[%s8674_s8 + $0x140] sm:$0xf0]  ;;  %v5826_v62 = vld [vmem:[%s8674_s8 + $0x46c] sm:$0xf] }
 0x2ec   :  { %3376 = vmatpush.bf16.msrb.mxu1 %v4876_v2  ;;  %v5752_v2 = vld [vmem:[%s8674_s8 + $0x218] sm:$0xf0]  ;;  %v5213_v33 = vld [vmem:[%s8674_s8 + $0x3dc] sm:$0xf0]  ;;  %v4771_v41 = vld [vmem:[%s8674_s8 + $0x48] sm:$0xf] }
 0x2ed   :  { %3401 = vmatpush.bf16.msra.mxu3 %v5352_v4  ;;  %v5707_v4 = vld [vmem:[%s8674_s8 + $0xb4] sm:$0xf]  ;;  %v4988_v10 = vor.u32 %v5752_v2, %v4987_v1  ;;  %v5135_v2 = vld [vmem:[%s8674_s8 + $0x320] sm:$0xf] }
 0x2ee   :  { %3388 = vmatpush.bf16.msrb.mxu2 %v5128_v49  ;;  %v5784_v49 = vld [vmem:[%s8674_s8 + $0x31c] sm:$0xf]  ;;  %v4824_v13 = vor.u32 %v5707_v4, %v4821_v53 }
 0x2ef   :  { %v5756_v53 = vld [vmem:[%s8674_s8 + $0x23c] sm:$0xf] }
 0x2f0   :  { %3377 = vmatpush.bf16.msrb.mxu1 %v4848_v55  ;;  %v5183_v55 = vld [vmem:[%s8674_s8 + $0x388] sm:$0xf] }
 0x2f1   :  { %3402 = vmatpush.bf16.msra.mxu3 %v5324_v14  ;;  %v5847_v14 = vld [vmem:[%s8674_s8 + $0x514] sm:$0xf]  ;;  %v5184_v21 = vor.u32 %v5801_v12, %v5183_v55  ;;  %v5107_v12 = vld [vmem:[%s8674_s8 + $0x2e8] sm:$0xf] }
 0x2f2   :  { %3389 = vmatpush.bf16.msrb.mxu2 %v5100_v7  ;;  %3356 = vmatmul.bf16.vlgmr.msrb.gmra.mxu0 %v7869_v34  ;;  %v5381_v7 = vld [vmem:[%s8674_s8 + $0x52c] sm:$0xf0] }
 0x2f3   :  { %5426 = vmatmul.msk.bf16.vlgmr.msra.gmra.mxu1 %vm1240_vm0, %v7905_v63  ;;  %3426 = vmatpush.bf16.msrb.mxu0 %v4936_v20  ;;  %v5132_v20 = vor.u32 %v5784_v49, %v5129_v8  ;;  %v4855_v49 = vld [vmem:[%s8674_s8 + $0xf0] sm:$0xf]  ;;  %v5718_v8 = vld [vmem:[%s8674_s8 + $0x108] sm:$0xf0] }
 0x2f4   :  { %3378 = vmatpush.bf16.msrb.mxu1 %v4820_v23  ;;  %v5777_v23 = vld [vmem:[%s8674_s8 + $0x2e4] sm:$0xf] }
 0x2f5   :  { %3403 = vmatpush.bf16.msra.mxu3 %v5296_v25  ;;  %v5384_v25 = vor.u32 %v5847_v14, %v5381_v7  ;;  %v5104_v31 = vor.u32 %v5777_v23, %v5101_v24  ;;  %v4856_v14 = vor.u32 %v5718_v8, %v4855_v49  ;;  %v4992_v23 = vor.u32 %v5749_v15, %v4989_v16  ;;  %v5079_v24 = vld [vmem:[%s8674_s8 + $0x2b0] sm:$0xf]  ;;  %v5165_v49 = vld [vmem:[%s8674_s8 + $0x374] sm:$0xf0]  ;;  %v4995_v8 = vld [vmem:[%s8674_s8 + $0x208] sm:$0xf] }
 0x2f6   :  { %3390 = vmatpush.bf16.msrb.mxu2 %v5072_v57  ;;  %v5739_v57 = vld [vmem:[%s8674_s8 + $0x1b0] sm:$0xf0]  ;;  %v5729_v16 = vld [vmem:[%s8674_s8 + $0x164] sm:$0xf] }
 0x2f7   :  { %3427 = vmatpush.bf16.msrb.mxu0 %v4908_v28  ;;  %v5693_v28 = vld [vmem:[%s8674_s8 + $0x44] sm:$0xf] }
 0x2f8   :  { %3379 = vmatpush.bf16.msrb.mxu1 %v4792_v32  ;;  %3343 = vmatmul.bf16.vlgmr.msrb.gmra.mxu3 %v7867_v35  ;;  %v4940_v32 = vor.u32 %v5739_v57, %v4939_v51  ;;  %v4768_v38 = vor.u32 %v5693_v28, %v4765_v29  ;;  %v4961_v51 = vld [vmem:[%s8674_s8 + $0x1e4] sm:$0xf0]  ;;  %v4799_v57 = vld [vmem:[%s8674_s8 + $0x80] sm:$0xf]  ;;  %v5387_v28 = vld [vmem:[%s8674_s8 + $0x518] sm:$0xf] }
 0x2f9   :  { %3330 = vmatmul.bf16.vlgmr.msra.gmra.mxu2 %v7897_v59  ;;  %3404 = vmatpush.bf16.msra.mxu3 %v5268_v37  ;;  %v5356_v37 = vor.u32 %v5840_v27, %v5353_v30  ;;  %v5704_v30 = vld [vmem:[%s8674_s8 + $0x98] sm:$0xf0]  ;;  %v5851_v29 = vld [vmem:[%s8674_s8 + $0x530] sm:$0xf0] }
 0x2fa   :  { %3391 = vmatpush.bf16.msrb.mxu2 %v5044_v40  ;;  %v5732_v40 = vld [vmem:[%s8674_s8 + $0x178] sm:$0xf0] }
 0x2fb   :  { %3428 = vmatpush.bf16.msrb.mxu0 %v4880_v43  ;;  %v5686_v43 = vld [vmem:[%s8674_s8 + $0xc] sm:$0xf]  ;;  %v4912_v48 = vor.u32 %v5732_v40, %v4911_v39  ;;  %v4800_v39 = vor.u32 %v5704_v30, %v4799_v57  ;;  %v5388_v40 = vor.u32 %v5851_v29, %v5387_v28  ;;  %v5823_v57 = vld [vmem:[%s8674_s8 + $0x450] sm:$0xf0]  ;;  %v4885_v30 = vld [vmem:[%s8674_s8 + $0x144] sm:$0xf0] }
 0x2fc   :  { %3380 = vmatpush.bf16.msrb.mxu1 %v4764_v46  ;;  %v5163_v46 = vld [vmem:[%s8674_s8 + $0x358] sm:$0xf]  ;;  %v4740_v56 = vor.u32 %v5686_v43, %v4737_v44  ;;  %v5697_v43 = vld [vmem:[%s8674_s8 + $0x60] sm:$0xf0]  ;;  %v5359_v44 = vld [vmem:[%s8674_s8 + $0x4e0] sm:$0xf] }
 0x2fd   :  { %3405 = vmatpush.bf16.msra.mxu3 %v5240_v50  ;;  %v5763_v50 = vld [vmem:[%s8674_s8 + $0x274] sm:$0xf]  ;;  %v5164_v61 = vor.u32 %v5795_v47, %v5163_v46  ;;  %v5798_v47 = vld [vmem:[%s8674_s8 + $0x38c] sm:$0xf] }
 0x2fe   :  { %3392 = vmatpush.bf16.msrb.mxu2 %v5016_v58  ;;  %v4883_v58 = vld [vmem:[%s8674_s8 + $0x128] sm:$0xf]  ;;  %v5048_v1 = vor.u32 %v5763_v50, %v5045_v52  ;;  %v5023_v50 = vld [vmem:[%s8674_s8 + $0x240] sm:$0xf]  ;;  %v5760_v52 = vld [vmem:[%s8674_s8 + $0x258] sm:$0xf0] }
 0x2ff   :  { %3429 = vmatpush.bf16.msrb.mxu0 %v4852_v0  ;;  %v5297_v0 = vld [vmem:[%s8674_s8 + $0x484] sm:$0xf0]  ;;  %v4884_v4 = vor.u32 %v5725_v60, %v4883_v58  ;;  %v4772_v58 = vor.u32 %v5697_v43, %v4771_v41  ;;  %v5778_v29 = vld [vmem:[%s8674_s8 + $0x2ec] sm:$0xf]  ;;  %v5715_v41 = vld [vmem:[%s8674_s8 + $0xf4] sm:$0xf] }
 0x300   :  { %3381 = vmatpush.bf16.msrb.mxu1 %v4736_v3  ;;  %v5788_v3 = vld [vmem:[%s8674_s8 + $0x338] sm:$0xf0] }
 0x301   :  { %3406 = vmatpush.bf16.msra.mxu3 %v5212_v6  ;;  %v5300_v6 = vor.u32 %v5826_v62, %v5297_v0  ;;  %v5136_v9 = vor.u32 %v5788_v3, %v5135_v2  ;;  %v5690_v0 = vld [vmem:[%s8674_s8 + $0x28] sm:$0xf0]  ;;  %v5837_v2 = vld [vmem:[%s8674_s8 + $0x4c0] sm:$0xf0]  ;;  %v5024_v3 = vor.u32 %v5760_v52, %v5023_v50  ;;  %v5219_v52 = vld [vmem:[%s8674_s8 + $0x3c8] sm:$0xf] }
 0x302   :  { %3393 = vmatpush.bf16.msrb.mxu2 %v4988_v10  ;;  %5427 = vmatmul.msk.bf16.vlgmr.msra.gmra.mxu0 %vm1240_vm0, %v7905_v63  ;;  %v5819_v10 = vld [vmem:[%s8674_s8 + $0x434] sm:$0xf] }
 0x303   :  { %3382 = vmatmul.bf16.vlgmr.msrb.gmra.mxu1 %v7897_v59  ;;  %3430 = vmatpush.bf16.msrb.mxu0 %v4824_v13  ;;  %v5781_v13 = vld [vmem:[%s8674_s8 + $0x300] sm:$0xf0]  ;;  %v5272_v7 = vor.u32 %v5819_v10, %v5269_v11 }
 0x304   :  { %3439 = vmatpush.bf16.msra.mxu1 %v5160_v5  ;;  %v5017_v5 = vld [vmem:[%s8674_s8 + $0x254] sm:$0xf0] }
 0x305   :  { %3407 = vmatpush.bf16.msra.mxu3 %v5184_v21  ;;  %v5020_v55 = vor.u32 %v5756_v53, %v5017_v5  ;;  %v5812_v21 = vld [vmem:[%s8674_s8 + $0x3fc] sm:$0xf]  ;;  %v4941_v5 = vld [vmem:[%s8674_s8 + $0x1b4] sm:$0xf0] }
 0x306   :  { %3394 = vmatpush.bf16.msrb.mxu2 %v4960_v22  ;;  %v5241_v22 = vld [vmem:[%s8674_s8 + $0x414] sm:$0xf0]  ;;  %v5736_v53 = vld [vmem:[%s8674_s8 + $0x19c] sm:$0xf] }
 0x307   :  { %3431 = vmatpush.bf16.msrb.mxu0 %v4796_v26  ;;  %v5742_v26 = vld [vmem:[%s8674_s8 + $0x1cc] sm:$0xf]  ;;  %v5244_v27 = vor.u32 %v5812_v21, %v5241_v22  ;;  %v5848_v22 = vld [vmem:[%s8674_s8 + $0x51c] sm:$0xf] }
 0x308   :  { %3440 = vmatpush.bf16.msra.mxu1 %v5132_v20  ;;  %3408 = vmatmul.bf16.vlgmr.msra.gmra.mxu3 %v7869_v34  ;;  %v5108_v20 = vor.u32 %v5781_v13, %v5107_v12  ;;  %v4964_v36 = vor.u32 %v5742_v26, %v4961_v51  ;;  %v5303_v12 = vld [vmem:[%s8674_s8 + $0x470] sm:$0xf]  ;;  %v5830_v13 = vld [vmem:[%s8674_s8 + $0x488] sm:$0xf0] }
 0x309   :  { %3472 = vmatpush.bf16.msrb.mxu3 %v5412_v17  ;;  %3395 = vmatmul.bf16.vlgmr.msrb.gmra.mxu2 %v7867_v35  ;;  %v5774_v17 = vld [vmem:[%s8674_s8 + $0x2c8] sm:$0xf0] }
 0x30a   :  { %3452 = vmatpush.bf16.msra.mxu2 %v5384_v25  ;;  %v4828_v25 = vor.u32 %v5711_v19, %v4827_v18  ;;  %v5785_v18 = vld [vmem:[%s8674_s8 + $0x324] sm:$0xf]  ;;  %v5137_v19 = vld [vmem:[%s8674_s8 + $0x33c] sm:$0xf0]  ;;  %v5746_v21 = vld [vmem:[%s8674_s8 + $0x1e8] sm:$0xf0] }
 0x30b   :  { %3432 = vmatpush.bf16.msrb.mxu0 %v4768_v38  ;;  %v5767_v38 = vld [vmem:[%s8674_s8 + $0x290] sm:$0xf0]  ;;  %v5140_v26 = vor.u32 %v5785_v18, %v5137_v19 }
 0x30c   :  { %3441 = vmatpush.bf16.msra.mxu1 %v5104_v31  ;;  %v5080_v31 = vor.u32 %v5774_v17, %v5079_v24  ;;  %v5304_v24 = vor.u32 %v5830_v13, %v5303_v12  ;;  %v5417_v12 = vld [vmem:[%s8674_s8 + $0x56c] sm:$0xf0]  ;;  %v5820_v13 = vld [vmem:[%s8674_s8 + $0x43c] sm:$0xf] }
 0x30d   :  { %3478 = vmatpush.bf16.msra.mxu3 %v4940_v32  ;;  %v5805_v32 = vld [vmem:[%s8674_s8 + $0x3c4] sm:$0xf] }
 0x30e   :  { %3453 = vmatpush.bf16.msra.mxu2 %v5356_v37  ;;  %v5051_v37 = vld [vmem:[%s8674_s8 + $0x278] sm:$0xf]  ;;  %v5216_v42 = vor.u32 %v5805_v32, %v5213_v33  ;;  %v5841_v32 = vld [vmem:[%s8674_s8 + $0x4e4] sm:$0xf]  ;;  %v5361_v33 = vld [vmem:[%s8674_s8 + $0x4fc] sm:$0xf0] }
 0x30f   :  { %3433 = vmatpush.bf16.msrb.mxu0 %v4740_v56  ;;  %v5052_v46 = vor.u32 %v5767_v38, %v5051_v37  ;;  %v5858_v56 = vld [vmem:[%s8674_s8 + $0x568] sm:$0xf0]  ;;  %v5247_v38 = vld [vmem:[%s8674_s8 + $0x400] sm:$0xf]  ;;  %v5364_v43 = vor.u32 %v5841_v32, %v5361_v33  ;;  %v5743_v32 = vld [vmem:[%s8674_s8 + $0x1d4] sm:$0xf] }
 0x310   :  { %3442 = vmatpush.bf16.msra.mxu1 %v5076_v45  ;;  %v5844_v45 = vld [vmem:[%s8674_s8 + $0x4f8] sm:$0xf0]  ;;  %v4969_v33 = vld [vmem:[%s8674_s8 + $0x1ec] sm:$0xf0] }
 0x311   :  { %3479 = vmatpush.bf16.msra.mxu3 %v4912_v48  ;;  %v5185_v48 = vld [vmem:[%s8674_s8 + $0x3a4] sm:$0xf0]  ;;  %v5360_v60 = vor.u32 %v5844_v45, %v5359_v44  ;;  %v5771_v44 = vld [vmem:[%s8674_s8 + $0x2b4] sm:$0xf]  ;;  %v5081_v45 = vld [vmem:[%s8674_s8 + $0x2cc] sm:$0xf0] }
 0x312   :  { %3454 = vmatpush.bf16.msra.mxu2 %v5328_v54  ;;  %3434 = vmatmul.bf16.vlgmr.msrb.gmra.mxu0 %v7897_v59  ;;  %v5415_v54 = vld [vmem:[%s8674_s8 + $0x550] sm:$0xf]  ;;  %v5188_v62 = vor.u32 %v5798_v47, %v5185_v48  ;;  %v5333_v47 = vld [vmem:[%s8674_s8 + $0x4c4] sm:$0xf0] }
 0x313   :  { %3491 = vmatpush.bf16.msra.mxu0 %v5164_v61  ;;  %v4743_v61 = vld [vmem:[%s8674_s8 + $0x10] sm:$0xf] }
 0x314   :  { %3443 = vmatpush.bf16.msra.mxu1 %v5048_v1  ;;  %v5331_v1 = vld [vmem:[%s8674_s8 + $0x4a8] sm:$0xf]  ;;  %v4744_v10 = vor.u32 %v5690_v0, %v4743_v61  ;;  %v5053_v0 = vld [vmem:[%s8674_s8 + $0x294] sm:$0xf0] }
 0x315   :  { %3480 = vmatpush.bf16.msra.mxu3 %v4884_v4  ;;  %v5416_v4 = vor.u32 %v5858_v56, %v5415_v54  ;;  %v5332_v11 = vor.u32 %v5837_v2, %v5331_v1  ;;  %v5084_v54 = vor.u32 %v5771_v44, %v5081_v45  ;;  %v5809_v56 = vld [vmem:[%s8674_s8 + $0x3e0] sm:$0xf0]  ;;  %v5827_v1 = vld [vmem:[%s8674_s8 + $0x474] sm:$0xf]  ;;  %v5305_v2 = vld [vmem:[%s8674_s8 + $0x48c] sm:$0xf0]  ;;  %v4972_v45 = vor.u32 %v5743_v32, %v4969_v33 }
 0x316   :  { %3455 = vmatpush.bf16.msra.mxu2 %v5300_v6  ;;  %v5792_v6 = vld [vmem:[%s8674_s8 + $0x35c] sm:$0xf]  ;;  %v5761_v32 = vld [vmem:[%s8674_s8 + $0x260] sm:$0xf0]  ;;  %v5255_v33 = vld [vmem:[%s8674_s8 + $0x408] sm:$0xf] }
 0x317   :  { %3492 = vmatpush.bf16.msra.mxu0 %v5136_v9  ;;  %v5753_v9 = vld [vmem:[%s8674_s8 + $0x220] sm:$0xf0] }
 0x318   :  { %3444 = vmatpush.bf16.msra.mxu1 %v5020_v55  ;;  %5428 = vmatmul.msk.bf16.vlgmr.msrb.gmra.mxu3 %vm1240_vm0, %v7905_v63  ;;  %v4944_v55 = vor.u32 %v5736_v53, %v4941_v5  ;;  %v4996_v15 = vor.u32 %v5753_v9, %v4995_v8  ;;  %v5191_v53 = vld [vmem:[%s8674_s8 + $0x390] sm:$0xf]  ;;  %v5802_v5 = vld [vmem:[%s8674_s8 + $0x3a8] sm:$0xf0]  ;;  %v4801_v8 = vld [vmem:[%s8674_s8 + $0x9c] sm:$0xf0] }
 0x319   :  { %3481 = vmatpush.bf16.msra.mxu3 %v4856_v14  ;;  %v5168_v14 = vor.u32 %v5792_v6, %v5165_v49  ;;  %v5701_v49 = vld [vmem:[%s8674_s8 + $0x84] sm:$0xf] }
 0x31a   :  { %3456 = vmatpush.bf16.msra.mxu2 %v5272_v7  ;;  %v4913_v7 = vld [vmem:[%s8674_s8 + $0x17c] sm:$0xf0]  ;;  %v5757_v9 = vld [vmem:[%s8674_s8 + $0x244] sm:$0xf] }
 0x31b   :  { %3493 = vmatpush.bf16.msra.mxu0 %v5108_v20  ;;  %v4967_v20 = vld [vmem:[%s8674_s8 + $0x1d0] sm:$0xf]  ;;  %v4916_v17 = vor.u32 %v5729_v16, %v4913_v7  ;;  %v4804_v16 = vor.u32 %v5701_v49, %v4801_v8  ;;  %v4947_v7 = vld [vmem:[%s8674_s8 + $0x1a0] sm:$0xf]  ;;  %v5782_v8 = vld [vmem:[%s8674_s8 + $0x308] sm:$0xf0] }
 0x31c   :  { %3445 = vmatpush.bf16.msra.mxu1 %v4992_v23  ;;  %v5389_v23 = vld [vmem:[%s8674_s8 + $0x534] sm:$0xf0]  ;;  %v4968_v51 = vor.u32 %v5746_v21, %v4967_v20  ;;  %v5740_v20 = vld [vmem:[%s8674_s8 + $0x1b8] sm:$0xf0]  ;;  %v5694_v21 = vld [vmem:[%s8674_s8 + $0x4c] sm:$0xf] }
 0x31d   :  { %3482 = vmatpush.bf16.msra.mxu3 %v4828_v25  ;;  %v5275_v25 = vld [vmem:[%s8674_s8 + $0x438] sm:$0xf]  ;;  %v5392_v28 = vor.u32 %v5848_v22, %v5389_v23  ;;  %v4773_v22 = vld [vmem:[%s8674_s8 + $0x64] sm:$0xf0]  ;;  %v5115_v49 = vld [vmem:[%s8674_s8 + $0x2f0] sm:$0xf] }
 0x31e   :  { %3457 = vmatpush.bf16.msra.mxu2 %v5244_v27  ;;  %v5722_v27 = vld [vmem:[%s8674_s8 + $0x12c] sm:$0xf] }
 0x31f   :  { %3494 = vmatpush.bf16.msra.mxu0 %v5080_v31  ;;  %v5109_v31 = vld [vmem:[%s8674_s8 + $0x304] sm:$0xf0]  ;;  %v4888_v37 = vor.u32 %v5722_v27, %v4885_v30  ;;  %v5733_v30 = vld [vmem:[%s8674_s8 + $0x180] sm:$0xf0] }
 0x320   :  { %3446 = vmatpush.bf16.msra.mxu1 %v4964_v36  ;;  %v5276_v36 = vor.u32 %v5823_v57, %v5275_v25  ;;  %v5813_v25 = vld [vmem:[%s8674_s8 + $0x404] sm:$0xf]  ;;  %v4776_v57 = vor.u32 %v5694_v21, %v4773_v22  ;;  %v4919_v27 = vld [vmem:[%s8674_s8 + $0x168] sm:$0xf] }
 0x321   :  { %3483 = vmatpush.bf16.msra.mxu3 %v4800_v39  ;;  %v5112_v39 = vor.u32 %v5778_v29, %v5109_v31  ;;  %v4745_v31 = vld [vmem:[%s8674_s8 + $0x2c] sm:$0xf0]  ;;  %v4807_v22 = vld [vmem:[%s8674_s8 + $0x88] sm:$0xf] }
 0x322   :  { %3458 = vmatpush.bf16.msra.mxu2 %v5216_v42  ;;  %v4857_v42 = vld [vmem:[%s8674_s8 + $0x10c] sm:$0xf0] }
 0x323   :  { %3447 = vmatmul.bf16.vlgmr.msra.gmra.mxu1 %v7867_v35  ;;  %3495 = vmatpush.bf16.msra.mxu0 %v5052_v46  ;;  %v5834_v46 = vld [vmem:[%s8674_s8 + $0x4ac] sm:$0xf]  ;;  %v4860_v50 = vor.u32 %v5715_v41, %v4857_v42  ;;  %v5221_v42 = vld [vmem:[%s8674_s8 + $0x3e4] sm:$0xf0] }
 0x324   :  { %3504 = vmatpush.bf16.msrb.mxu1 %v5388_v40  ;;  %v5816_v40 = vld [vmem:[%s8674_s8 + $0x418] sm:$0xf0]  ;;  %v5336_v61 = vor.u32 %v5834_v46, %v5333_v47  ;;  %v5806_v41 = vld [vmem:[%s8674_s8 + $0x3cc] sm:$0xf]  ;;  %v4891_v47 = vld [vmem:[%s8674_s8 + $0x130] sm:$0xf] }
 0x325   :  { %3484 = vmatpush.bf16.msra.mxu3 %v4772_v58  ;;  %v5248_v48 = vor.u32 %v5816_v40, %v5247_v38  ;;  %v5708_v58 = vld [vmem:[%s8674_s8 + $0xbc] sm:$0xf] }
 0x326   :  { %3459 = vmatpush.bf16.msra.mxu2 %v5188_v62  ;;  %v5764_v62 = vld [vmem:[%s8674_s8 + $0x27c] sm:$0xf] }
 0x327   :  { %3496 = vmatpush.bf16.msra.mxu0 %v5024_v3  ;;  %v5220_v3 = vor.u32 %v5809_v56, %v5219_v52  ;;  %v5056_v6 = vor.u32 %v5764_v62, %v5053_v0  ;;  %v5796_v38 = vld [vmem:[%s8674_s8 + $0x378] sm:$0xf0]  ;;  %v5224_v52 = vor.u32 %v5806_v41, %v5221_v42  ;;  %v5789_v56 = vld [vmem:[%s8674_s8 + $0x340] sm:$0xf0]  ;;  %v5193_v62 = vld [vmem:[%s8674_s8 + $0x3ac] sm:$0xf0] }
 0x328   :  { %3505 = vmatpush.bf16.msrb.mxu1 %v5360_v60  ;;  %v4829_v60 = vld [vmem:[%s8674_s8 + $0xd4] sm:$0xf0]  ;;  %v5852_v40 = vld [vmem:[%s8674_s8 + $0x538] sm:$0xf0]  ;;  %v5003_v42 = vld [vmem:[%s8674_s8 + $0x210] sm:$0xf] }
 0x329   :  { %3460 = vmatmul.bf16.vlgmr.msra.gmra.mxu2 %v7869_v34  ;;  %3485 = vmatpush.bf16.msra.mxu3 %v4744_v10  ;;  %v5308_v10 = vor.u32 %v5827_v1, %v5305_v2  ;;  %v5423_v1 = vld [vmem:[%s8674_s8 + $0x558] sm:$0xf]  ;;  %v5859_v2 = vld [vmem:[%s8674_s8 + $0x570] sm:$0xf0] }
 0x32a   :  { %3524 = vmatpush.bf16.msrb.mxu2 %v5416_v4  ;;  %v4832_v4 = vor.u32 %v5708_v58, %v4829_v60  ;;  %v5367_v58 = vld [vmem:[%s8674_s8 + $0x4e8] sm:$0xf]  ;;  %v5845_v60 = vld [vmem:[%s8674_s8 + $0x500] sm:$0xf0] }
 0x32b   :  { %3497 = vmatpush.bf16.msra.mxu0 %v4996_v15  ;;  %v5192_v15 = vor.u32 %v5802_v5, %v5191_v53  ;;  %v5719_v53 = vld [vmem:[%s8674_s8 + $0x110] sm:$0xf0]  ;;  %v5368_v5 = vor.u32 %v5845_v60, %v5367_v58 }
 0x32c   :  { %3506 = vmatpush.bf16.msrb.mxu1 %v5332_v11  ;;  %3486 = vmatmul.bf16.vlgmr.msra.gmra.mxu3 %v7897_v59  ;;  %v5025_v11 = vld [vmem:[%s8674_s8 + $0x25c] sm:$0xf0] }
 0x32d   :  { %3543 = vmatpush.bf16.msrb.mxu3 %v5168_v14  ;;  %v5277_v14 = vld [vmem:[%s8674_s8 + $0x454] sm:$0xf0]  ;;  %v5028_v18 = vor.u32 %v5757_v9, %v5025_v11  ;;  %v5339_v9 = vld [vmem:[%s8674_s8 + $0x4b0] sm:$0xf]  ;;  %v5424_v11 = vor.u32 %v5859_v2, %v5423_v1 }
 0x32e   :  { %3530 = vmatpush.bf16.msra.mxu2 %v4944_v55  ;;  %v5855_v55 = vld [vmem:[%s8674_s8 + $0x554] sm:$0xf]  ;;  %v5280_v23 = vor.u32 %v5820_v13, %v5277_v14  ;;  %v4835_v13 = vld [vmem:[%s8674_s8 + $0xc0] sm:$0xf]  ;;  %v5712_v14 = vld [vmem:[%s8674_s8 + $0xd8] sm:$0xf0] }
 0x32f   :  { %3498 = vmatpush.bf16.msra.mxu0 %v4968_v51  ;;  %v5420_v19 = vor.u32 %v5855_v55, %v5417_v12  ;;  %v4948_v51 = vor.u32 %v5740_v20, %v4947_v7  ;;  %v5116_v12 = vor.u32 %v5782_v8, %v5115_v49  ;;  %v5775_v7 = vld [vmem:[%s8674_s8 + $0x2d0] sm:$0xf0]  ;;  %v4836_v20 = vor.u32 %v5712_v14, %v4835_v13 }
 0x330   :  { %3507 = vmatpush.bf16.msrb.mxu1 %v5304_v24  ;;  %v5750_v24 = vld [vmem:[%s8674_s8 + $0x20c] sm:$0xf] }
 0x331   :  { %3544 = vmatpush.bf16.msrb.mxu3 %v5140_v26  ;;  %v5249_v26 = vld [vmem:[%s8674_s8 + $0x41c] sm:$0xf0] }
 0x332   :  { %3531 = vmatpush.bf16.msra.mxu2 %v4916_v17  ;;  %3499 = vmatmul.bf16.vlgmr.msra.gmra.mxu0 %v7867_v35  ;;  %v4997_v17 = vld [vmem:[%s8674_s8 + $0x224] sm:$0xf0] }
 0x333   :  { %3556 = vmatpush.bf16.msrb.mxu0 %v5392_v28  ;;  %v5687_v28 = vld [vmem:[%s8674_s8 + $0x14] sm:$0xf]  ;;  %v5000_v29 = vor.u32 %v5750_v24, %v4997_v17  ;;  %v5059_v17 = vld [vmem:[%s8674_s8 + $0x280] sm:$0xf] }
 0x334   :  { %3508 = vmatpush.bf16.msrb.mxu1 %v5276_v36  ;;  %v5252_v36 = vor.u32 %v5813_v25, %v5249_v26  ;;  %v4748_v44 = vor.u32 %v5687_v28, %v4745_v31  ;;  %v5768_v25 = vld [vmem:[%s8674_s8 + $0x298] sm:$0xf0]  ;;  %v5283_v26 = vld [vmem:[%s8674_s8 + $0x440] sm:$0xf]  ;;  %v5698_v28 = vld [vmem:[%s8674_s8 + $0x68] sm:$0xf0] }
 0x335   :  { %3545 = vmatpush.bf16.msrb.mxu3 %v5112_v39  ;;  %v5395_v39 = vld [vmem:[%s8674_s8 + $0x520] sm:$0xf]  ;;  %v5031_v31 = vld [vmem:[%s8674_s8 + $0x248] sm:$0xf] }
 0x336   :  { %3532 = vmatpush.bf16.msra.mxu2 %v4888_v37  ;;  %v5171_v37 = vld [vmem:[%s8674_s8 + $0x360] sm:$0xf] }
 0x337   :  { %3557 = vmatpush.bf16.msrb.mxu0 %v5364_v43  ;;  %v4920_v43 = vor.u32 %v5733_v30, %v4919_v27  ;;  %v5172_v46 = vor.u32 %v5796_v38, %v5171_v37  ;;  %v5060_v27 = vor.u32 %v5768_v25, %v5059_v17  ;;  %v4779_v30 = vld [vmem:[%s8674_s8 + $0x50] sm:$0xf]  ;;  %v5032_v38 = vor.u32 %v5761_v32, %v5031_v31 }
 0x338   :  { %3509 = vmatpush.bf16.msrb.mxu1 %v5248_v48  ;;  %v5726_v48 = vld [vmem:[%s8674_s8 + $0x148] sm:$0xf0]  ;;  %v4780_v37 = vor.u32 %v5698_v28, %v4779_v30 }
 0x339   :  { %3546 = vmatpush.bf16.msrb.mxu3 %v5084_v54  ;;  %5429 = vmatmul.msk.bf16.vlgmr.msrb.gmra.mxu2 %vm1240_vm0, %v7905_v63  ;;  %v5143_v54 = vld [vmem:[%s8674_s8 + $0x328] sm:$0xf]  ;;  %v4892_v0 = vor.u32 %v5726_v48, %v4891_v47 }
 0x33a   :  { %3533 = vmatpush.bf16.msra.mxu2 %v4860_v50  ;;  %v5396_v50 = vor.u32 %v5852_v40, %v5395_v39  ;;  %v4751_v39 = vld [vmem:[%s8674_s8 + $0x18] sm:$0xf]  ;;  %v5691_v40 = vld [vmem:[%s8674_s8 + $0x30] sm:$0xf0] }
 0x33b   :  { %3558 = vmatpush.bf16.msrb.mxu0 %v5336_v61  ;;  %v5799_v61 = vld [vmem:[%s8674_s8 + $0x394] sm:$0xf] }
 0x33c   :  { %3510 = vmatpush.bf16.msrb.mxu1 %v5220_v3  ;;  %v5144_v3 = vor.u32 %v5789_v56, %v5143_v54  ;;  %v5199_v54 = vld [vmem:[%s8674_s8 + $0x398] sm:$0xf]  ;;  %v5803_v56 = vld [vmem:[%s8674_s8 + $0x3b0] sm:$0xf0] }
 0x33d   :  { %3547 = vmatpush.bf16.msrb.mxu3 %v5056_v6  ;;  %v5196_v6 = vor.u32 %v5799_v61, %v5193_v62  ;;  %v5200_v60 = vor.u32 %v5803_v56, %v5199_v54 }
 0x33e   :  { %3534 = vmatpush.bf16.msra.mxu2 %v4832_v4  ;;  %v4863_v4 = vld [vmem:[%s8674_s8 + $0xf8] sm:$0xf] }
 0x33f   :  { %3559 = vmatpush.bf16.msrb.mxu0 %v5308_v10  ;;  %v5838_v10 = vld [vmem:[%s8674_s8 + $0x4c8] sm:$0xf0]  ;;  %v4864_v55 = vor.u32 %v5719_v53, %v4863_v4 }
 0x340   :  { %3511 = vmatpush.bf16.msrb.mxu1 %v5192_v15  ;;  %v5340_v15 = vor.u32 %v5838_v10, %v5339_v9 }
 0x341   :  { %3548 = vmatpush.bf16.msrb.mxu3 %v5028_v18  ;;  %v5311_v18 = vld [vmem:[%s8674_s8 + $0x478] sm:$0xf] }
 0x342   :  { %3535 = vmatpush.bf16.msra.mxu2 %v4804_v16  ;;  %v5087_v16 = vld [vmem:[%s8674_s8 + $0x2b8] sm:$0xf] }
 0x343   :  { %3560 = vmatpush.bf16.msrb.mxu0 %v5280_v23  ;;  %3512 = vmatmul.bf16.vlgmr.msrb.gmra.mxu1 %v7869_v34  ;;  %v5088_v21 = vor.u32 %v5775_v7, %v5087_v16  ;;  %v5705_v23 = vld [vmem:[%s8674_s8 + $0xa0] sm:$0xf0] }
 0x344   :  { %3576 = vmatpush.bf16.msra.mxu1 %v5420_v19  ;;  %v5831_v19 = vld [vmem:[%s8674_s8 + $0x490] sm:$0xf0] }
 0x345   :  { %3549 = vmatpush.bf16.msrb.mxu3 %v5000_v29  ;;  %v5312_v24 = vor.u32 %v5831_v19, %v5311_v18 }
 0x346   :  { %3536 = vmatpush.bf16.msra.mxu2 %v4776_v57  ;;  %v4808_v57 = vor.u32 %v5705_v23, %v4807_v22 }
 0x347   :  { %3561 = vmatpush.bf16.msrb.mxu0 %v5252_v36  ;;  %v5817_v36 = vld [vmem:[%s8674_s8 + $0x420] sm:$0xf0] }
 0x348   :  { %3582 = vmatpush.bf16.msrb.mxu1 %v4948_v51  ;;  %v5824_v51 = vld [vmem:[%s8674_s8 + $0x458] sm:$0xf0]  ;;  %v5256_v41 = vor.u32 %v5817_v36, %v5255_v33 }
 0x349   :  { %3550 = vmatpush.bf16.msrb.mxu3 %v4972_v45  ;;  %v5284_v29 = vor.u32 %v5824_v51, %v5283_v26  ;;  %v5810_v45 = vld [vmem:[%s8674_s8 + $0x3e8] sm:$0xf0] }
 0x34a   :  { %3537 = vmatpush.bf16.msra.mxu2 %v4748_v44  ;;  %v5227_v44 = vld [vmem:[%s8674_s8 + $0x3d0] sm:$0xf] }
 0x34b   :  { %3562 = vmatpush.bf16.msrb.mxu0 %v5224_v52  ;;  %v5228_v48 = vor.u32 %v5810_v45, %v5227_v44  ;;  %v5747_v52 = vld [vmem:[%s8674_s8 + $0x1f0] sm:$0xf0] }
 0x34c   :  { %3583 = vmatpush.bf16.msrb.mxu1 %v4920_v43  ;;  %3551 = vmatmul.bf16.vlgmr.msrb.gmra.mxu3 %v7867_v35  ;;  %v5754_v43 = vld [vmem:[%s8674_s8 + $0x228] sm:$0xf0] }
 0x34d   :  { %3608 = vmatpush.bf16.msra.mxu3 %v5396_v50  ;;  %3538 = vmatmul.bf16.vlgmr.msra.gmra.mxu2 %v7897_v59  ;;  %v5004_v47 = vor.u32 %v5754_v43, %v5003_v42  ;;  %v4975_v50 = vld [vmem:[%s8674_s8 + $0x1d8] sm:$0xf] }
 0x34e   :  { %3595 = vmatpush.bf16.msrb.mxu2 %v5172_v46  ;;  %v4752_v46 = vor.u32 %v5691_v40, %v4751_v39  ;;  %v4976_v58 = vor.u32 %v5747_v52, %v4975_v50 }
 0x34f   :  { %3563 = vmatpush.bf16.msrb.mxu0 %v5196_v6 }
 0x350   :  { %3584 = vmatpush.bf16.msrb.mxu1 %v4892_v0  ;;  %v8651_v0 = vld [vmem:[%s8675_s9] sm:$0xff]  ;;  %s5947_s9 = smov [#allocation4]  }
 0x351   :  { %3609 = vmatpush.bf16.msra.mxu3 %v5368_v5  ;;  %v2353_v2 = vperm.slane %v8651_v0, 0  ;;  %s3692_s1 = sshll.u32 %s5947_s9, 4  ;;  %v2355_v51 = vperm.slane %v8651_v0, 2  ;;  %v2356_v50 = vperm.slane %v8651_v0, 3  ;;  %s3693_s1 = int_to_ptr.vmem [resolvable:$true] %s3692_s1 }
 0x352   :  { %3596 = vmatpush.bf16.msrb.mxu2 %v5144_v3  ;;  %3564 = vmatmul.bf16.vlgmr.msrb.gmra.mxu0 %v7869_v34  ;;  %3697 = dma.vmem_to_hbm [thread:$0]  %s3693_s1, 128, %s3695_s2, [#allocation5]  }
 0x353   :  { %3628 = vmatpush.bf16.msra.mxu0 %v5424_v11  ;;  %5430 = vmatmul.msk.bf16.vlgmr.msra.gmra.mxu1 %vm1240_vm0, %v7905_v63 }
 0x354   :  { %3585 = vmatpush.bf16.msrb.mxu1 %v4864_v55 }
 0x355   :  { %3610 = vmatpush.bf16.msra.mxu3 %v5340_v15 }
 0x356   :  { %3597 = vmatpush.bf16.msrb.mxu2 %v5116_v12  ;;  %v2354_v12 = vperm.slane %v8651_v0, 1 }
 0x358   :  { %3586 = vmatpush.bf16.msrb.mxu1 %v4836_v20 }
 0x359   :  { %3611 = vmatpush.bf16.msra.mxu3 %v5312_v24 }
 0x35a   :  { %3598 = vmatpush.bf16.msrb.mxu2 %v5088_v21 }
 0x35c   :  { %3587 = vmatpush.bf16.msrb.mxu1 %v4808_v57 }
 0x35d   :  { %3612 = vmatpush.bf16.msra.mxu3 %v5284_v29 }
 0x35e   :  { %3599 = vmatpush.bf16.msrb.mxu2 %v5060_v27 }
 0x35f   :  { %v3292_v61 = vpop.f32.mrf.mxu0 }
 0x360   :  { %3588 = vmatpush.bf16.msrb.mxu1 %v4780_v37  ;;  %v3305_v62 = vpop.f32.mrf.mxu1 }
 0x361   :  { %3613 = vmatpush.bf16.msra.mxu3 %v5256_v41 }
 0x362   :  { %3600 = vmatpush.bf16.msrb.mxu2 %v5032_v38  ;;  %5431 = vmatmul.msk.bf16.vlgmr.msra.gmra.mxu0 %vm1240_vm0, %v7905_v63 }
 0x364   :  { %3589 = vmatpush.bf16.msrb.mxu1 %v4752_v46 }
 0x365   :  { %3614 = vmatpush.bf16.msra.mxu3 %v5228_v48 }
 0x366   :  { %3601 = vmatpush.bf16.msrb.mxu2 %v5004_v47 }
 0x367   :  { %3590 = vmatmul.bf16.vlgmr.msrb.gmra.mxu1 %v7897_v59  ;;  %v3294_v1 = vpop.f32.mrf.mxu0 }
 0x368   :  { %v3307_v63 = vpop.f32.mrf.mxu1 }
 0x369   :  { %3615 = vmatpush.bf16.msra.mxu3 %v5200_v60 }
 0x36a   :  { %3602 = vmatpush.bf16.msrb.mxu2 %v4976_v58 }
 0x36b   :  { %v3279_v3 = vpop.f32.mrf.mxu3 }
 0x36c   :  { %3616 = vmatmul.bf16.vlgmr.msra.gmra.mxu3 %v7869_v34  ;;  %v3280_v4 = vadd.f32 %v3279_v3, %v2353_v2  ;;  %v3318_v59 = vpop.f32.mrf.mxu2 }
 0x36d   :  { %3603 = vmatmul.bf16.vlgmr.msrb.gmra.mxu2 %v7867_v35 }
 0x36e   :  { %v3293_v53 = vadd.f32 %v3292_v61, %v3280_v4 }
 0x36f   :  { %v3357_v5 = vpop.f32.mrf.mxu0 }
 0x370   :  { %v3306_v6 = vadd.f32 %v3305_v62, %v3293_v53  ;;  %v3370_v49 = vpop.f32.mrf.mxu1  ;;  %v2357_v53 = vperm.slane %v8651_v0, 4 }
 0x372   :  { %v3319_v8 = vadd.f32 %v3318_v59, %v3306_v6 }
 0x373   :  { %v3281_v35 = vpop.f32.mrf.mxu3 }
 0x374   :  { %v3634_v9 = vsub.f32 0.0, %v3319_v8  ;;  %v3320_v34 = vpop.f32.mrf.mxu2 }
 0x376   :  { %v3641_v10 = vmul.f32 1.442695, %v3634_v9 }
 0x377   :  { %v3359_v11 = vpop.f32.mrf.mxu0 }
 0x378   :  { %5866 = vpow2.f32 %v3641_v10  ;;  %v3372_v55 = vpop.f32.mrf.mxu1 }
 0x37b   :  { %v3344_v13 = vpop.f32.mrf.mxu3 }
 0x37c   :  { %v3331_v14 = vpop.f32.mrf.mxu2 }
 0x37d   :  { %v3332_v15 = vadd.f32 %v3331_v14, %v2354_v12 }
 0x37e   :  { %v5867_v16 = vpop.eup %5866 }
 0x37f   :  { %v3655_v7 = vadd.f32 1.0, %v5867_v16  ;;  %v3345_v18 = vadd.f32 %v3344_v13, %v3332_v15  ;;  %v3422_v19 = vpop.f32.mrf.mxu0 }
 0x380   :  { %v3383_v20 = vpop.f32.mrf.mxu1 }
 0x381   :  { %5868 = vrcp.f32 %v3655_v7  ;;  %v3358_v21 = vadd.f32 %v3357_v5, %v3345_v18  ;;  %v3384_v30 = vadd.f32 %v3383_v20, %v2355_v51  ;;  %v2358_v7 = vperm.slane %v8651_v0, 5 }
 0x383   :  { %v3371_v22 = vadd.f32 %v3370_v49, %v3358_v21  ;;  %v3346_v23 = vpop.f32.mrf.mxu3 }
 0x384   :  { %v3333_v24 = vpop.f32.mrf.mxu2 }
 0x385   :  { %v3635_v17 = vsub.f32 0.0, %v3371_v22 }
 0x387   :  { %v5869_v25 = vpop.eup %5868  ;;  %v3643_v26 = vmul.f32 1.442695, %v3635_v17  ;;  %v3424_v57 = vpop.f32.mrf.mxu0 }
 0x388   :  { %3669 = vst [vmem:[#allocation2] sm:$0xff] %v5869_v25  ;;  %v3385_v27 = vpop.f32.mrf.mxu1 }
 0x389   :  { %5870 = vpow2.f32 %v3643_v26 }
 0x38b   :  { %v3409_v28 = vpop.f32.mrf.mxu3 }
 0x38c   :  { %v3396_v29 = vpop.f32.mrf.mxu2 }
 0x38d   :  { %v3397_v31 = vadd.f32 %v3396_v29, %v3384_v30 }
 0x38f   :  { %v5871_v32 = vpop.eup %5870  ;;  %v3410_v33 = vadd.f32 %v3409_v28, %v3397_v31  ;;  %v3435_v36 = vpop.f32.mrf.mxu0 }
 0x390   :  { %v3656_v37 = vadd.f32 1.0, %v5871_v32  ;;  %v3436_v58 = vadd.f32 %v3435_v36, %v2356_v50 }
 0x391   :  { %v3423_v38 = vadd.f32 %v3422_v19, %v3410_v33 }
 0x392   :  { %5872 = vrcp.f32 %v3656_v37 }
 0x393   :  { %v3636_v39 = vsub.f32 0.0, %v3423_v38  ;;  %v3411_v40 = vpop.f32.mrf.mxu3  ;;  %v2359_v38 = vperm.slane %v8651_v0, 6 }
 0x394   :  { %v3398_v41 = vpop.f32.mrf.mxu2 }
 0x395   :  { %v3645_v42 = vmul.f32 1.442695, %v3636_v39 }
 0x397   :  { %5874 = vpow2.f32 %v3645_v42  ;;  %v3437_v43 = vpop.f32.mrf.mxu0 }
 0x398   :  { %v5873_v44 = vpop.eup %5872 }
 0x399   :  { %3670 = vst [vmem:[#allocation2 + $0x8] sm:$0xff] %v5873_v44 }
 0x39b   :  { %v3474_v45 = vpop.f32.mrf.mxu3 }
 0x39d   :  { %v5875_v46 = vpop.eup %5874 }
 0x39e   :  { %v3657_v48 = vadd.f32 1.0, %v5875_v46 }
 0x3a0   :  { %v3448_v47 = vpop.f32.mrf.mxu1  ;;  %5876 = vrcp.f32 %v3657_v48 }
 0x3a1   :  { %v3449_v60 = vadd.f32 %v3448_v47, %v3436_v58 }
 0x3a3   :  { %v3476_v52 = vpop.f32.mrf.mxu3 }
 0x3a6   :  { %v5877_v56 = vpop.eup %5876 }
 0x3a7   :  { %3671 = vst [vmem:[#allocation2 + $0x10] sm:$0xff] %v5877_v56 }
 0x3a8   :  { %v3450_v54 = vpop.f32.mrf.mxu1 }
 0x3ac   :  { %v3461_v61 = vpop.f32.mrf.mxu2 }
 0x3ad   :  { %v3462_v62 = vadd.f32 %v3461_v61, %v3449_v60 }
 0x3af   :  { %v3475_v1 = vadd.f32 %v3474_v45, %v3462_v62  ;;  %v3487_v63 = vpop.f32.mrf.mxu3  ;;  %v3500_v2 = vpop.f32.mrf.mxu0 }
 0x3b0   :  { %v3488_v49 = vadd.f32 %v3487_v63, %v2357_v53 }
 0x3b1   :  { %v3637_v3 = vsub.f32 0.0, %v3475_v1 }
 0x3b2   :  { %v3501_v34 = vadd.f32 %v3500_v2, %v3488_v49 }
 0x3b3   :  { %v3647_v4 = vmul.f32 1.442695, %v3637_v3 }
 0x3b4   :  { %v3463_v59 = vpop.f32.mrf.mxu2 }
 0x3b5   :  { %5878 = vpow2.f32 %v3647_v4 }
 0x3b7   :  { %v3489_v5 = vpop.f32.mrf.mxu3  ;;  %v3502_v6 = vpop.f32.mrf.mxu0 }
 0x3bb   :  { %v5879_v8 = vpop.eup %5878 }
 0x3bc   :  { %v3658_v35 = vadd.f32 1.0, %v5879_v8  ;;  %v3526_v9 = vpop.f32.mrf.mxu2 }
 0x3be   :  { %5880 = vrcp.f32 %v3658_v35 }
 0x3c0   :  { %v3513_v10 = vpop.f32.mrf.mxu1 }
 0x3c1   :  { %v3514_v11 = vadd.f32 %v3513_v10, %v3501_v34 }
 0x3c3   :  { %v3527_v55 = vadd.f32 %v3526_v9, %v3514_v11 }
 0x3c4   :  { %v5881_v13 = vpop.eup %5880  ;;  %v3528_v14 = vpop.f32.mrf.mxu2 }
 0x3c5   :  { %v3638_v12 = vsub.f32 0.0, %v3527_v55  ;;  %3672 = vst [vmem:[#allocation2 + $0x18] sm:$0xff] %v5881_v13 }
 0x3c7   :  { %v3649_v15 = vmul.f32 1.442695, %v3638_v12 }
 0x3c8   :  { %v3515_v16 = vpop.f32.mrf.mxu1 }
 0x3c9   :  { %5882 = vpow2.f32 %v3649_v15 }
 0x3cf   :  { %v3565_v19 = vpop.f32.mrf.mxu0  ;;  %v5883_v20 = vpop.eup %5882 }
 0x3d0   :  { %v3539_v18 = vpop.f32.mrf.mxu2  ;;  %v3552_v22 = vpop.f32.mrf.mxu3  ;;  %v3659_v23 = vadd.f32 1.0, %v5883_v20 }
 0x3d1   :  { %v3540_v21 = vadd.f32 %v3539_v18, %v2358_v7  ;;  %v3578_v24 = vpop.f32.mrf.mxu1 }
 0x3d2   :  { %5884 = vrcp.f32 %v3659_v23 }
 0x3d3   :  { %v3553_v17 = vadd.f32 %v3552_v22, %v3540_v21 }
 0x3d5   :  { %v3566_v25 = vadd.f32 %v3565_v19, %v3553_v17 }
 0x3d7   :  { %v3579_v26 = vadd.f32 %v3578_v24, %v3566_v25  ;;  %v3567_v57 = vpop.f32.mrf.mxu0 }
 0x3d8   :  { %v3541_v51 = vpop.f32.mrf.mxu2  ;;  %v3554_v30 = vpop.f32.mrf.mxu3 }
 0x3d9   :  { %v3639_v27 = vsub.f32 0.0, %v3579_v26  ;;  %v5885_v28 = vpop.eup %5884  ;;  %v3580_v29 = vpop.f32.mrf.mxu1 }
 0x3da   :  { %3673 = vst [vmem:[#allocation2 + $0x20] sm:$0xff] %v5885_v28 }
 0x3db   :  { %v3651_v31 = vmul.f32 1.442695, %v3639_v27 }
 0x3dd   :  { %5886 = vpow2.f32 %v3651_v31 }
 0x3df   :  { %v3630_v32 = vpop.f32.mrf.mxu0 }
 0x3e3   :  { %v5887_v36 = vpop.eup %5886 }
 0x3e4   :  { %v3591_v33 = vpop.f32.mrf.mxu1  ;;  %v3660_v37 = vadd.f32 1.0, %v5887_v36 }
 0x3e5   :  { %v3592_v42 = vadd.f32 %v3591_v33, %v2359_v38 }
 0x3e6   :  { %5888 = vrcp.f32 %v3660_v37 }
 0x3e7   :  { %v3632_v39 = vpop.f32.mrf.mxu0 }
 0x3ec   :  { %v3593_v40 = vpop.f32.mrf.mxu1  ;;  %v5889_v41 = vpop.eup %5888 }
 0x3ed   :  { %3674 = vst [vmem:[#allocation2 + $0x28] sm:$0xff] %v5889_v41 }
 0x3ef   :  { %v3617_v45 = vpop.f32.mrf.mxu3 }
 0x3f0   :  { %v3604_v43 = vpop.f32.mrf.mxu2 }
 0x3f1   :  { %v3605_v44 = vadd.f32 %v3604_v43, %v3592_v42 }
 0x3f3   :  { %v3618_v46 = vadd.f32 %v3617_v45, %v3605_v44 }
 0x3f5   :  { %v3631_v47 = vadd.f32 %v3630_v32, %v3618_v46 }
 0x3f7   :  { %v3640_v48 = vsub.f32 0.0, %v3631_v47  ;;  %v3619_v54 = vpop.f32.mrf.mxu3 }
 0x3f8   :  { %v3606_v50 = vpop.f32.mrf.mxu2 }
 0x3f9   :  { %v3653_v52 = vmul.f32 1.442695, %v3640_v48 }
 0x3fb   :  { %5890 = vpow2.f32 %v3653_v52 }
 0x401   :  { %v5891_v56 = vpop.eup %5890 }
 0x402   :  { %v3661_v58 = vadd.f32 1.0, %v5891_v56 }
 0x404   :  { %5892 = vrcp.f32 %v3661_v58 }
 0x40a   :  { %v5893_v0 = vpop.eup %5892 }
 0x40b   :  { %3675 = vst [vmem:[#allocation2 + $0x30] sm:$0xff] %v5893_v0 }
 0x40c   :  { %3686 = dma.vmem_to_hbm [thread:$0]  %s3682_s16, 896, %s3684_s19, [#allocation3]  }
 0x40d   :  { %5942 = dma.done.wait [#allocation3], 896  }
 0x40e   :  { %5943 = vsyncadd [#allocation3], 4294966400 }
 0x40f   :  { %5944 = dma.done.wait [#allocation5], 128  }
 0x410   :  { %5945 = vsyncadd [#allocation5], 4294967168 }
 0x411   :  { %3706 = vsyncpa [#allocation3], 1 }
 0x412   :  { %3707 = vsyncpa [#allocation5], 1 }

</bundles_post_ra>
